<compile_context>
chip_gen: v7x
topology: tpu7x:2x2x1
jax: 0.10.0
libtpu: 0.0.40
codegen_flags: <defaults>
</compile_context>

<pallas_src>
import jax
import jax.numpy as jnp
from jax.experimental import pallas as pl
from jax.experimental.pallas import tpu as pltpu


# ----------------------------------------------------------------------------
# Fused kernel: in-kernel embedding gather, p_control, hoisted input
# projection, LSTM recurrence, masked max-pool, bilinear (BIM) matching.
# ----------------------------------------------------------------------------
def expan_match_kernel(emb_ref,    # (VOCAB, D)   embedding table (VMEM resident)
                       qul_ref,    # (B, 3)       int32 columns: [q_ids, u_ids, lens]
                       ptm_ref,    # (T*B, 1)     int32 path ids, t-major (row = t*B + b)
                       w_in_ref,   # (D+1, 5H+R)  rows 0..D-1: [Wih^T | Wc^T | Wbim_r]; row D: [bih+bhh | 0]
                       w_h_ref,    # (H, 4H+R)    [Whh^T | Wbim_p]
                       st_ref,     # (2B, H)      rows [h0 ; c0]
                       out_ref):   # (B, 1)       scores
    VOCAB, D = emb_ref.shape
    B = qul_ref.shape[0]
    TB = ptm_ref.shape[0]
    T = TB // B
    H = st_ref.shape[1]
    R = w_h_ref.shape[1] - 4 * H
    assert R == D  # final score does sum(tmp * hq): r_dim must equal emb dim

    emb = emb_ref[...]                                            # (VOCAB, D)

    # ---- unpack weight / state slabs (static, tile-friendly slices; one-time)
    wih_t = w_in_ref[0:D, 0:4 * H]                                # (D, 4H)
    wc_t = w_in_ref[0:D, 4 * H:5 * H]                             # (D, H)
    wbim_r = w_in_ref[0:D, 5 * H:5 * H + R]                       # (D, R)
    bias = w_in_ref[D:D + 1, 0:4 * H]                             # (1, 4H)  bih+bhh
    whh_t = w_h_ref[:, 0:4 * H]                                   # (H, 4H)
    wbim_p = w_h_ref[:, 4 * H:4 * H + R]                          # (H, R)
    h = st_ref[0:B, :]                                            # (B, H)
    c = st_ref[B:2 * B, :]                                        # (B, H)

    # ---- in-kernel embedding lookups: one-hot @ table on the idle MXU --------
    lane_iota_b = jax.lax.broadcasted_iota(jnp.int32, (B, VOCAB), 1)
    onehot_q = (qul_ref[:, 0:1] == lane_iota_b).astype(jnp.float32)
    onehot_u = (qul_ref[:, 1:2] == lane_iota_b).astype(jnp.float32)
    hq = jnp.dot(onehot_q, emb, preferred_element_type=jnp.float32)    # (B, D)
    hu = jnp.dot(onehot_u, emb, preferred_element_type=jnp.float32)    # (B, D)

    lane_iota_tb = jax.lax.broadcasted_iota(jnp.int32, (TB, VOCAB), 1)
    onehot_p = (ptm_ref[...] == lane_iota_tb).astype(jnp.float32)      # (TB, VOCAB)
    pemb = jnp.dot(onehot_p, emb, preferred_element_type=jnp.float32)  # (TB, D)  t-major

    # ---- p_control: ReLU(Linear(no bias)) on the first path token ------------
    c_ctrl = jnp.maximum(
        jnp.dot(pemb[0:B, :], wc_t, preferred_element_type=jnp.float32), 0.0)   # (B, H)

    # ---- hoisted input-to-hidden projection (+ bias) for all timesteps -------
    gates_x = jnp.dot(pemb, wih_t, preferred_element_type=jnp.float32) + bias   # (TB, 4H)

    # ---- masks built in-kernel from lens, hoisted OFF the recurrence chain ---
    # pad_packed_sequence + max-pool semantics:
    #   t <  lens[b]              -> c_ctrl * h_t
    #   lens[b] <= t < max(lens)  -> 0        (padded LSTM output is zero)
    #   t >= max(lens)            -> row absent from padded output (additive -inf)
    lens_f = qul_ref[:, 2:3].astype(jnp.float32)                       # (B, 1)
    maxlen = jnp.max(lens_f, axis=0, keepdims=True)                    # (1, 1)
    c_sel = []   # c_ctrl pre-multiplied by validity, one (B, H) tile per step
    offs = []    # additive 0 / -inf per step, (1, 1)
    for t in range(T):
        c_sel.append(c_ctrl * (lens_f > float(t)).astype(jnp.float32))
        offs.append(jnp.where(maxlen > float(t), 0.0, -jnp.inf))

    # ---- LSTM recurrence (unrolled; only h@Whh + gate math on the chain) -----
    acc = jnp.full((B, H), -jnp.inf, dtype=jnp.float32)
    for t in range(T):
        gates = (gates_x[t * B:(t + 1) * B, :]
                 + jnp.dot(h, whh_t, preferred_element_type=jnp.float32))       # (B, 4H)
        # sigmoid on the full (B,4H) vreg via the tanh identity (one EUP pass),
        # one extra tanh for the g block.  PyTorch gate order: i, f, g, o.
        sig = 0.5 * jnp.tanh(0.5 * gates) + 0.5
        i_g = sig[:, 0 * H:1 * H]
        f_g = sig[:, 1 * H:2 * H]
        o_g = sig[:, 3 * H:4 * H]
        g_g = jnp.tanh(gates[:, 2 * H:3 * H])
        c = f_g * c + i_g * g_g
        h = o_g * jnp.tanh(c)
        acc = jnp.maximum(acc, c_sel[t] * h + offs[t])
    hpu = acc                                                          # (B, H)

    # ---- RawBIM bilinear match: two MXU pushes, no lane concat ---------------
    # TODO(synk): RawBIM source not provided; implemented as a plain bilinear form.
    tmp = (jnp.dot(hu, wbim_r, preferred_element_type=jnp.float32)
           + jnp.dot(hpu, wbim_p, preferred_element_type=jnp.float32))  # (B, R)
    # (B, 1) masked store is negligible at this size; lane-dense output is a
    # follow-up once a batch grid is added (see TODOs above).
    out_ref[...] = jnp.sum(tmp * hq, axis=-1, keepdims=True)


# ----------------------------------------------------------------------------
# One-time parameter packing (init time, NOT per call).
# ----------------------------------------------------------------------------
def prepare_params(params):
    D, H = params["wc_t"].shape
    R = params["wbim_r"].shape[1]
    bias = params["bih"] + params["bhh"]                                          # (1, 4H)
    w_in_top = jnp.concatenate(
        [params["wih_t"], params["wc_t"], params["wbim_r"]], axis=1)              # (D, 5H+R)
    bias_row = jnp.concatenate([bias, jnp.zeros((1, H + R), jnp.float32)], axis=1)
    return {
        "embedding": params["embedding"],                                          # (VOCAB, D)
        "w_in": jnp.concatenate([w_in_top, bias_row], axis=0),                     # (D+1, 5H+R)
        "w_h": jnp.concatenate([params["whh_t"], params["wbim_p"]], axis=1),       # (H, 4H+R)
        "state0": jnp.concatenate([params["h0"], params["c0"]], axis=0),           # (2B, H)
    }


# ----------------------------------------------------------------------------
# Forward wrapper: only packs the tiny int32 id slabs (a few KB) and calls the
# fused kernel.  All float-sized work (gathers, transposes, masks) is in-kernel.
# ----------------------------------------------------------------------------
@jax.jit
def expan_match_forward(packed, q_ids, u_ids, p_ids, lens):
    B, T = p_ids.shape
    # packed LSTM requires lens >= 1 (same as PyTorch pack_padded_sequence)
    lens = jnp.maximum(lens, 1)
    qul = jnp.stack([q_ids, u_ids, lens], axis=1).astype(jnp.int32)       # (B, 3)
    p_tm = jnp.transpose(p_ids).reshape(T * B, 1).astype(jnp.int32)       # (T*B, 1), row = t*B+b
    args = (packed["embedding"], qul, p_tm,
            packed["w_in"], packed["w_h"], packed["state0"])
    # Problem is tiny (<1 MB live): grid-less, everything resident in VMEM.
    return pl.pallas_call(
        expan_match_kernel,
        out_shape=jax.ShapeDtypeStruct((B, 1), jnp.float32),
        in_specs=[pl.BlockSpec(memory_space=pltpu.MemorySpace.VMEM)] * len(args),
        out_specs=pl.BlockSpec(memory_space=pltpu.MemorySpace.VMEM),
    )(*args)


# Pure-JAX reference with identical math (sanity check only).
def reference_forward(params, q_ids, u_ids, p_ids, lens):
    emb = params["embedding"]
    hq, hu, pemb = emb[q_ids], emb[u_ids], emb[p_ids]
    B, T = p_ids.shape
    H = params["h0"].shape[1]
    lens = jnp.maximum(lens, 1)
    c_ctrl = jnp.maximum(pemb[:, 0, :] @ params["wc_t"], 0.0)
    h, c = params["h0"], params["c0"]
    bias = params["bih"] + params["bhh"]
    maxlen = jnp.max(lens)
    acc = jnp.full((B, H), -jnp.inf)
    for t in range(T):
        gates = pemb[:, t, :] @ params["wih_t"] + h @ params["whh_t"] + bias
        i_g = jax.nn.sigmoid(gates[:, :H])
        f_g = jax.nn.sigmoid(gates[:, H:2 * H])
        g_g = jnp.tanh(gates[:, 2 * H:3 * H])
        o_g = jax.nn.sigmoid(gates[:, 3 * H:])
        c = f_g * c + i_g * g_g
        h = o_g * jnp.tanh(c)
        fill_t = jnp.where(t < maxlen, 0.0, -jnp.inf)
        masked = jnp.where((t < lens)[:, None], c_ctrl * h, fill_t)
        acc = jnp.maximum(acc, masked)
    tmp = hu @ params["wbim_r"] + acc @ params["wbim_p"]
    return jnp.sum(tmp * hq, axis=-1, keepdims=True)


if __name__ == "__main__":
    B, T = 64, 8         # batch (>=64 so MXU M-dim / sublanes are actually used), path length
    D = 32               # in_dim (embedding dim, 'r' branch width, r_dim)
    H = 32               # out_dim (LSTM hidden, 'p' branch width); 4H=128 fills a lane width
    R = D                # r_dim of the query representation
    VOCAB = 50

    key = jax.random.PRNGKey(0)
    ks = jax.random.split(key, 14)

    params = {
        "embedding": jax.random.normal(ks[0], (VOCAB, D), jnp.float32) * 0.1,
        # p_control: nn.Linear(in_dim, out_dim, bias=False); stored pre-transposed (D, H)
        "wc_t": jax.random.normal(ks[1], (D, H), jnp.float32) * 0.1,
        # nn.LSTM(in_dim, hidden); weights stored pre-transposed for x @ W^T
        "wih_t": jax.random.normal(ks[2], (D, 4 * H), jnp.float32) * 0.1,
        "whh_t": jax.random.normal(ks[3], (H, 4 * H), jnp.float32) * 0.1,
        "bih": jax.random.normal(ks[4], (1, 4 * H), jnp.float32) * 0.1,
        "bhh": jax.random.normal(ks[5], (1, 4 * H), jnp.float32) * 0.1,
        # init_hidden uses torch.randn each forward -> deterministic fixed state here
        "h0": jax.random.normal(ks[6], (B, H), jnp.float32),
        "c0": jax.random.normal(ks[7], (B, H), jnp.float32),
        # RawBIM bilinear weight, split into the 'r' (D rows) and 'p' (H rows) blocks
        "wbim_r": jax.random.normal(ks[8], (D, R), jnp.float32) * 0.1,
        "wbim_p": jax.random.normal(ks[9], (H, R), jnp.float32) * 0.1,
    }

    q_ids = jax.random.randint(ks[10], (B,), 0, VOCAB, dtype=jnp.int32)
    u_ids = jax.random.randint(ks[11], (B,), 0, VOCAB, dtype=jnp.int32)
    p_ids = jax.random.randint(ks[12], (B, T), 0, VOCAB, dtype=jnp.int32)
    # lens in [1, T-1] so the zero-pad AND the absent-row (-inf) mask paths are both exercised
    lens = jax.random.randint(ks[13], (B,), 1, T, dtype=jnp.int32)

    packed = prepare_params(params)
    scores = expan_match_forward(packed, q_ids, u_ids, p_ids, lens)
    scores = jax.block_until_ready(scores)

    ref = reference_forward(params, q_ids, u_ids, p_ids, lens)
    assert scores.shape == (B, 1)
    # tolerance covers default f32 MXU matmul precision (bf16 passes) vs the
    # reference's exact row gathers; real bugs would be orders of magnitude larger
    assert jnp.allclose(scores, ref, atol=2e-3, rtol=2e-3), (scores, ref)

    print("KERNEL_OK")
</pallas_src>

<mosaic_0001>
module attributes {stable_mosaic.version = 11 : i64} {
  func.func @expan_match_kernel(%arg0: memref<50x32xf32, #tpu.memory_space<vmem>>, %arg1: memref<64x3xi32, #tpu.memory_space<vmem>>, %arg2: memref<512x1xi32, #tpu.memory_space<vmem>>, %arg3: memref<33x192xf32, #tpu.memory_space<vmem>>, %arg4: memref<32x160xf32, #tpu.memory_space<vmem>>, %arg5: memref<128x32xf32, #tpu.memory_space<vmem>>, %arg6: memref<64x1xf32, #tpu.memory_space<vmem>>) attributes {dimension_semantics = [], scalar_prefetch = 0 : i64, scratch_operands = 0 : i64, tpu.core_type = #tpu.core_type<tc>} {
    %c0 = arith.constant 0 : index
    %c0_0 = arith.constant 0 : index
    %0 = vector.load %arg0[%c0, %c0_0] : memref<50x32xf32, #tpu.memory_space<vmem>>, vector<50x32xf32>
    %c0_1 = arith.constant 0 : index
    %c0_2 = arith.constant 0 : index
    %1 = vector.load %arg3[%c0_1, %c0_2] : memref<33x192xf32, #tpu.memory_space<vmem>>, vector<32x128xf32>
    %c0_3 = arith.constant 0 : index
    %c128 = arith.constant 128 : index
    %2 = vector.load %arg3[%c0_3, %c128] : memref<33x192xf32, #tpu.memory_space<vmem>>, vector<32x32xf32>
    %c0_4 = arith.constant 0 : index
    %c160 = arith.constant 160 : index
    %3 = vector.load %arg3[%c0_4, %c160] : memref<33x192xf32, #tpu.memory_space<vmem>>, vector<32x32xf32>
    %c32 = arith.constant 32 : index
    %c0_5 = arith.constant 0 : index
    %4 = vector.load %arg3[%c32, %c0_5] : memref<33x192xf32, #tpu.memory_space<vmem>>, vector<1x128xf32>
    %c0_6 = arith.constant 0 : index
    %c0_7 = arith.constant 0 : index
    %5 = vector.load %arg4[%c0_6, %c0_7] : memref<32x160xf32, #tpu.memory_space<vmem>>, vector<32x128xf32>
    %c0_8 = arith.constant 0 : index
    %c128_9 = arith.constant 128 : index
    %6 = vector.load %arg4[%c0_8, %c128_9] : memref<32x160xf32, #tpu.memory_space<vmem>>, vector<32x32xf32>
    %c0_10 = arith.constant 0 : index
    %c0_11 = arith.constant 0 : index
    %7 = vector.load %arg5[%c0_10, %c0_11] : memref<128x32xf32, #tpu.memory_space<vmem>>, vector<64x32xf32>
    %c64 = arith.constant 64 : index
    %c0_12 = arith.constant 0 : index
    %8 = vector.load %arg5[%c64, %c0_12] : memref<128x32xf32, #tpu.memory_space<vmem>>, vector<64x32xf32>
    %9 = tpu.iota {dimensions = array<i32: 1>} : vector<64x50xi32>
    %c0_13 = arith.constant 0 : index
    %c0_14 = arith.constant 0 : index
    %10 = vector.load %arg1[%c0_13, %c0_14] : memref<64x3xi32, #tpu.memory_space<vmem>>, vector<64x1xi32>
    %11 = vector.broadcast %10 : vector<64x1xi32> to vector<64x50xi32>
    %12 = arith.cmpi eq, %11, %9 : vector<64x50xi32>
    %13 = arith.extui %12 : vector<64x50xi1> to vector<64x50xi32>
    %14 = arith.sitofp %13 : vector<64x50xi32> to vector<64x50xf32>
    %c0_15 = arith.constant 0 : index
    %c1 = arith.constant 1 : index
    %15 = vector.load %arg1[%c0_15, %c1] : memref<64x3xi32, #tpu.memory_space<vmem>>, vector<64x1xi32>
    %16 = vector.broadcast %15 : vector<64x1xi32> to vector<64x50xi32>
    %17 = arith.cmpi eq, %16, %9 : vector<64x50xi32>
    %18 = arith.extui %17 : vector<64x50xi1> to vector<64x50xi32>
    %19 = arith.sitofp %18 : vector<64x50xi32> to vector<64x50xf32>
    %cst = arith.constant dense<0.000000e+00> : vector<64x32xf32>
    %20 = tpu.matmul %14, %0, %cst {dimension_numbers = #tpu.dot_dimension_numbers<[1], [0], [0], [1], [0, 0, 1, 1], [], []>} : vector<64x50xf32>, vector<50x32xf32>, vector<64x32xf32> -> vector<64x32xf32>
    %cst_16 = arith.constant dense<0.000000e+00> : vector<64x32xf32>
    %21 = tpu.matmul %19, %0, %cst_16 {dimension_numbers = #tpu.dot_dimension_numbers<[1], [0], [0], [1], [0, 0, 1, 1], [], []>} : vector<64x50xf32>, vector<50x32xf32>, vector<64x32xf32> -> vector<64x32xf32>
    %22 = tpu.iota {dimensions = array<i32: 1>} : vector<512x50xi32>
    %c0_17 = arith.constant 0 : index
    %c0_18 = arith.constant 0 : index
    %23 = vector.load %arg2[%c0_17, %c0_18] : memref<512x1xi32, #tpu.memory_space<vmem>>, vector<512x1xi32>
    %24 = vector.broadcast %23 : vector<512x1xi32> to vector<512x50xi32>
    %25 = arith.cmpi eq, %24, %22 : vector<512x50xi32>
    %26 = arith.extui %25 : vector<512x50xi1> to vector<512x50xi32>
    %27 = arith.sitofp %26 : vector<512x50xi32> to vector<512x50xf32>
    %cst_19 = arith.constant dense<0.000000e+00> : vector<512x32xf32>
    %28 = tpu.matmul %27, %0, %cst_19 {dimension_numbers = #tpu.dot_dimension_numbers<[1], [0], [0], [1], [0, 0, 1, 1], [], []>} : vector<512x50xf32>, vector<50x32xf32>, vector<512x32xf32> -> vector<512x32xf32>
    %29 = vector.extract_strided_slice %28 {offsets = [0, 0], sizes = [64, 32], strides = [1, 1]} : vector<512x32xf32> to vector<64x32xf32>
    %cst_20 = arith.constant dense<0.000000e+00> : vector<64x32xf32>
    %30 = tpu.matmul %29, %2, %cst_20 {dimension_numbers = #tpu.dot_dimension_numbers<[1], [0], [0], [1], [0, 0, 1, 1], [], []>} : vector<64x32xf32>, vector<32x32xf32>, vector<64x32xf32> -> vector<64x32xf32>
    %cst_21 = arith.constant 0.000000e+00 : f32
    %31 = vector.broadcast %cst_21 : f32 to vector<64x32xf32>
    %32 = arith.maximumf %30, %31 : vector<64x32xf32>
    %cst_22 = arith.constant dense<0.000000e+00> : vector<512x128xf32>
    %33 = tpu.matmul %28, %1, %cst_22 {dimension_numbers = #tpu.dot_dimension_numbers<[1], [0], [0], [1], [0, 0, 1, 1], [], []>} : vector<512x32xf32>, vector<32x128xf32>, vector<512x128xf32> -> vector<512x128xf32>
    %34 = vector.broadcast %4 : vector<1x128xf32> to vector<512x128xf32>
    %35 = arith.addf %33, %34 : vector<512x128xf32>
    %c0_23 = arith.constant 0 : index
    %c2 = arith.constant 2 : index
    %36 = vector.load %arg1[%c0_23, %c2] : memref<64x3xi32, #tpu.memory_space<vmem>>, vector<64x1xi32>
    %37 = arith.sitofp %36 : vector<64x1xi32> to vector<64x1xf32>
    %cst_24 = arith.constant dense<0xFF800000> : vector<1xf32>
    %38 = vector.multi_reduction <maximumf>, %37, %cst_24 [0] : vector<64x1xf32> to vector<1xf32>
    %39 = vector.shape_cast %38 : vector<1xf32> to vector<1x1xf32>
    %cst_25 = arith.constant 0.000000e+00 : f32
    %40 = vector.broadcast %cst_25 : f32 to vector<64x1xf32>
    %41 = arith.cmpf ogt, %37, %40 : vector<64x1xf32>
    %42 = arith.extui %41 : vector<64x1xi1> to vector<64x1xi32>
    %43 = arith.sitofp %42 : vector<64x1xi32> to vector<64x1xf32>
    %44 = vector.broadcast %43 : vector<64x1xf32> to vector<64x32xf32>
    %45 = arith.mulf %32, %44 : vector<64x32xf32>
    %cst_26 = arith.constant 0.000000e+00 : f32
    %46 = vector.broadcast %cst_26 : f32 to vector<1x1xf32>
    %47 = arith.cmpf ogt, %39, %46 : vector<1x1xf32>
    %cst_27 = arith.constant 0.000000e+00 : f32
    %cst_28 = arith.constant 0xFF800000 : f32
    %48 = vector.broadcast %cst_27 : f32 to vector<1x1xf32>
    %49 = vector.broadcast %cst_28 : f32 to vector<1x1xf32>
    %50 = arith.select %47, %48, %49 : vector<1x1xi1>, vector<1x1xf32>
    %cst_29 = arith.constant 1.000000e+00 : f32
    %51 = vector.broadcast %cst_29 : f32 to vector<64x1xf32>
    %52 = arith.cmpf ogt, %37, %51 : vector<64x1xf32>
    %53 = arith.extui %52 : vector<64x1xi1> to vector<64x1xi32>
    %54 = arith.sitofp %53 : vector<64x1xi32> to vector<64x1xf32>
    %55 = vector.broadcast %54 : vector<64x1xf32> to vector<64x32xf32>
    %56 = arith.mulf %32, %55 : vector<64x32xf32>
    %cst_30 = arith.constant 1.000000e+00 : f32
    %57 = vector.broadcast %cst_30 : f32 to vector<1x1xf32>
    %58 = arith.cmpf ogt, %39, %57 : vector<1x1xf32>
    %cst_31 = arith.constant 0.000000e+00 : f32
    %cst_32 = arith.constant 0xFF800000 : f32
    %59 = vector.broadcast %cst_31 : f32 to vector<1x1xf32>
    %60 = vector.broadcast %cst_32 : f32 to vector<1x1xf32>
    %61 = arith.select %58, %59, %60 : vector<1x1xi1>, vector<1x1xf32>
    %cst_33 = arith.constant 2.000000e+00 : f32
    %62 = vector.broadcast %cst_33 : f32 to vector<64x1xf32>
    %63 = arith.cmpf ogt, %37, %62 : vector<64x1xf32>
    %64 = arith.extui %63 : vector<64x1xi1> to vector<64x1xi32>
    %65 = arith.sitofp %64 : vector<64x1xi32> to vector<64x1xf32>
    %66 = vector.broadcast %65 : vector<64x1xf32> to vector<64x32xf32>
    %67 = arith.mulf %32, %66 : vector<64x32xf32>
    %cst_34 = arith.constant 2.000000e+00 : f32
    %68 = vector.broadcast %cst_34 : f32 to vector<1x1xf32>
    %69 = arith.cmpf ogt, %39, %68 : vector<1x1xf32>
    %cst_35 = arith.constant 0.000000e+00 : f32
    %cst_36 = arith.constant 0xFF800000 : f32
    %70 = vector.broadcast %cst_35 : f32 to vector<1x1xf32>
    %71 = vector.broadcast %cst_36 : f32 to vector<1x1xf32>
    %72 = arith.select %69, %70, %71 : vector<1x1xi1>, vector<1x1xf32>
    %cst_37 = arith.constant 3.000000e+00 : f32
    %73 = vector.broadcast %cst_37 : f32 to vector<64x1xf32>
    %74 = arith.cmpf ogt, %37, %73 : vector<64x1xf32>
    %75 = arith.extui %74 : vector<64x1xi1> to vector<64x1xi32>
    %76 = arith.sitofp %75 : vector<64x1xi32> to vector<64x1xf32>
    %77 = vector.broadcast %76 : vector<64x1xf32> to vector<64x32xf32>
    %78 = arith.mulf %32, %77 : vector<64x32xf32>
    %cst_38 = arith.constant 3.000000e+00 : f32
    %79 = vector.broadcast %cst_38 : f32 to vector<1x1xf32>
    %80 = arith.cmpf ogt, %39, %79 : vector<1x1xf32>
    %cst_39 = arith.constant 0.000000e+00 : f32
    %cst_40 = arith.constant 0xFF800000 : f32
    %81 = vector.broadcast %cst_39 : f32 to vector<1x1xf32>
    %82 = vector.broadcast %cst_40 : f32 to vector<1x1xf32>
    %83 = arith.select %80, %81, %82 : vector<1x1xi1>, vector<1x1xf32>
    %cst_41 = arith.constant 4.000000e+00 : f32
    %84 = vector.broadcast %cst_41 : f32 to vector<64x1xf32>
    %85 = arith.cmpf ogt, %37, %84 : vector<64x1xf32>
    %86 = arith.extui %85 : vector<64x1xi1> to vector<64x1xi32>
    %87 = arith.sitofp %86 : vector<64x1xi32> to vector<64x1xf32>
    %88 = vector.broadcast %87 : vector<64x1xf32> to vector<64x32xf32>
    %89 = arith.mulf %32, %88 : vector<64x32xf32>
    %cst_42 = arith.constant 4.000000e+00 : f32
    %90 = vector.broadcast %cst_42 : f32 to vector<1x1xf32>
    %91 = arith.cmpf ogt, %39, %90 : vector<1x1xf32>
    %cst_43 = arith.constant 0.000000e+00 : f32
    %cst_44 = arith.constant 0xFF800000 : f32
    %92 = vector.broadcast %cst_43 : f32 to vector<1x1xf32>
    %93 = vector.broadcast %cst_44 : f32 to vector<1x1xf32>
    %94 = arith.select %91, %92, %93 : vector<1x1xi1>, vector<1x1xf32>
    %cst_45 = arith.constant 5.000000e+00 : f32
    %95 = vector.broadcast %cst_45 : f32 to vector<64x1xf32>
    %96 = arith.cmpf ogt, %37, %95 : vector<64x1xf32>
    %97 = arith.extui %96 : vector<64x1xi1> to vector<64x1xi32>
    %98 = arith.sitofp %97 : vector<64x1xi32> to vector<64x1xf32>
    %99 = vector.broadcast %98 : vector<64x1xf32> to vector<64x32xf32>
    %100 = arith.mulf %32, %99 : vector<64x32xf32>
    %cst_46 = arith.constant 5.000000e+00 : f32
    %101 = vector.broadcast %cst_46 : f32 to vector<1x1xf32>
    %102 = arith.cmpf ogt, %39, %101 : vector<1x1xf32>
    %cst_47 = arith.constant 0.000000e+00 : f32
    %cst_48 = arith.constant 0xFF800000 : f32
    %103 = vector.broadcast %cst_47 : f32 to vector<1x1xf32>
    %104 = vector.broadcast %cst_48 : f32 to vector<1x1xf32>
    %105 = arith.select %102, %103, %104 : vector<1x1xi1>, vector<1x1xf32>
    %cst_49 = arith.constant 6.000000e+00 : f32
    %106 = vector.broadcast %cst_49 : f32 to vector<64x1xf32>
    %107 = arith.cmpf ogt, %37, %106 : vector<64x1xf32>
    %108 = arith.extui %107 : vector<64x1xi1> to vector<64x1xi32>
    %109 = arith.sitofp %108 : vector<64x1xi32> to vector<64x1xf32>
    %110 = vector.broadcast %109 : vector<64x1xf32> to vector<64x32xf32>
    %111 = arith.mulf %32, %110 : vector<64x32xf32>
    %cst_50 = arith.constant 6.000000e+00 : f32
    %112 = vector.broadcast %cst_50 : f32 to vector<1x1xf32>
    %113 = arith.cmpf ogt, %39, %112 : vector<1x1xf32>
    %cst_51 = arith.constant 0.000000e+00 : f32
    %cst_52 = arith.constant 0xFF800000 : f32
    %114 = vector.broadcast %cst_51 : f32 to vector<1x1xf32>
    %115 = vector.broadcast %cst_52 : f32 to vector<1x1xf32>
    %116 = arith.select %113, %114, %115 : vector<1x1xi1>, vector<1x1xf32>
    %cst_53 = arith.constant 7.000000e+00 : f32
    %117 = vector.broadcast %cst_53 : f32 to vector<64x1xf32>
    %118 = arith.cmpf ogt, %37, %117 : vector<64x1xf32>
    %119 = arith.extui %118 : vector<64x1xi1> to vector<64x1xi32>
    %120 = arith.sitofp %119 : vector<64x1xi32> to vector<64x1xf32>
    %121 = vector.broadcast %120 : vector<64x1xf32> to vector<64x32xf32>
    %122 = arith.mulf %32, %121 : vector<64x32xf32>
    %cst_54 = arith.constant 7.000000e+00 : f32
    %123 = vector.broadcast %cst_54 : f32 to vector<1x1xf32>
    %124 = arith.cmpf ogt, %39, %123 : vector<1x1xf32>
    %cst_55 = arith.constant 0.000000e+00 : f32
    %cst_56 = arith.constant 0xFF800000 : f32
    %125 = vector.broadcast %cst_55 : f32 to vector<1x1xf32>
    %126 = vector.broadcast %cst_56 : f32 to vector<1x1xf32>
    %127 = arith.select %124, %125, %126 : vector<1x1xi1>, vector<1x1xf32>
    %cst_57 = arith.constant 0xFF800000 : f32
    %128 = vector.broadcast %cst_57 : f32 to vector<64x32xf32>
    %129 = vector.extract_strided_slice %35 {offsets = [0, 0], sizes = [64, 128], strides = [1, 1]} : vector<512x128xf32> to vector<64x128xf32>
    %cst_58 = arith.constant dense<0.000000e+00> : vector<64x128xf32>
    %130 = tpu.matmul %7, %5, %cst_58 {dimension_numbers = #tpu.dot_dimension_numbers<[1], [0], [0], [1], [0, 0, 1, 1], [], []>} : vector<64x32xf32>, vector<32x128xf32>, vector<64x128xf32> -> vector<64x128xf32>
    %131 = arith.addf %129, %130 : vector<64x128xf32>
    %cst_59 = arith.constant 5.000000e-01 : f32
    %132 = vector.broadcast %cst_59 : f32 to vector<64x128xf32>
    %133 = arith.mulf %132, %131 : vector<64x128xf32>
    %134 = math.tanh %133 : vector<64x128xf32>
    %cst_60 = arith.constant 5.000000e-01 : f32
    %135 = vector.broadcast %cst_60 : f32 to vector<64x128xf32>
    %136 = arith.mulf %135, %134 : vector<64x128xf32>
    %cst_61 = arith.constant 5.000000e-01 : f32
    %137 = vector.broadcast %cst_61 : f32 to vector<64x128xf32>
    %138 = arith.addf %136, %137 : vector<64x128xf32>
    %139 = vector.extract_strided_slice %138 {offsets = [0, 0], sizes = [64, 32], strides = [1, 1]} : vector<64x128xf32> to vector<64x32xf32>
    %140 = vector.extract_strided_slice %138 {offsets = [0, 32], sizes = [64, 32], strides = [1, 1]} : vector<64x128xf32> to vector<64x32xf32>
    %141 = vector.extract_strided_slice %138 {offsets = [0, 96], sizes = [64, 32], strides = [1, 1]} : vector<64x128xf32> to vector<64x32xf32>
    %142 = vector.extract_strided_slice %131 {offsets = [0, 64], sizes = [64, 32], strides = [1, 1]} : vector<64x128xf32> to vector<64x32xf32>
    %143 = math.tanh %142 : vector<64x32xf32>
    %144 = arith.mulf %140, %8 : vector<64x32xf32>
    %145 = arith.mulf %139, %143 : vector<64x32xf32>
    %146 = arith.addf %144, %145 : vector<64x32xf32>
    %147 = math.tanh %146 : vector<64x32xf32>
    %148 = arith.mulf %141, %147 : vector<64x32xf32>
    %149 = arith.mulf %45, %148 : vector<64x32xf32>
    %150 = vector.broadcast %50 : vector<1x1xf32> to vector<64x32xf32>
    %151 = arith.addf %149, %150 : vector<64x32xf32>
    %152 = arith.maximumf %128, %151 : vector<64x32xf32>
    %153 = vector.extract_strided_slice %35 {offsets = [64, 0], sizes = [64, 128], strides = [1, 1]} : vector<512x128xf32> to vector<64x128xf32>
    %cst_62 = arith.constant dense<0.000000e+00> : vector<64x128xf32>
    %154 = tpu.matmul %148, %5, %cst_62 {dimension_numbers = #tpu.dot_dimension_numbers<[1], [0], [0], [1], [0, 0, 1, 1], [], []>} : vector<64x32xf32>, vector<32x128xf32>, vector<64x128xf32> -> vector<64x128xf32>
    %155 = arith.addf %153, %154 : vector<64x128xf32>
    %cst_63 = arith.constant 5.000000e-01 : f32
    %156 = vector.broadcast %cst_63 : f32 to vector<64x128xf32>
    %157 = arith.mulf %156, %155 : vector<64x128xf32>
    %158 = math.tanh %157 : vector<64x128xf32>
    %cst_64 = arith.constant 5.000000e-01 : f32
    %159 = vector.broadcast %cst_64 : f32 to vector<64x128xf32>
    %160 = arith.mulf %159, %158 : vector<64x128xf32>
    %cst_65 = arith.constant 5.000000e-01 : f32
    %161 = vector.broadcast %cst_65 : f32 to vector<64x128xf32>
    %162 = arith.addf %160, %161 : vector<64x128xf32>
    %163 = vector.extract_strided_slice %162 {offsets = [0, 0], sizes = [64, 32], strides = [1, 1]} : vector<64x128xf32> to vector<64x32xf32>
    %164 = vector.extract_strided_slice %162 {offsets = [0, 32], sizes = [64, 32], strides = [1, 1]} : vector<64x128xf32> to vector<64x32xf32>
    %165 = vector.extract_strided_slice %162 {offsets = [0, 96], sizes = [64, 32], strides = [1, 1]} : vector<64x128xf32> to vector<64x32xf32>
    %166 = vector.extract_strided_slice %155 {offsets = [0, 64], sizes = [64, 32], strides = [1, 1]} : vector<64x128xf32> to vector<64x32xf32>
    %167 = math.tanh %166 : vector<64x32xf32>
    %168 = arith.mulf %164, %146 : vector<64x32xf32>
    %169 = arith.mulf %163, %167 : vector<64x32xf32>
    %170 = arith.addf %168, %169 : vector<64x32xf32>
    %171 = math.tanh %170 : vector<64x32xf32>
    %172 = arith.mulf %165, %171 : vector<64x32xf32>
    %173 = arith.mulf %56, %172 : vector<64x32xf32>
    %174 = vector.broadcast %61 : vector<1x1xf32> to vector<64x32xf32>
    %175 = arith.addf %173, %174 : vector<64x32xf32>
    %176 = arith.maximumf %152, %175 : vector<64x32xf32>
    %177 = vector.extract_strided_slice %35 {offsets = [128, 0], sizes = [64, 128], strides = [1, 1]} : vector<512x128xf32> to vector<64x128xf32>
    %cst_66 = arith.constant dense<0.000000e+00> : vector<64x128xf32>
    %178 = tpu.matmul %172, %5, %cst_66 {dimension_numbers = #tpu.dot_dimension_numbers<[1], [0], [0], [1], [0, 0, 1, 1], [], []>} : vector<64x32xf32>, vector<32x128xf32>, vector<64x128xf32> -> vector<64x128xf32>
    %179 = arith.addf %177, %178 : vector<64x128xf32>
    %cst_67 = arith.constant 5.000000e-01 : f32
    %180 = vector.broadcast %cst_67 : f32 to vector<64x128xf32>
    %181 = arith.mulf %180, %179 : vector<64x128xf32>
    %182 = math.tanh %181 : vector<64x128xf32>
    %cst_68 = arith.constant 5.000000e-01 : f32
    %183 = vector.broadcast %cst_68 : f32 to vector<64x128xf32>
    %184 = arith.mulf %183, %182 : vector<64x128xf32>
    %cst_69 = arith.constant 5.000000e-01 : f32
    %185 = vector.broadcast %cst_69 : f32 to vector<64x128xf32>
    %186 = arith.addf %184, %185 : vector<64x128xf32>
    %187 = vector.extract_strided_slice %186 {offsets = [0, 0], sizes = [64, 32], strides = [1, 1]} : vector<64x128xf32> to vector<64x32xf32>
    %188 = vector.extract_strided_slice %186 {offsets = [0, 32], sizes = [64, 32], strides = [1, 1]} : vector<64x128xf32> to vector<64x32xf32>
    %189 = vector.extract_strided_slice %186 {offsets = [0, 96], sizes = [64, 32], strides = [1, 1]} : vector<64x128xf32> to vector<64x32xf32>
    %190 = vector.extract_strided_slice %179 {offsets = [0, 64], sizes = [64, 32], strides = [1, 1]} : vector<64x128xf32> to vector<64x32xf32>
    %191 = math.tanh %190 : vector<64x32xf32>
    %192 = arith.mulf %188, %170 : vector<64x32xf32>
    %193 = arith.mulf %187, %191 : vector<64x32xf32>
    %194 = arith.addf %192, %193 : vector<64x32xf32>
    %195 = math.tanh %194 : vector<64x32xf32>
    %196 = arith.mulf %189, %195 : vector<64x32xf32>
    %197 = arith.mulf %67, %196 : vector<64x32xf32>
    %198 = vector.broadcast %72 : vector<1x1xf32> to vector<64x32xf32>
    %199 = arith.addf %197, %198 : vector<64x32xf32>
    %200 = arith.maximumf %176, %199 : vector<64x32xf32>
    %201 = vector.extract_strided_slice %35 {offsets = [192, 0], sizes = [64, 128], strides = [1, 1]} : vector<512x128xf32> to vector<64x128xf32>
    %cst_70 = arith.constant dense<0.000000e+00> : vector<64x128xf32>
    %202 = tpu.matmul %196, %5, %cst_70 {dimension_numbers = #tpu.dot_dimension_numbers<[1], [0], [0], [1], [0, 0, 1, 1], [], []>} : vector<64x32xf32>, vector<32x128xf32>, vector<64x128xf32> -> vector<64x128xf32>
    %203 = arith.addf %201, %202 : vector<64x128xf32>
    %cst_71 = arith.constant 5.000000e-01 : f32
    %204 = vector.broadcast %cst_71 : f32 to vector<64x128xf32>
    %205 = arith.mulf %204, %203 : vector<64x128xf32>
    %206 = math.tanh %205 : vector<64x128xf32>
    %cst_72 = arith.constant 5.000000e-01 : f32
    %207 = vector.broadcast %cst_72 : f32 to vector<64x128xf32>
    %208 = arith.mulf %207, %206 : vector<64x128xf32>
    %cst_73 = arith.constant 5.000000e-01 : f32
    %209 = vector.broadcast %cst_73 : f32 to vector<64x128xf32>
    %210 = arith.addf %208, %209 : vector<64x128xf32>
    %211 = vector.extract_strided_slice %210 {offsets = [0, 0], sizes = [64, 32], strides = [1, 1]} : vector<64x128xf32> to vector<64x32xf32>
    %212 = vector.extract_strided_slice %210 {offsets = [0, 32], sizes = [64, 32], strides = [1, 1]} : vector<64x128xf32> to vector<64x32xf32>
    %213 = vector.extract_strided_slice %210 {offsets = [0, 96], sizes = [64, 32], strides = [1, 1]} : vector<64x128xf32> to vector<64x32xf32>
    %214 = vector.extract_strided_slice %203 {offsets = [0, 64], sizes = [64, 32], strides = [1, 1]} : vector<64x128xf32> to vector<64x32xf32>
    %215 = math.tanh %214 : vector<64x32xf32>
    %216 = arith.mulf %212, %194 : vector<64x32xf32>
    %217 = arith.mulf %211, %215 : vector<64x32xf32>
    %218 = arith.addf %216, %217 : vector<64x32xf32>
    %219 = math.tanh %218 : vector<64x32xf32>
    %220 = arith.mulf %213, %219 : vector<64x32xf32>
    %221 = arith.mulf %78, %220 : vector<64x32xf32>
    %222 = vector.broadcast %83 : vector<1x1xf32> to vector<64x32xf32>
    %223 = arith.addf %221, %222 : vector<64x32xf32>
    %224 = arith.maximumf %200, %223 : vector<64x32xf32>
    %225 = vector.extract_strided_slice %35 {offsets = [256, 0], sizes = [64, 128], strides = [1, 1]} : vector<512x128xf32> to vector<64x128xf32>
    %cst_74 = arith.constant dense<0.000000e+00> : vector<64x128xf32>
    %226 = tpu.matmul %220, %5, %cst_74 {dimension_numbers = #tpu.dot_dimension_numbers<[1], [0], [0], [1], [0, 0, 1, 1], [], []>} : vector<64x32xf32>, vector<32x128xf32>, vector<64x128xf32> -> vector<64x128xf32>
    %227 = arith.addf %225, %226 : vector<64x128xf32>
    %cst_75 = arith.constant 5.000000e-01 : f32
    %228 = vector.broadcast %cst_75 : f32 to vector<64x128xf32>
    %229 = arith.mulf %228, %227 : vector<64x128xf32>
    %230 = math.tanh %229 : vector<64x128xf32>
    %cst_76 = arith.constant 5.000000e-01 : f32
    %231 = vector.broadcast %cst_76 : f32 to vector<64x128xf32>
    %232 = arith.mulf %231, %230 : vector<64x128xf32>
    %cst_77 = arith.constant 5.000000e-01 : f32
    %233 = vector.broadcast %cst_77 : f32 to vector<64x128xf32>
    %234 = arith.addf %232, %233 : vector<64x128xf32>
    %235 = vector.extract_strided_slice %234 {offsets = [0, 0], sizes = [64, 32], strides = [1, 1]} : vector<64x128xf32> to vector<64x32xf32>
    %236 = vector.extract_strided_slice %234 {offsets = [0, 32], sizes = [64, 32], strides = [1, 1]} : vector<64x128xf32> to vector<64x32xf32>
    %237 = vector.extract_strided_slice %234 {offsets = [0, 96], sizes = [64, 32], strides = [1, 1]} : vector<64x128xf32> to vector<64x32xf32>
    %238 = vector.extract_strided_slice %227 {offsets = [0, 64], sizes = [64, 32], strides = [1, 1]} : vector<64x128xf32> to vector<64x32xf32>
    %239 = math.tanh %238 : vector<64x32xf32>
    %240 = arith.mulf %236, %218 : vector<64x32xf32>
    %241 = arith.mulf %235, %239 : vector<64x32xf32>
    %242 = arith.addf %240, %241 : vector<64x32xf32>
    %243 = math.tanh %242 : vector<64x32xf32>
    %244 = arith.mulf %237, %243 : vector<64x32xf32>
    %245 = arith.mulf %89, %244 : vector<64x32xf32>
    %246 = vector.broadcast %94 : vector<1x1xf32> to vector<64x32xf32>
    %247 = arith.addf %245, %246 : vector<64x32xf32>
    %248 = arith.maximumf %224, %247 : vector<64x32xf32>
    %249 = vector.extract_strided_slice %35 {offsets = [320, 0], sizes = [64, 128], strides = [1, 1]} : vector<512x128xf32> to vector<64x128xf32>
    %cst_78 = arith.constant dense<0.000000e+00> : vector<64x128xf32>
    %250 = tpu.matmul %244, %5, %cst_78 {dimension_numbers = #tpu.dot_dimension_numbers<[1], [0], [0], [1], [0, 0, 1, 1], [], []>} : vector<64x32xf32>, vector<32x128xf32>, vector<64x128xf32> -> vector<64x128xf32>
    %251 = arith.addf %249, %250 : vector<64x128xf32>
    %cst_79 = arith.constant 5.000000e-01 : f32
    %252 = vector.broadcast %cst_79 : f32 to vector<64x128xf32>
    %253 = arith.mulf %252, %251 : vector<64x128xf32>
    %254 = math.tanh %253 : vector<64x128xf32>
    %cst_80 = arith.constant 5.000000e-01 : f32
    %255 = vector.broadcast %cst_80 : f32 to vector<64x128xf32>
    %256 = arith.mulf %255, %254 : vector<64x128xf32>
    %cst_81 = arith.constant 5.000000e-01 : f32
    %257 = vector.broadcast %cst_81 : f32 to vector<64x128xf32>
    %258 = arith.addf %256, %257 : vector<64x128xf32>
    %259 = vector.extract_strided_slice %258 {offsets = [0, 0], sizes = [64, 32], strides = [1, 1]} : vector<64x128xf32> to vector<64x32xf32>
    %260 = vector.extract_strided_slice %258 {offsets = [0, 32], sizes = [64, 32], strides = [1, 1]} : vector<64x128xf32> to vector<64x32xf32>
    %261 = vector.extract_strided_slice %258 {offsets = [0, 96], sizes = [64, 32], strides = [1, 1]} : vector<64x128xf32> to vector<64x32xf32>
    %262 = vector.extract_strided_slice %251 {offsets = [0, 64], sizes = [64, 32], strides = [1, 1]} : vector<64x128xf32> to vector<64x32xf32>
    %263 = math.tanh %262 : vector<64x32xf32>
    %264 = arith.mulf %260, %242 : vector<64x32xf32>
    %265 = arith.mulf %259, %263 : vector<64x32xf32>
    %266 = arith.addf %264, %265 : vector<64x32xf32>
    %267 = math.tanh %266 : vector<64x32xf32>
    %268 = arith.mulf %261, %267 : vector<64x32xf32>
    %269 = arith.mulf %100, %268 : vector<64x32xf32>
    %270 = vector.broadcast %105 : vector<1x1xf32> to vector<64x32xf32>
    %271 = arith.addf %269, %270 : vector<64x32xf32>
    %272 = arith.maximumf %248, %271 : vector<64x32xf32>
    %273 = vector.extract_strided_slice %35 {offsets = [384, 0], sizes = [64, 128], strides = [1, 1]} : vector<512x128xf32> to vector<64x128xf32>
    %cst_82 = arith.constant dense<0.000000e+00> : vector<64x128xf32>
    %274 = tpu.matmul %268, %5, %cst_82 {dimension_numbers = #tpu.dot_dimension_numbers<[1], [0], [0], [1], [0, 0, 1, 1], [], []>} : vector<64x32xf32>, vector<32x128xf32>, vector<64x128xf32> -> vector<64x128xf32>
    %275 = arith.addf %273, %274 : vector<64x128xf32>
    %cst_83 = arith.constant 5.000000e-01 : f32
    %276 = vector.broadcast %cst_83 : f32 to vector<64x128xf32>
    %277 = arith.mulf %276, %275 : vector<64x128xf32>
    %278 = math.tanh %277 : vector<64x128xf32>
    %cst_84 = arith.constant 5.000000e-01 : f32
    %279 = vector.broadcast %cst_84 : f32 to vector<64x128xf32>
    %280 = arith.mulf %279, %278 : vector<64x128xf32>
    %cst_85 = arith.constant 5.000000e-01 : f32
    %281 = vector.broadcast %cst_85 : f32 to vector<64x128xf32>
    %282 = arith.addf %280, %281 : vector<64x128xf32>
    %283 = vector.extract_strided_slice %282 {offsets = [0, 0], sizes = [64, 32], strides = [1, 1]} : vector<64x128xf32> to vector<64x32xf32>
    %284 = vector.extract_strided_slice %282 {offsets = [0, 32], sizes = [64, 32], strides = [1, 1]} : vector<64x128xf32> to vector<64x32xf32>
    %285 = vector.extract_strided_slice %282 {offsets = [0, 96], sizes = [64, 32], strides = [1, 1]} : vector<64x128xf32> to vector<64x32xf32>
    %286 = vector.extract_strided_slice %275 {offsets = [0, 64], sizes = [64, 32], strides = [1, 1]} : vector<64x128xf32> to vector<64x32xf32>
    %287 = math.tanh %286 : vector<64x32xf32>
    %288 = arith.mulf %284, %266 : vector<64x32xf32>
    %289 = arith.mulf %283, %287 : vector<64x32xf32>
    %290 = arith.addf %288, %289 : vector<64x32xf32>
    %291 = math.tanh %290 : vector<64x32xf32>
    %292 = arith.mulf %285, %291 : vector<64x32xf32>
    %293 = arith.mulf %111, %292 : vector<64x32xf32>
    %294 = vector.broadcast %116 : vector<1x1xf32> to vector<64x32xf32>
    %295 = arith.addf %293, %294 : vector<64x32xf32>
    %296 = arith.maximumf %272, %295 : vector<64x32xf32>
    %297 = vector.extract_strided_slice %35 {offsets = [448, 0], sizes = [64, 128], strides = [1, 1]} : vector<512x128xf32> to vector<64x128xf32>
    %cst_86 = arith.constant dense<0.000000e+00> : vector<64x128xf32>
    %298 = tpu.matmul %292, %5, %cst_86 {dimension_numbers = #tpu.dot_dimension_numbers<[1], [0], [0], [1], [0, 0, 1, 1], [], []>} : vector<64x32xf32>, vector<32x128xf32>, vector<64x128xf32> -> vector<64x128xf32>
    %299 = arith.addf %297, %298 : vector<64x128xf32>
    %cst_87 = arith.constant 5.000000e-01 : f32
    %300 = vector.broadcast %cst_87 : f32 to vector<64x128xf32>
    %301 = arith.mulf %300, %299 : vector<64x128xf32>
    %302 = math.tanh %301 : vector<64x128xf32>
    %cst_88 = arith.constant 5.000000e-01 : f32
    %303 = vector.broadcast %cst_88 : f32 to vector<64x128xf32>
    %304 = arith.mulf %303, %302 : vector<64x128xf32>
    %cst_89 = arith.constant 5.000000e-01 : f32
    %305 = vector.broadcast %cst_89 : f32 to vector<64x128xf32>
    %306 = arith.addf %304, %305 : vector<64x128xf32>
    %307 = vector.extract_strided_slice %306 {offsets = [0, 0], sizes = [64, 32], strides = [1, 1]} : vector<64x128xf32> to vector<64x32xf32>
    %308 = vector.extract_strided_slice %306 {offsets = [0, 32], sizes = [64, 32], strides = [1, 1]} : vector<64x128xf32> to vector<64x32xf32>
    %309 = vector.extract_strided_slice %306 {offsets = [0, 96], sizes = [64, 32], strides = [1, 1]} : vector<64x128xf32> to vector<64x32xf32>
    %310 = vector.extract_strided_slice %299 {offsets = [0, 64], sizes = [64, 32], strides = [1, 1]} : vector<64x128xf32> to vector<64x32xf32>
    %311 = math.tanh %310 : vector<64x32xf32>
    %312 = arith.mulf %308, %290 : vector<64x32xf32>
    %313 = arith.mulf %307, %311 : vector<64x32xf32>
    %314 = arith.addf %312, %313 : vector<64x32xf32>
    %315 = math.tanh %314 : vector<64x32xf32>
    %316 = arith.mulf %309, %315 : vector<64x32xf32>
    %317 = arith.mulf %122, %316 : vector<64x32xf32>
    %318 = vector.broadcast %127 : vector<1x1xf32> to vector<64x32xf32>
    %319 = arith.addf %317, %318 : vector<64x32xf32>
    %320 = arith.maximumf %296, %319 : vector<64x32xf32>
    %cst_90 = arith.constant dense<0.000000e+00> : vector<64x32xf32>
    %321 = tpu.matmul %21, %3, %cst_90 {dimension_numbers = #tpu.dot_dimension_numbers<[1], [0], [0], [1], [0, 0, 1, 1], [], []>} : vector<64x32xf32>, vector<32x32xf32>, vector<64x32xf32> -> vector<64x32xf32>
    %cst_91 = arith.constant dense<0.000000e+00> : vector<64x32xf32>
    %322 = tpu.matmul %320, %6, %cst_91 {dimension_numbers = #tpu.dot_dimension_numbers<[1], [0], [0], [1], [0, 0, 1, 1], [], []>} : vector<64x32xf32>, vector<32x32xf32>, vector<64x32xf32> -> vector<64x32xf32>
    %323 = arith.addf %321, %322 : vector<64x32xf32>
    %324 = arith.mulf %323, %20 : vector<64x32xf32>
    %cst_92 = arith.constant dense<0.000000e+00> : vector<64xf32>
    %325 = vector.multi_reduction <add>, %324, %cst_92 [1] : vector<64x32xf32> to vector<64xf32>
    %326 = vector.shape_cast %325 : vector<64xf32> to vector<64x1xf32>
    %c0_93 = arith.constant 0 : index
    %c0_94 = arith.constant 0 : index
    %327 = vector.load %arg6[%c0_93, %c0_94] : memref<64x1xf32, #tpu.memory_space<vmem>>, vector<64x1xf32>
    tpu.vector_store %arg6[%c0_93, %c0_94], %326 {strides = array<i32>} : memref<64x1xf32, #tpu.memory_space<vmem>>, vector<64x1xf32>,
    return
  }
}

</mosaic_0001>

<bundles_post_ra>
// kernel: expan_match_forward.1
= control target key start
LH: loop header
LB: loop body
LE: loop exit
PB: predicated region body
PF: predicated region fallthrough
CT: control target
= control target key end

     0   :  { %v8085_v0 = vmov 0   ;;  %vm194_vm0 = vcmask 1041408   ;;  %vm169_vm1 = vcmask 408576   ;;  %s8088_s21 = smov 64   ;;  %s8089_s26 = smov 32   ;;  %s10996_s1 = inlined_call_operand.vmem [shape: s32[64,3], index: 1, kind: input, shape index: {}]   ;;  %s10997_s2 = inlined_call_operand.vmem [shape: s32[512,1], index: 2, kind: input, shape index: {}]   ;;  %s10998_s0 = inlined_call_operand.vmem [shape: f32[50,32], index: 0, kind: input, shape index: {}]   ;;  %s10999_s3 = inlined_call_operand.vmem [shape: f32[33,192], index: 3, kind: input, shape index: {}]   ;;  %s11000_s4 = inlined_call_operand.vmem [shape: f32[32,160], index: 4, kind: input, shape index: {}]   ;;  %s11001_s5 = inlined_call_operand.vmem [shape: f32[128,32], index: 5, kind: input, shape index: {}]   ;;  %s11002_s6 = inlined_call_operand.vmem [shape: f32[64,1], index: 6, kind: output, shape index: {}]  }
   0x1   :  { %7496 = vset.pattern.permute.xlu1 %v8085_v0  ;;  %7495 = vset.pattern.permute.xlu0 %v8085_v0  ;;  %v8131_v1 = vld [vmem:[%s10996_s1 + $0x10] sm:$0xff]  ;;  %v8136_v2 = vld [vmem:[%s10996_s1] sm:$0xff]  ;;  %v8143_v3 = vld [vmem:[%s10996_s1 + $0x18] sm:$0xff] }
   0x2   :  { %80 = vperm.xlu1 %7496, %v8131_v1   ;;  %74 = vperm.xlu0 %7495, %v8136_v2   ;;  %v8148_v4 = vld [vmem:[%s10996_s1 + $0x8] sm:$0xff]  ;;  %v8160_v6 = vld [vmem:[%s10996_s1 + $0x20] sm:$0xff]  ;;  %v8167_v7 = vld [vmem:[%s10996_s1 + $0x38] sm:$0xff] }
   0x3   :  { %v8155_v5 = vld [vmem:[%s10996_s1 + $0x28] sm:$0xff]  ;;  %v8172_v8 = vld [vmem:[%s10996_s1 + $0x30] sm:$0xff]  ;;  %v432_v10 = vld [vmem:[%s10997_s2] sm:$0xff] }
   0x4   :  { %v433_v9 = vld [vmem:[%s10997_s2 + $0x8] sm:$0xff]  ;;  %v435_v11 = vld [vmem:[%s10997_s2 + $0x18] sm:$0xff]  ;;  %v434_v12 = vld [vmem:[%s10997_s2 + $0x10] sm:$0xff] }
   0x5   :  { %v23_v13 = vld [vmem:[%s10998_s0] sm:$0xff]  ;;  %v437_v14 = vld [vmem:[%s10997_s2 + $0x28] sm:$0xff]  ;;  %v25_v18 = vld [vmem:[%s10998_s0 + $0x10] sm:$0xff] }
   0x6   :  { %83 = vperm.xlu1 %7496, %v8143_v3   ;;  %77 = vperm.xlu0 %7495, %v8148_v4   ;;  %v24_v15 = vld [vmem:[%s10998_s0 + $0x8] sm:$0xff]  ;;  %v436_v16 = vld [vmem:[%s10997_s2 + $0x20] sm:$0xff]  ;;  %v26_v19 = vld [vmem:[%s10998_s0 + $0x18] sm:$0xff] }
   0x7   :  { %v8200_v17 = vpack.c.bf16 %v24_v15, %v23_v13  ;;  %v8208_v20 = vpack.c.bf16 %v26_v19, %v25_v18  ;;  %v27_v21 = vld [vmem:[%s10998_s0 + $0x20] sm:$0xff]  ;;  %v28_v22 = vld [vmem:[%s10998_s0 + $0x28] sm:$0xff]  ;;  %v439_v23 = vld [vmem:[%s10997_s2 + $0x38] sm:$0xff]  ;;  %v63_v18 = vlaneseq }
   0x8   :  { %v438_v24 = vld [vmem:[%s10997_s2 + $0x30] sm:$0xff]  ;;  %v8227_v25 = vpack.c.bf16 %v28_v22, %v27_v21  ;;  %v441_v26 = vld [vmem:[%s10997_s2 + $0x48] sm:$0xff]  ;;  %v440_v27 = vld [vmem:[%s10997_s2 + $0x40] sm:$0xff] }
   0x9   :  { %7216 = vmatprep.subr.bf16.mxu0 %v8200_v17  ;;  %7228 = vmatprep.subr.bf16.mxu1 %v8200_v17  ;;  %v8243_v28 = vld [vmem:[%s10998_s0 + $0x30] sm:$0x3]  ;;  %v443_v29 = vld [vmem:[%s10997_s2 + $0x58] sm:$0xff]  ;;  %v445_v31 = vld [vmem:[%s10997_s2 + $0x68] sm:$0xff]  ;;  %v8394_v22 = vand.u32 127, %v63_v18 }
   0xa   :  { %89 = vperm.xlu1 %7496, %v8155_v5   ;;  %86 = vperm.xlu0 %7495, %v8160_v6   ;;  %v442_v30 = vld [vmem:[%s10997_s2 + $0x50] sm:$0xff]  ;;  %v444_v32 = vld [vmem:[%s10997_s2 + $0x60] sm:$0xff]  ;;  %v447_v33 = vld [vmem:[%s10997_s2 + $0x78] sm:$0xff] }
   0xb   :  { %7218 = vmatpush3.bf16.msra.mxu0 %v8200_v17  ;;  %7230 = vmatpush3.bf16.msra.mxu1 %v8200_v17  ;;  %v446_v34 = vld [vmem:[%s10997_s2 + $0x70] sm:$0xff]  ;;  %v449_v35 = vld [vmem:[%s10997_s2 + $0x88] sm:$0xff]  ;;  %v448_v36 = vld [vmem:[%s10997_s2 + $0x80] sm:$0xff] }
   0xc   :  { %7220 = vmatprep.subr.bf16.mxu0 %v8208_v20  ;;  %7232 = vmatprep.subr.bf16.mxu1 %v8208_v20  ;;  %v451_v37 = vld [vmem:[%s10997_s2 + $0x98] sm:$0xff]  ;;  %v450_v38 = vld [vmem:[%s10997_s2 + $0x90] sm:$0xff]  ;;  %v453_v39 = vld [vmem:[%s10997_s2 + $0xa8] sm:$0xff] }
   0xd   :  { %v452_v40 = vld [vmem:[%s10997_s2 + $0xa0] sm:$0xff]  ;;  %v455_v41 = vld [vmem:[%s10997_s2 + $0xb8] sm:$0xff]  ;;  %v454_v42 = vld [vmem:[%s10997_s2 + $0xb0] sm:$0xff] }
   0xe   :  { %95 = vperm.xlu1 %7496, %v8167_v7   ;;  %92 = vperm.xlu0 %7495, %v8172_v8   ;;  %v457_v43 = vld [vmem:[%s10997_s2 + $0xc8] sm:$0xff]  ;;  %v456_v44 = vld [vmem:[%s10997_s2 + $0xc0] sm:$0xff]  ;;  %v459_v45 = vld [vmem:[%s10997_s2 + $0xd8] sm:$0xff] }
   0xf   :  { %7222 = vmatpush3.bf16.msra.mxu0 %v8208_v20  ;;  %7234 = vmatpush3.bf16.msra.mxu1 %v8208_v20  ;;  %v458_v46 = vld [vmem:[%s10997_s2 + $0xd0] sm:$0xff]  ;;  %v461_v47 = vld [vmem:[%s10997_s2 + $0xe8] sm:$0xff]  ;;  %v460_v48 = vld [vmem:[%s10997_s2 + $0xe0] sm:$0xff] }
  0x10   :  { %7224 = vmatprep.subr.bf16.mxu0 %v8227_v25  ;;  %7236 = vmatprep.subr.bf16.mxu1 %v8227_v25  ;;  %v463_v49 = vld [vmem:[%s10997_s2 + $0xf8] sm:$0xff]  ;;  %v462_v50 = vld [vmem:[%s10997_s2 + $0xf0] sm:$0xff]  ;;  %v465_v51 = vld [vmem:[%s10997_s2 + $0x108] sm:$0xff] }
  0x11   :  { %v464_v52 = vld [vmem:[%s10997_s2 + $0x100] sm:$0xff]  ;;  %v467_v53 = vld [vmem:[%s10997_s2 + $0x118] sm:$0xff]  ;;  %v466_v54 = vld [vmem:[%s10997_s2 + $0x110] sm:$0xff] }
  0x12   :  { %500 = vperm.xlu1 %7496, %v433_v9   ;;  %497 = vperm.xlu0 %7495, %v432_v10   ;;  %v469_v55 = vld [vmem:[%s10997_s2 + $0x128] sm:$0xff]  ;;  %v468_v56 = vld [vmem:[%s10997_s2 + $0x120] sm:$0xff]  ;;  %v471_v57 = vld [vmem:[%s10997_s2 + $0x138] sm:$0xff] }
  0x13   :  { %7226 = vmatpush3.bf16.msra.mxu0 %v8227_v25  ;;  %7238 = vmatpush3.bf16.msra.mxu1 %v8227_v25  ;;  %v470_v58 = vld [vmem:[%s10997_s2 + $0x130] sm:$0xff]  ;;  %v473_v59 = vld [vmem:[%s10997_s2 + $0x148] sm:$0xff]  ;;  %v472_v60 = vld [vmem:[%s10997_s2 + $0x140] sm:$0xff] }
  0x14   :  { %6741 = vmatprep.subr.msk.mxu0 %vm194_vm0, %v8243_v28  ;;  %6767 = vmatprep.subr.msk.mxu1 %vm194_vm0, %v8243_v28  ;;  %v475_v61 = vld [vmem:[%s10997_s2 + $0x158] sm:$0xff]  ;;  %v474_v62 = vld [vmem:[%s10997_s2 + $0x150] sm:$0xff]  ;;  %v477_v63 = vld [vmem:[%s10997_s2 + $0x168] sm:$0xff] }
  0x15   :  { %v476_v0 = vld [vmem:[%s10997_s2 + $0x160] sm:$0xff]  ;;  %v479_v9 = vld [vmem:[%s10997_s2 + $0x178] sm:$0xff]  ;;  %v478_v10 = vld [vmem:[%s10997_s2 + $0x170] sm:$0xff] }
  0x16   :  { %506 = vperm.xlu1 %7496, %v435_v11   ;;  %503 = vperm.xlu0 %7495, %v434_v12   ;;  %v481_v11 = vld [vmem:[%s10997_s2 + $0x188] sm:$0xff]  ;;  %v480_v12 = vld [vmem:[%s10997_s2 + $0x180] sm:$0xff]  ;;  %v483_v13 = vld [vmem:[%s10997_s2 + $0x198] sm:$0xff] }
  0x17   :  { %6742 = vmatpush3.msk.msra.mxu0 %vm194_vm0, %v8243_v28  ;;  %6768 = vmatpush3.msk.msra.mxu1 %vm194_vm0, %v8243_v28  ;;  %v485_v15 = vld [vmem:[%s10997_s2 + $0x1a8] sm:$0xff]  ;;  %v487_v19 = vld [vmem:[%s10997_s2 + $0x1b8] sm:$0xff]  ;;  %v486_v21 = vld [vmem:[%s10997_s2 + $0x1b0] sm:$0xff] }
  0x18   :  { %7240 = vmatprep.subr.bf16.mxu0 %v8200_v17 }
  0x1a   :  { %512 = vperm.xlu1 %7496, %v437_v14   ;;  %509 = vperm.xlu0 %7495, %v436_v16   ;;  %v482_v14 = vld [vmem:[%s10997_s2 + $0x190] sm:$0xff]  ;;  %v484_v16 = vld [vmem:[%s10997_s2 + $0x1a0] sm:$0xff] }
  0x1e   :  { %518 = vperm.xlu1 %7496, %v439_v23   ;;  %515 = vperm.xlu0 %7495, %v438_v24   ;;  %v489_v23 = vld [vmem:[%s10997_s2 + $0x1c8] sm:$0xff]  ;;  %v488_v24 = vld [vmem:[%s10997_s2 + $0x1c0] sm:$0xff] }
  0x22   :  { %524 = vperm.xlu1 %7496, %v441_v26   ;;  %521 = vperm.xlu0 %7495, %v440_v27  }
  0x26   :  { %530 = vperm.xlu1 %7496, %v443_v29   ;;  %527 = vperm.xlu0 %7495, %v442_v30   ;;  %v11003_v29 = vmov 0.0  }
  0x2a   :  { %536 = vperm.xlu1 %7496, %v445_v31   ;;  %533 = vperm.xlu0 %7495, %v444_v32   ;;  %v491_v31 = vld [vmem:[%s10997_s2 + $0x1d8] sm:$0xff]  ;;  %v490_v32 = vld [vmem:[%s10997_s2 + $0x1d0] sm:$0xff] }
  0x2e   :  { %542 = vperm.xlu1 %7496, %v447_v33   ;;  %539 = vperm.xlu0 %7495, %v446_v34  }
  0x32   :  { %548 = vperm.xlu1 %7496, %v449_v35   ;;  %545 = vperm.xlu0 %7495, %v448_v36  }
  0x36   :  { %554 = vperm.xlu1 %7496, %v451_v37   ;;  %551 = vperm.xlu0 %7495, %v450_v38   ;;  %v493_v37 = vld [vmem:[%s10997_s2 + $0x1e8] sm:$0xff]  ;;  %v492_v38 = vld [vmem:[%s10997_s2 + $0x1e0] sm:$0xff] }
  0x3a   :  { %560 = vperm.xlu1 %7496, %v453_v39   ;;  %557 = vperm.xlu0 %7495, %v452_v40  }
  0x3e   :  { %566 = vperm.xlu1 %7496, %v455_v41   ;;  %563 = vperm.xlu0 %7495, %v454_v42  }
  0x42   :  { %572 = vperm.xlu1 %7496, %v457_v43   ;;  %569 = vperm.xlu0 %7495, %v456_v44   ;;  %v495_v43 = vld [vmem:[%s10997_s2 + $0x1f8] sm:$0xff]  ;;  %v494_v44 = vld [vmem:[%s10997_s2 + $0x1f0] sm:$0xff] }
  0x46   :  { %578 = vperm.xlu1 %7496, %v459_v45   ;;  %575 = vperm.xlu0 %7495, %v458_v46  }
  0x4a   :  { %584 = vperm.xlu1 %7496, %v461_v47   ;;  %581 = vperm.xlu0 %7495, %v460_v48  }
  0x4e   :  { %590 = vperm.xlu1 %7496, %v463_v49   ;;  %587 = vperm.xlu0 %7495, %v462_v50  }
  0x52   :  { %596 = vperm.xlu1 %7496, %v465_v51   ;;  %593 = vperm.xlu0 %7495, %v464_v52  }
  0x56   :  { %602 = vperm.xlu1 %7496, %v467_v53   ;;  %599 = vperm.xlu0 %7495, %v466_v54  }
  0x5a   :  { %608 = vperm.xlu1 %7496, %v469_v55   ;;  %605 = vperm.xlu0 %7495, %v468_v56  }
  0x5e   :  { %614 = vperm.xlu1 %7496, %v471_v57   ;;  %611 = vperm.xlu0 %7495, %v470_v58  }
  0x62   :  { %620 = vperm.xlu1 %7496, %v473_v59   ;;  %617 = vperm.xlu0 %7495, %v472_v60  }
  0x66   :  { %626 = vperm.xlu1 %7496, %v475_v61   ;;  %623 = vperm.xlu0 %7495, %v474_v62  }
  0x6a   :  { %632 = vperm.xlu1 %7496, %v477_v63   ;;  %629 = vperm.xlu0 %7495, %v476_v0  }
  0x6e   :  { %638 = vperm.xlu1 %7496, %v479_v9   ;;  %635 = vperm.xlu0 %7495, %v478_v10  }
  0x72   :  { %644 = vperm.xlu1 %7496, %v481_v11   ;;  %641 = vperm.xlu0 %7495, %v480_v12  }
  0x76   :  { %650 = vperm.xlu1 %7496, %v483_v13   ;;  %647 = vperm.xlu0 %7495, %v482_v14  }
  0x7a   :  { %656 = vperm.xlu1 %7496, %v485_v15   ;;  %653 = vperm.xlu0 %7495, %v484_v16  }
  0x7e   :  { %662 = vperm.xlu1 %7496, %v487_v19   ;;  %659 = vperm.xlu0 %7495, %v486_v21  }
  0x81   :  { %v81_v26 = vpop.permute.xlu1 %80  ;;  %v75_v27 = vpop.permute.xlu0 %74 }
  0x82   :  { %668 = vperm.xlu1 %7496, %v489_v23   ;;  %665 = vperm.xlu0 %7495, %v488_v24   ;;  %vm97_vm2 = vcmp.eq.s32.totalorder %v75_v27, %v8394_v22  ;;  %vm99_vm3 = vcmp.eq.s32.totalorder %v81_v26, %v8394_v22 }
  0x83   :  { %v6049_v30 = vsel %vm97_vm2, 1.0, %v11003_v29  ;;  %v6051_v35 = vsel %vm99_vm3, 1.0, %v11003_v29 }
  0x84   :  { %6743 = vmatprep.mubr.msk.f32.mxu0 %vm169_vm1, %v6049_v30 }
  0x85   :  { %v84_v33 = vpop.permute.xlu1 %83  ;;  %v78_v34 = vpop.permute.xlu0 %77 }
  0x86   :  { %vm98_vm4 = vcmp.eq.s32.totalorder %v78_v34, %v8394_v22  ;;  %674 = vperm.xlu1 %7496, %v491_v31   ;;  %671 = vperm.xlu0 %7495, %v490_v32   ;;  %vm100_vm5 = vcmp.eq.s32.totalorder %v84_v33, %v8394_v22 }
  0x87   :  { %v6050_v36 = vsel %vm98_vm4, 1.0, %v11003_v29  ;;  %v6052_v41 = vsel %vm100_vm5, 1.0, %v11003_v29 }
  0x88   :  { %6744 = vmatmul.mubr.msk.f32.vlgmr.msra.gmra.mrb[0].mxu0 %vm169_vm1, %v6050_v36 }
  0x89   :  { %v90_v39 = vpop.permute.xlu1 %89  ;;  %v87_v40 = vpop.permute.xlu0 %86  ;;  %6746 = vmatprep.mubr.msk.f32.mxu0 %vm169_vm1, %v6051_v35  ;;  %7242 = vmatpush3.bf16.msra.mxu0 %v8200_v17 }
  0x8a   :  { %vm101_vm6 = vcmp.eq.s32.totalorder %v87_v40, %v8394_v22  ;;  %680 = vperm.xlu1 %7496, %v493_v37   ;;  %677 = vperm.xlu0 %7495, %v492_v38   ;;  %vm102_vm7 = vcmp.eq.s32.totalorder %v90_v39, %v8394_v22 }
  0x8b   :  { %v6053_v42 = vsel %vm101_vm6, 1.0, %v11003_v29  ;;  %7244 = vmatprep.subr.bf16.mxu0 %v8208_v20  ;;  %v6054_v46 = vsel %vm102_vm7, 1.0, %v11003_v29 }
  0x8c   :  { %6747 = vmatmul.mubr.msk.f32.gmra.mrb[2].mxu0 %vm169_vm1, %v6052_v41 }
  0x8d   :  { %v96_v17 = vpop.permute.xlu1 %95  ;;  %v93_v45 = vpop.permute.xlu0 %92  ;;  %6749 = vmatprep.mubr.msk.f32.mxu0 %vm169_vm1, %v6053_v42  ;;  %7246 = vmatpush3.bf16.msra.mxu0 %v8208_v20  ;;  %v8087_v20 = vmov 1  }
  0x8e   :  { %vm103_vm8 = vcmp.eq.s32.totalorder %v93_v45, %v8394_v22  ;;  %686 = vperm.xlu1 %7496, %v495_v43   ;;  %683 = vperm.xlu0 %7495, %v494_v44   ;;  %vm104_vm9 = vcmp.eq.s32.totalorder %v96_v17, %v8394_v22 }
  0x8f   :  { %v6055_v47 = vsel %vm103_vm8, 1.0, %v11003_v29  ;;  %7248 = vmatprep.subr.bf16.mxu0 %v8227_v25  ;;  %v6056_v50 = vsel %vm104_vm9, 1.0, %v11003_v29 }
  0x90   :  { %6750 = vmatmul.mubr.msk.f32.gmra.mrb[4].mxu0 %vm169_vm1, %v6054_v46 }
  0x91   :  { %v501_v48 = vpop.permute.xlu1 %500  ;;  %v498_v49 = vpop.permute.xlu0 %497  ;;  %6752 = vmatprep.mubr.msk.f32.mxu0 %vm169_vm1, %v6055_v47  ;;  %7250 = vmatpush3.bf16.msra.mxu0 %v8227_v25 }
  0x92   :  { %vm688_vm10 = vcmp.eq.s32.totalorder %v498_v49, %v8394_v22  ;;  %6793 = vmatprep.subr.msk.mxu0 %vm194_vm0, %v8243_v28  ;;  %7498 = vset.pattern.permute.xlu1 %v8087_v20  ;;  %vm689_vm11 = vcmp.eq.s32.totalorder %v501_v48, %v8394_v22 }
  0x93   :  { %v6083_v51 = vsel %vm688_vm10, 1.0, %v11003_v29  ;;  %7497 = vset.pattern.permute.xlu0 %v8087_v20  ;;  %125 = vperm.xlu1 %7498, %v8148_v4   ;;  %v6084_v53 = vsel %vm689_vm11, 1.0, %v11003_v29 }
  0x94   :  { %6753 = vmatmul.mubr.msk.f32.gmra.mrb[6].mxu0 %vm169_vm1, %v6056_v50  ;;  %122 = vperm.xlu0 %7497, %v8136_v2  }
  0x95   :  { %v507_v25 = vpop.permute.xlu1 %506  ;;  %v504_v52 = vpop.permute.xlu0 %503  ;;  %6795 = vmatprep.mubr.msk.f32.mxu0 %vm169_vm1, %v6083_v51  ;;  %6794 = vmatpush3.msk.msra.mxu0 %vm194_vm0, %v8243_v28 }
  0x96   :  { %vm690_vm12 = vcmp.eq.s32.totalorder %v504_v52, %v8394_v22  ;;  %vm691_vm13 = vcmp.eq.s32.totalorder %v507_v25, %v8394_v22 }
  0x97   :  { %v6085_v54 = vsel %vm690_vm12, 1.0, %v11003_v29  ;;  %128 = vperm.xlu1 %7498, %v8131_v1   ;;  %v6086_v28 = vsel %vm691_vm13, 1.0, %v11003_v29 }
  0x98   :  { %6796 = vmatmul.mubr.msk.f32.vlgmr.msra.gmra.mrb[8].mxu0 %vm169_vm1, %v6084_v53  ;;  %131 = vperm.xlu0 %7497, %v8143_v3  }
  0x99   :  { %v513_v2 = vpop.permute.xlu1 %512  ;;  %v510_v4 = vpop.permute.xlu0 %509  ;;  %6798 = vmatprep.mubr.msk.f32.mxu0 %vm169_vm1, %v6085_v54 }
  0x9a   :  { %vm692_vm14 = vcmp.eq.s32.totalorder %v510_v4, %v8394_v22  ;;  %vm693_vm15 = vcmp.eq.s32.totalorder %v513_v2, %v8394_v22 }
  0x9b   :  { %v6087_v55 = vsel %vm692_vm14, 1.0, %v11003_v29  ;;  %134 = vperm.xlu1 %7498, %v8160_v6   ;;  %v6088_v56 = vsel %vm693_vm15, 1.0, %v11003_v29 }
  0x9c   :  { %6799 = vmatmul.mubr.msk.f32.gmra.mrb[10].mxu0 %vm169_vm1, %v6086_v28  ;;  %137 = vperm.xlu0 %7497, %v8155_v5  }
  0x9d   :  { %v519_v1 = vpop.permute.xlu1 %518  ;;  %v516_v3 = vpop.permute.xlu0 %515  ;;  %6801 = vmatprep.mubr.msk.f32.mxu0 %vm169_vm1, %v6087_v55 }
  0x9e   :  { %vm694_vm0 = vcmp.eq.s32.totalorder %v516_v3, %v8394_v22  ;;  %vm695_vm2 = vcmp.eq.s32.totalorder %v519_v1, %v8394_v22 }
  0x9f   :  { %v6089_v57 = vsel %vm694_vm0, 1.0, %v11003_v29  ;;  %140 = vperm.xlu1 %7498, %v8172_v8   ;;  %v6090_v58 = vsel %vm695_vm2, 1.0, %v11003_v29 }
  0xa0   :  { %6802 = vmatmul.mubr.msk.f32.gmra.mrb[12].mxu0 %vm169_vm1, %v6088_v56  ;;  %143 = vperm.xlu0 %7497, %v8167_v7  }
  0xa1   :  { %v525_v6 = vpop.permute.xlu1 %524  ;;  %v522_v5 = vpop.permute.xlu0 %521  ;;  %6804 = vmatprep.mubr.msk.f32.mxu0 %vm169_vm1, %v6089_v57 }
  0xa2   :  { %vm696_vm3 = vcmp.eq.s32.totalorder %v522_v5, %v8394_v22  ;;  %vm697_vm4 = vcmp.eq.s32.totalorder %v525_v6, %v8394_v22 }
  0xa3   :  { %v6091_v59 = vsel %vm696_vm3, 1.0, %v11003_v29  ;;  %v6092_v7 = vsel %vm697_vm4, 1.0, %v11003_v29 }
  0xa4   :  { %6805 = vmatmul.mubr.msk.f32.gmra.mrb[14].mxu0 %vm169_vm1, %v6090_v58 }
  0xa5   :  { %v531_v8 = vpop.permute.xlu1 %530  ;;  %v528_v60 = vpop.permute.xlu0 %527  ;;  %6807 = vmatprep.mubr.msk.f32.mxu0 %vm169_vm1, %v6091_v59 }
  0xa6   :  { %vm698_vm5 = vcmp.eq.s32.totalorder %v528_v60, %v8394_v22  ;;  %vm699_vm6 = vcmp.eq.s32.totalorder %v531_v8, %v8394_v22 }
  0xa7   :  { %v6093_v61 = vsel %vm698_vm5, 1.0, %v11003_v29  ;;  %v6094_v0 = vsel %vm699_vm6, 1.0, %v11003_v29 }
  0xa8   :  { %6808 = vmatmul.mubr.msk.f32.gmra.mrb[16].mxu0 %vm169_vm1, %v6092_v7  ;;  %v8585_v7 = vld [vmem:[%s10999_s3 + $0x8] sm:$0xff] }
  0xa9   :  { %v537_v62 = vpop.permute.xlu1 %536  ;;  %v534_v63 = vpop.permute.xlu0 %533  ;;  %6810 = vmatprep.mubr.msk.f32.mxu0 %vm169_vm1, %v6093_v61  ;;  %11066 = vst [vmem:[#allocation2_spill] sm:$0xff] %v8585_v7  ;;  %v8590_v61 = vld [vmem:[%s10999_s3 + $0x18] sm:$0xff] }
  0xaa   :  { %vm700_vm7 = vcmp.eq.s32.totalorder %v534_v63, %v8394_v22  ;;  %vm701_vm8 = vcmp.eq.s32.totalorder %v537_v62, %v8394_v22  ;;  %11067 = vst [vmem:[#allocation3_spill] sm:$0xff] %v8590_v61  ;;  %v30_v62 = vld [vmem:[%s10999_s3] sm:$0xff] }
  0xab   :  { %v6095_v9 = vsel %vm700_vm7, 1.0, %v11003_v29  ;;  %v6096_v12 = vsel %vm701_vm8, 1.0, %v11003_v29 }
  0xac   :  { %6811 = vmatmul.mubr.msk.f32.gmra.mrb[18].mxu0 %vm169_vm1, %v6094_v0  ;;  %v8601_v0 = vpack.c.bf16 %v8590_v61, %v8585_v7 }
  0xad   :  { %v543_v10 = vpop.permute.xlu1 %542  ;;  %v540_v11 = vpop.permute.xlu0 %539  ;;  %6813 = vmatprep.mubr.msk.f32.mxu0 %vm169_vm1, %v6095_v9  ;;  %v31_v9 = vld [vmem:[%s10999_s3 + $0x10] sm:$0xff] }
  0xae   :  { %vm702_vm9 = vcmp.eq.s32.totalorder %v540_v11, %v8394_v22  ;;  %vm703_vm10 = vcmp.eq.s32.totalorder %v543_v10, %v8394_v22  ;;  %7252 = vmatprep.subr.bf16.mxu1 %v8601_v0 }
  0xaf   :  { %v6097_v13 = vsel %vm702_vm9, 1.0, %v11003_v29  ;;  %v6098_v16 = vsel %vm703_vm10, 1.0, %v11003_v29 }
  0xb0   :  { %6814 = vmatmul.mubr.msk.f32.gmra.mrb[20].mxu0 %vm169_vm1, %v6096_v12  ;;  %v8607_v12 = vpack.c.bf16 %v31_v9, %v30_v62 }
  0xb1   :  { %v549_v14 = vpop.permute.xlu1 %548  ;;  %v546_v15 = vpop.permute.xlu0 %545  ;;  %6816 = vmatprep.mubr.msk.f32.mxu0 %vm169_vm1, %v6097_v13 }
  0xb2   :  { %vm704_vm11 = vcmp.eq.s32.totalorder %v546_v15, %v8394_v22  ;;  %vm705_vm12 = vcmp.eq.s32.totalorder %v549_v14, %v8394_v22  ;;  %7260 = vmatprep.subr.bf16.mxu0 %v8607_v12  ;;  %v8617_v15 = vld [vmem:[%s10999_s3 + $0x28] sm:$0xff] }
  0xb3   :  { %v6099_v18 = vsel %vm704_vm11, 1.0, %v11003_v29  ;;  %v6100_v23 = vsel %vm705_vm12, 1.0, %v11003_v29  ;;  %11068 = vst [vmem:[#allocation4_spill] sm:$0xff] %v8617_v15  ;;  %7262 = vmatpush3.bf16.msra.mxu0 %v8607_v12 }
  0xb4   :  { %6817 = vmatmul.mubr.msk.f32.gmra.mrb[22].mxu0 %vm169_vm1, %v6098_v16  ;;  %v8622_v16 = vld [vmem:[%s10999_s3 + $0x38] sm:$0xff] }
  0xb5   :  { %v555_v19 = vpop.permute.xlu1 %554  ;;  %v552_v21 = vpop.permute.xlu0 %551  ;;  %6819 = vmatprep.mubr.msk.f32.mxu0 %vm169_vm1, %v6099_v18  ;;  %11069 = vst [vmem:[#allocation5_spill] sm:$0xff] %v8622_v16  ;;  %v32_v18 = vld [vmem:[%s10999_s3 + $0x20] sm:$0xff]  ;;  %v7255_v62 = vpack.c.bf16 %v8622_v16, %v8617_v15 }
  0xb6   :  { %vm706_vm13 = vcmp.eq.s32.totalorder %v552_v21, %v8394_v22  ;;  %vm707_vm14 = vcmp.eq.s32.totalorder %v555_v19, %v8394_v22  ;;  %v33_v21 = vld [vmem:[%s10999_s3 + $0x30] sm:$0xff] }
  0xb7   :  { %v6101_v24 = vsel %vm706_vm13, 1.0, %v11003_v29  ;;  %v6102_v30 = vsel %vm707_vm14, 1.0, %v11003_v29 }
  0xb8   :  { %6820 = vmatmul.mubr.msk.f32.gmra.mrb[24].mxu0 %vm169_vm1, %v6100_v23 }
  0xb9   :  { %v561_v26 = vpop.permute.xlu1 %560  ;;  %v558_v27 = vpop.permute.xlu0 %557  ;;  %6822 = vmatprep.mubr.msk.f32.mxu0 %vm169_vm1, %v6101_v24 }
  0xba   :  { %vm708_vm15 = vcmp.eq.s32.totalorder %v558_v27, %v8394_v22  ;;  %vm709_vm0 = vcmp.eq.s32.totalorder %v561_v26, %v8394_v22  ;;  %v8636_v26 = vpack.c.bf16 %v33_v21, %v32_v18 }
  0xbb   :  { %v6103_v31 = vsel %vm708_vm15, 1.0, %v11003_v29  ;;  %v6104_v34 = vsel %vm709_vm0, 1.0, %v11003_v29 }
  0xbc   :  { %6823 = vmatmul.mubr.msk.f32.gmra.mrb[26].mxu0 %vm169_vm1, %v6102_v30  ;;  %7264 = vmatprep.subr.bf16.mxu0 %v8636_v26 }
  0xbd   :  { %v567_v32 = vpop.permute.xlu1 %566  ;;  %v564_v33 = vpop.permute.xlu0 %563  ;;  %6825 = vmatprep.mubr.msk.f32.mxu0 %vm169_vm1, %v6103_v31  ;;  %7266 = vmatpush3.bf16.msra.mxu0 %v8636_v26 }
  0xbe   :  { %vm710_vm2 = vcmp.eq.s32.totalorder %v564_v33, %v8394_v22  ;;  %vm711_vm3 = vcmp.eq.s32.totalorder %v567_v32, %v8394_v22 }
  0xbf   :  { %v6105_v35 = vsel %vm710_vm2, 1.0, %v11003_v29  ;;  %v6106_v38 = vsel %vm711_vm3, 1.0, %v11003_v29 }
  0xc0   :  { %6826 = vmatmul.mubr.msk.f32.gmra.mrb[28].mxu0 %vm169_vm1, %v6104_v34 }
  0xc1   :  { %v573_v36 = vpop.permute.xlu1 %572  ;;  %v570_v37 = vpop.permute.xlu0 %569  ;;  %6828 = vmatprep.mubr.msk.f32.mxu0 %vm169_vm1, %v6105_v35 }
  0xc2   :  { %vm712_vm4 = vcmp.eq.s32.totalorder %v570_v37, %v8394_v22  ;;  %vm713_vm5 = vcmp.eq.s32.totalorder %v573_v36, %v8394_v22 }
  0xc3   :  { %v6107_v39 = vsel %vm712_vm4, 1.0, %v11003_v29  ;;  %v6108_v42 = vsel %vm713_vm5, 1.0, %v11003_v29 }
  0xc4   :  { %6829 = vmatmul.mubr.msk.f32.gmra.mrb[30].mxu0 %vm169_vm1, %v6106_v38 }
  0xc5   :  { %v579_v40 = vpop.permute.xlu1 %578  ;;  %v576_v41 = vpop.permute.xlu0 %575  ;;  %6831 = vmatprep.mubr.msk.f32.mxu0 %vm169_vm1, %v6107_v39 }
  0xc6   :  { %vm714_vm6 = vcmp.eq.s32.totalorder %v576_v41, %v8394_v22  ;;  %vm715_vm7 = vcmp.eq.s32.totalorder %v579_v40, %v8394_v22 }
  0xc7   :  { %v6109_v43 = vsel %vm714_vm6, 1.0, %v11003_v29  ;;  %v6110_v45 = vsel %vm715_vm7, 1.0, %v11003_v29 }
  0xc8   :  { %6832 = vmatmul.mubr.msk.f32.gmra.mrb[32].mxu0 %vm169_vm1, %v6108_v42 }
  0xc9   :  { %v585_v44 = vpop.permute.xlu1 %584  ;;  %v582_v17 = vpop.permute.xlu0 %581  ;;  %6834 = vmatprep.mubr.msk.f32.mxu0 %vm169_vm1, %v6109_v43 }
  0xca   :  { %vm716_vm8 = vcmp.eq.s32.totalorder %v582_v17, %v8394_v22  ;;  %vm717_vm9 = vcmp.eq.s32.totalorder %v585_v44, %v8394_v22 }
  0xcb   :  { %v6111_v46 = vsel %vm716_vm8, 1.0, %v11003_v29  ;;  %v6112_v49 = vsel %vm717_vm9, 1.0, %v11003_v29 }
  0xcc   :  { %6835 = vmatmul.mubr.msk.f32.gmra.mrb[34].mxu0 %vm169_vm1, %v6110_v45 }
  0xcd   :  { %v591_v47 = vpop.permute.xlu1 %590  ;;  %v588_v48 = vpop.permute.xlu0 %587  ;;  %6837 = vmatprep.mubr.msk.f32.mxu0 %vm169_vm1, %v6111_v46 }
  0xce   :  { %vm718_vm10 = vcmp.eq.s32.totalorder %v588_v48, %v8394_v22  ;;  %vm719_vm11 = vcmp.eq.s32.totalorder %v591_v47, %v8394_v22 }
  0xcf   :  { %v6113_v20 = vsel %vm718_vm10, 1.0, %v11003_v29  ;;  %v6114_v25 = vsel %vm719_vm11, 1.0, %v11003_v29 }
  0xd0   :  { %6838 = vmatmul.mubr.msk.f32.gmra.mrb[36].mxu0 %vm169_vm1, %v6112_v49 }
  0xd1   :  { %v597_v50 = vpop.permute.xlu1 %596  ;;  %v594_v51 = vpop.permute.xlu0 %593  ;;  %6840 = vmatprep.mubr.msk.f32.mxu0 %vm169_vm1, %v6113_v20 }
  0xd2   :  { %vm720_vm12 = vcmp.eq.s32.totalorder %v594_v51, %v8394_v22  ;;  %vm721_vm13 = vcmp.eq.s32.totalorder %v597_v50, %v8394_v22 }
  0xd3   :  { %v6115_v52 = vsel %vm720_vm12, 1.0, %v11003_v29  ;;  %v6116_v2 = vsel %vm721_vm13, 1.0, %v11003_v29 }
  0xd4   :  { %6841 = vmatmul.mubr.msk.f32.gmra.mrb[38].mxu0 %vm169_vm1, %v6114_v25 }
  0xd5   :  { %v603_v53 = vpop.permute.xlu1 %602  ;;  %v600_v54 = vpop.permute.xlu0 %599  ;;  %6843 = vmatprep.mubr.msk.f32.mxu0 %vm169_vm1, %v6115_v52 }
  0xd6   :  { %vm722_vm14 = vcmp.eq.s32.totalorder %v600_v54, %v8394_v22  ;;  %vm723_vm15 = vcmp.eq.s32.totalorder %v603_v53, %v8394_v22 }
  0xd7   :  { %v6117_v4 = vsel %vm722_vm14, 1.0, %v11003_v29  ;;  %v6118_v1 = vsel %vm723_vm15, 1.0, %v11003_v29 }
  0xd8   :  { %6844 = vmatmul.mubr.msk.f32.gmra.mrb[40].mxu0 %vm169_vm1, %v6116_v2 }
  0xd9   :  { %v609_v28 = vpop.permute.xlu1 %608  ;;  %v606_v55 = vpop.permute.xlu0 %605  ;;  %6846 = vmatprep.mubr.msk.f32.mxu0 %vm169_vm1, %v6117_v4 }
  0xda   :  { %vm724_vm0 = vcmp.eq.s32.totalorder %v606_v55, %v8394_v22  ;;  %vm725_vm2 = vcmp.eq.s32.totalorder %v609_v28, %v8394_v22 }
  0xdb   :  { %v6119_v3 = vsel %vm724_vm0, 1.0, %v11003_v29  ;;  %v6120_v6 = vsel %vm725_vm2, 1.0, %v11003_v29 }
  0xdc   :  { %6847 = vmatmul.mubr.msk.f32.gmra.mrb[42].mxu0 %vm169_vm1, %v6118_v1 }
  0xdd   :  { %v615_v56 = vpop.permute.xlu1 %614  ;;  %v612_v57 = vpop.permute.xlu0 %611  ;;  %6849 = vmatprep.mubr.msk.f32.mxu0 %vm169_vm1, %v6119_v3 }
  0xde   :  { %vm726_vm3 = vcmp.eq.s32.totalorder %v612_v57, %v8394_v22  ;;  %vm727_vm4 = vcmp.eq.s32.totalorder %v615_v56, %v8394_v22 }
  0xdf   :  { %v6121_v5 = vsel %vm726_vm3, 1.0, %v11003_v29  ;;  %v6122_v8 = vsel %vm727_vm4, 1.0, %v11003_v29 }
  0xe0   :  { %6850 = vmatmul.mubr.msk.f32.gmra.mrb[44].mxu0 %vm169_vm1, %v6120_v6 }
  0xe1   :  { %v621_v58 = vpop.permute.xlu1 %620  ;;  %v618_v59 = vpop.permute.xlu0 %617  ;;  %6852 = vmatprep.mubr.msk.f32.mxu0 %vm169_vm1, %v6121_v5 }
  0xe2   :  { %vm728_vm5 = vcmp.eq.s32.totalorder %v618_v59, %v8394_v22  ;;  %vm729_vm6 = vcmp.eq.s32.totalorder %v621_v58, %v8394_v22 }
  0xe3   :  { %v6123_v60 = vsel %vm728_vm5, 1.0, %v11003_v29  ;;  %v6124_v13 = vsel %vm729_vm6, 1.0, %v11003_v29 }
  0xe4   :  { %6853 = vmatmul.mubr.msk.f32.gmra.mrb[46].mxu0 %vm169_vm1, %v6122_v8 }
  0xe5   :  { %v627_v10 = vpop.permute.xlu1 %626  ;;  %v624_v11 = vpop.permute.xlu0 %623  ;;  %6855 = vmatprep.mubr.msk.f32.mxu0 %vm169_vm1, %v6123_v60 }
  0xe6   :  { %vm730_vm7 = vcmp.eq.s32.totalorder %v624_v11, %v8394_v22  ;;  %vm731_vm8 = vcmp.eq.s32.totalorder %v627_v10, %v8394_v22 }
  0xe7   :  { %v6125_v14 = vsel %vm730_vm7, 1.0, %v11003_v29  ;;  %v6126_v27 = vsel %vm731_vm8, 1.0, %v11003_v29 }
  0xe8   :  { %6856 = vmatmul.mubr.msk.f32.gmra.mrb[48].mxu0 %vm169_vm1, %v6124_v13 }
  0xe9   :  { %v633_v23 = vpop.permute.xlu1 %632  ;;  %v630_v24 = vpop.permute.xlu0 %629  ;;  %6858 = vmatprep.mubr.msk.f32.mxu0 %vm169_vm1, %v6125_v14 }
  0xea   :  { %vm732_vm9 = vcmp.eq.s32.totalorder %v630_v24, %v8394_v22  ;;  %vm733_vm10 = vcmp.eq.s32.totalorder %v633_v23, %v8394_v22 }
  0xeb   :  { %v6127_v30 = vsel %vm732_vm9, 1.0, %v11003_v29  ;;  %v6128_v33 = vsel %vm733_vm10, 1.0, %v11003_v29 }
  0xec   :  { %6859 = vmatmul.mubr.msk.f32.gmra.mrb[50].mxu0 %vm169_vm1, %v6126_v27 }
  0xed   :  { %v639_v31 = vpop.permute.xlu1 %638  ;;  %v636_v32 = vpop.permute.xlu0 %635  ;;  %6861 = vmatprep.mubr.msk.f32.mxu0 %vm169_vm1, %v6127_v30 }
  0xee   :  { %vm734_vm11 = vcmp.eq.s32.totalorder %v636_v32, %v8394_v22  ;;  %vm735_vm12 = vcmp.eq.s32.totalorder %v639_v31, %v8394_v22 }
  0xef   :  { %v6129_v34 = vsel %vm734_vm11, 1.0, %v11003_v29  ;;  %v6130_v37 = vsel %vm735_vm12, 1.0, %v11003_v29 }
  0xf0   :  { %6862 = vmatmul.mubr.msk.f32.gmra.mrb[52].mxu0 %vm169_vm1, %v6128_v33 }
  0xf1   :  { %v645_v35 = vpop.permute.xlu1 %644  ;;  %v642_v36 = vpop.permute.xlu0 %641  ;;  %6864 = vmatprep.mubr.msk.f32.mxu0 %vm169_vm1, %v6129_v34 }
  0xf2   :  { %vm736_vm13 = vcmp.eq.s32.totalorder %v642_v36, %v8394_v22  ;;  %vm737_vm14 = vcmp.eq.s32.totalorder %v645_v35, %v8394_v22 }
  0xf3   :  { %v6131_v38 = vsel %vm736_vm13, 1.0, %v11003_v29  ;;  %v6132_v41 = vsel %vm737_vm14, 1.0, %v11003_v29 }
  0xf4   :  { %6865 = vmatmul.mubr.msk.f32.gmra.mrb[54].mxu0 %vm169_vm1, %v6130_v37 }
  0xf5   :  { %v651_v39 = vpop.permute.xlu1 %650  ;;  %v648_v40 = vpop.permute.xlu0 %647  ;;  %6867 = vmatprep.mubr.msk.f32.mxu0 %vm169_vm1, %v6131_v38 }
  0xf6   :  { %vm738_vm15 = vcmp.eq.s32.totalorder %v648_v40, %v8394_v22  ;;  %vm739_vm0 = vcmp.eq.s32.totalorder %v651_v39, %v8394_v22  ;;  %v39_v40 = vld [vmem:[%s11000_s4] sm:$0xff] }
  0xf7   :  { %v6133_v42 = vsel %vm738_vm15, 1.0, %v11003_v29  ;;  %v6134_v17 = vsel %vm739_vm0, 1.0, %v11003_v29 }
  0xf8   :  { %6868 = vmatmul.mubr.msk.f32.gmra.mrb[56].mxu0 %vm169_vm1, %v6132_v41  ;;  %v40_v41 = vld [vmem:[%s11000_s4 + $0x10] sm:$0xff] }
  0xf9   :  { %v657_v43 = vpop.permute.xlu1 %656  ;;  %v654_v44 = vpop.permute.xlu0 %653  ;;  %6870 = vmatprep.mubr.msk.f32.mxu0 %vm169_vm1, %v6133_v42 }
  0xfa   :  { %vm740_vm2 = vcmp.eq.s32.totalorder %v654_v44, %v8394_v22  ;;  %vm741_vm3 = vcmp.eq.s32.totalorder %v657_v43, %v8394_v22  ;;  %v8758_v44 = vpack.c.bf16 %v40_v41, %v39_v40 }
  0xfb   :  { %v6135_v45 = vsel %vm740_vm2, 1.0, %v11003_v29  ;;  %v6136_v48 = vsel %vm741_vm3, 1.0, %v11003_v29 }
  0xfc   :  { %6871 = vmatmul.mubr.msk.f32.gmra.mrb[58].mxu0 %vm169_vm1, %v6134_v17 }
  0xfd   :  { %v663_v46 = vpop.permute.xlu1 %662  ;;  %v660_v47 = vpop.permute.xlu0 %659  ;;  %6873 = vmatprep.mubr.msk.f32.mxu0 %vm169_vm1, %v6135_v45 }
  0xfe   :  { %vm742_vm4 = vcmp.eq.s32.totalorder %v660_v47, %v8394_v22  ;;  %vm743_vm5 = vcmp.eq.s32.totalorder %v663_v46, %v8394_v22 }
  0xff   :  { %v6137_v49 = vsel %vm742_vm4, 1.0, %v11003_v29  ;;  %v6138_v51 = vsel %vm743_vm5, 1.0, %v11003_v29 }
 0x100   :  { %6874 = vmatmul.mubr.msk.f32.gmra.mrb[60].mxu0 %vm169_vm1, %v6136_v48 }
 0x101   :  { %v669_v20 = vpop.permute.xlu1 %668  ;;  %v666_v50 = vpop.permute.xlu0 %665  ;;  %6876 = vmatprep.mubr.msk.f32.mxu0 %vm169_vm1, %v6137_v49 }
 0x102   :  { %vm744_vm6 = vcmp.eq.s32.totalorder %v666_v50, %v8394_v22  ;;  %vm745_vm7 = vcmp.eq.s32.totalorder %v669_v20, %v8394_v22 }
 0x103   :  { %v6139_v25 = vsel %vm744_vm6, 1.0, %v11003_v29  ;;  %v6140_v54 = vsel %vm745_vm7, 1.0, %v11003_v29  ;;  %vm1457_vm7 = vcmask 261120  }
 0x104   :  { %6877 = vmatmul.mubr.msk.f32.gmra.mrb[62].mxu0 %vm169_vm1, %v6138_v51 }
 0x105   :  { %v675_v52 = vpop.permute.xlu1 %674  ;;  %v672_v53 = vpop.permute.xlu0 %671  ;;  %6879 = vmatprep.mubr.msk.f32.mxu0 %vm169_vm1, %v6139_v25 }
 0x106   :  { %vm746_vm8 = vcmp.eq.s32.totalorder %v672_v53, %v8394_v22  ;;  %vm747_vm9 = vcmp.eq.s32.totalorder %v675_v52, %v8394_v22 }
 0x107   :  { %v6141_v2 = vsel %vm746_vm8, 1.0, %v11003_v29  ;;  %v6142_v55 = vsel %vm747_vm9, 1.0, %v11003_v29 }
 0x108   :  { %6880 = vmatmul.mubr.msk.f32.gmra.mrb[64].mxu0 %vm169_vm1, %v6140_v54 }
 0x109   :  { %v681_v4 = vpop.permute.xlu1 %680  ;;  %v678_v28 = vpop.permute.xlu0 %677  ;;  %6882 = vmatprep.mubr.msk.f32.mxu0 %vm169_vm1, %v6141_v2 }
 0x10a   :  { %vm748_vm10 = vcmp.eq.s32.totalorder %v678_v28, %v8394_v22  ;;  %vm749_vm11 = vcmp.eq.s32.totalorder %v681_v4, %v8394_v22 }
 0x10b   :  { %v6143_v1 = vsel %vm748_vm10, 1.0, %v11003_v29  ;;  %v6144_v57 = vsel %vm749_vm11, 1.0, %v11003_v29 }
 0x10c   :  { %6883 = vmatmul.mubr.msk.f32.gmra.mrb[66].mxu0 %vm169_vm1, %v6142_v55 }
 0x10d   :  { %v687_v3 = vpop.permute.xlu1 %686  ;;  %v684_v56 = vpop.permute.xlu0 %683  ;;  %6885 = vmatprep.mubr.msk.f32.mxu0 %vm169_vm1, %v6143_v1 }
 0x10e   :  { %vm750_vm12 = vcmp.eq.s32.totalorder %v684_v56, %v8394_v22  ;;  %vm751_vm13 = vcmp.eq.s32.totalorder %v687_v3, %v8394_v22 }
 0x10f   :  { %v6145_v6 = vsel %vm750_vm12, 1.0, %v11003_v29  ;;  %v6146_v58 = vsel %vm751_vm13, 1.0, %v11003_v29 }
 0x110   :  { %6886 = vmatmul.mubr.msk.f32.gmra.mrb[68].mxu0 %vm169_vm1, %v6144_v57 }
 0x111   :  { %6888 = vmatprep.mubr.msk.f32.mxu0 %vm169_vm1, %v6145_v6 }
 0x112   :  { %v126_v5 = vpop.permute.xlu1 %125 }
 0x113   :  { %vm146_vm14 = vcmp.eq.s32.totalorder %v126_v5, %v8394_v22  ;;  %v123_v59 = vpop.permute.xlu0 %122  ;;  %v41_v5 = vld [vmem:[%s11000_s4 + $0x20] sm:$0xff] }
 0x114   :  { %6889 = vmatmul.mubr.msk.f32.gmra.mrb[70].mxu0 %vm169_vm1, %v6146_v58  ;;  %v6058_v8 = vsel %vm146_vm14, 1.0, %v11003_v29  ;;  %vm145_vm15 = vcmp.eq.s32.totalorder %v123_v59, %v8394_v22  ;;  %v42_v58 = vld [vmem:[%s11000_s4 + $0x30] sm:$0xff] }
 0x115   :  { %v6057_v60 = vsel %vm145_vm15, 1.0, %v11003_v29 }
 0x116   :  { %6769 = vmatprep.mubr.msk.f32.mxu1 %vm169_vm1, %v6057_v60  ;;  %v129_v9 = vpop.permute.xlu1 %128  ;;  %v8800_v60 = vpack.c.bf16 %v42_v58, %v41_v5  ;;  %v52_v58 = vld [vmem:[%s11001_s5 + $0x28] sm:$0xff] }
 0x117   :  { %vm147_vm0 = vcmp.eq.s32.totalorder %v129_v9, %v8394_v22  ;;  %6770 = vmatmul.mubr.msk.f32.vlgmr.msra.gmra.mrb[0].mxu1 %vm169_vm1, %v6058_v8  ;;  %v132_v10 = vpop.permute.xlu0 %131 }
 0x118   :  { %v6059_v11 = vsel %vm147_vm0, 1.0, %v11003_v29  ;;  %vm148_vm2 = vcmp.eq.s32.totalorder %v132_v10, %v8394_v22  ;;  %7254 = vmatpush3.bf16.msra.mxu1 %v8601_v0 }
 0x119   :  { %v6060_v13 = vsel %vm148_vm2, 1.0, %v11003_v29  ;;  %6772 = vmatprep.mubr.msk.f32.mxu1 %vm169_vm1, %v6059_v11  ;;  %7256 = vmatprep.subr.bf16.mxu1 %v7255_v62 }
 0x11a   :  { %v135_v14 = vpop.permute.xlu1 %134 }
 0x11b   :  { %vm149_vm3 = vcmp.eq.s32.totalorder %v135_v14, %v8394_v22  ;;  %6773 = vmatmul.mubr.msk.f32.gmra.mrb[2].mxu1 %vm169_vm1, %v6060_v13  ;;  %v138_v18 = vpop.permute.xlu0 %137 }
 0x11c   :  { %v6061_v21 = vsel %vm149_vm3, 1.0, %v11003_v29  ;;  %vm150_vm4 = vcmp.eq.s32.totalorder %v138_v18, %v8394_v22  ;;  %7258 = vmatpush3.bf16.msra.mxu1 %v7255_v62 }
 0x11d   :  { %v6062_v23 = vsel %vm150_vm4, 1.0, %v11003_v29  ;;  %6775 = vmatprep.mubr.msk.f32.mxu1 %vm169_vm1, %v6061_v21  ;;  %7347 = vmatprep.subr.bf16.mxu1 %v8607_v12 }
 0x11e   :  { %v141_v0 = vpop.permute.xlu1 %140 }
 0x11f   :  { %vm151_vm5 = vcmp.eq.s32.totalorder %v141_v0, %v8394_v22  ;;  %6776 = vmatmul.mubr.msk.f32.gmra.mrb[4].mxu1 %vm169_vm1, %v6062_v23  ;;  %v144_v24 = vpop.permute.xlu0 %143 }
 0x120   :  { %v6063_v27 = vsel %vm151_vm5, 1.0, %v11003_v29  ;;  %vm152_vm6 = vcmp.eq.s32.totalorder %v144_v24, %v8394_v22 }
 0x121   :  { %v6064_v30 = vsel %vm152_vm6, 1.0, %v11003_v29  ;;  %6778 = vmatprep.mubr.msk.f32.mxu1 %vm169_vm1, %v6063_v27 }
 0x123   :  { %6779 = vmatmul.mubr.msk.f32.gmra.mrb[6].mxu1 %vm169_vm1, %v6064_v30  ;;  %vm2156_vm1 = vcmask 23568  }
 0x15b   :  { %v8730_v31 = vpop.f32.mrb[0].mxu0 }
 0x15c   :  { %11070 = vst [vmem:[#allocation6_spill] sm:$0xff] %v8730_v31  ;;  %v8732_v32 = vpop.f32.mrb[1].mxu0 }
 0x15d   :  { %11071 = vst [vmem:[#allocation7_spill] sm:$0xff] %v8732_v32 }
 0x15f   :  { %v8734_v33 = vpop.f32.mrb[2].mxu0 }
 0x160   :  { %11072 = vst [vmem:[#allocation8_spill] sm:$0xff] %v8734_v33  ;;  %v8736_v34 = vpop.f32.mrb[3].mxu0 }
 0x161   :  { %11073 = vst [vmem:[#allocation9_spill] sm:$0xff] %v8736_v34 }
 0x163   :  { %v8738_v35 = vpop.f32.mrb[4].mxu0 }
 0x164   :  { %11074 = vst [vmem:[#allocation10_spill] sm:$0xff] %v8738_v35  ;;  %v8740_v36 = vpop.f32.mrb[5].mxu0 }
 0x165   :  { %11075 = vst [vmem:[#allocation11_spill] sm:$0xff] %v8740_v36 }
 0x167   :  { %v8742_v37 = vpop.f32.mrb[6].mxu0 }
 0x168   :  { %11076 = vst [vmem:[#allocation12_spill] sm:$0xff] %v8742_v37  ;;  %v8744_v22 = vpop.f32.mrb[7].mxu0 }
 0x169   :  { %11077 = vst [vmem:[#allocation13_spill] sm:$0xff] %v8744_v22 }
 0x16b   :  { %v6797_v38 = vpop.f32.mrb[8].mxu0 }
 0x16c   :  { %v1138_v39 = vpop.f32.mrb[9].mxu0 }
 0x16d   :  { %6899 = vmatprep.mubr.msk.f32.mxu1 %vm1457_vm7, %v1138_v39  ;;  %6919 = vmatprep.mubr.msk.f32.mxu0 %vm1457_vm7, %v1138_v39 }
 0x16e   :  { %6900 = vmatmul.mubr.msk.f32.vlgmr.msra.gmra.mrb[8].mxu1 %vm1457_vm7, %v6797_v38  ;;  %6920 = vmatmul.mubr.msk.f32.vlgmr.msra.gmra.mrb[72].mxu0 %vm1457_vm7, %v6797_v38 }
 0x16f   :  { %v6800_v42 = vpop.f32.mrb[10].mxu0  ;;  %7349 = vmatpush3.bf16.msra.mxu1 %v8607_v12 }
 0x170   :  { %v1148_v43 = vpop.f32.mrb[11].mxu0  ;;  %7348 = vmatprep.subr.bf16.mxu1 %v8636_v26 }
 0x171   :  { %6902 = vmatprep.mubr.msk.f32.mxu1 %vm1457_vm7, %v1148_v43  ;;  %6922 = vmatprep.mubr.msk.f32.mxu0 %vm1457_vm7, %v1148_v43 }
 0x172   :  { %6903 = vmatmul.mubr.msk.f32.gmra.mrb[10].mxu1 %vm1457_vm7, %v6800_v42  ;;  %6923 = vmatmul.mubr.msk.f32.gmra.mrb[74].mxu0 %vm1457_vm7, %v6800_v42 }
 0x173   :  { %v6803_v17 = vpop.f32.mrb[12].mxu0  ;;  %7350 = vmatpush3.bf16.msra.mxu1 %v8636_v26 }
 0x174   :  { %v1158_v45 = vpop.f32.mrb[13].mxu0  ;;  %7268 = vmatprep.subr.bf16.mxu1 %v8758_v44 }
 0x175   :  { %6905 = vmatprep.mubr.msk.f32.mxu1 %vm1457_vm7, %v1158_v45  ;;  %6925 = vmatprep.mubr.msk.f32.mxu0 %vm1457_vm7, %v1158_v45 }
 0x176   :  { %6906 = vmatmul.mubr.msk.f32.gmra.mrb[12].mxu1 %vm1457_vm7, %v6803_v17  ;;  %6926 = vmatmul.mubr.msk.f32.gmra.mrb[76].mxu0 %vm1457_vm7, %v6803_v17 }
 0x177   :  { %v6806_v12 = vpop.f32.mrb[14].mxu0 }
 0x178   :  { %v1168_v46 = vpop.f32.mrb[15].mxu0 }
 0x179   :  { %6908 = vmatprep.mubr.msk.f32.mxu1 %vm1457_vm7, %v1168_v46  ;;  %6928 = vmatprep.mubr.msk.f32.mxu0 %vm1457_vm7, %v1168_v46 }
 0x17a   :  { %6909 = vmatmul.mubr.msk.f32.gmra.mrb[14].mxu1 %vm1457_vm7, %v6806_v12  ;;  %6929 = vmatmul.mubr.msk.f32.gmra.mrb[78].mxu0 %vm1457_vm7, %v6806_v12 }
 0x17b   :  { %v6809_v26 = vpop.f32.mrb[16].mxu0 }
 0x17c   :  { %v1178_v47 = vpop.f32.mrb[17].mxu0 }
 0x17d   :  { %6931 = vmatprep.mubr.msk.f32.mxu0 %vm1457_vm7, %v1178_v47 }
 0x17e   :  { %6932 = vmatmul.mubr.msk.f32.gmra.mrb[80].mxu0 %vm1457_vm7, %v6809_v26 }
 0x17f   :  { %v6812_v48 = vpop.f32.mrb[18].mxu0 }
 0x180   :  { %v1188_v49 = vpop.f32.mrb[19].mxu0 }
 0x181   :  { %6934 = vmatprep.mubr.msk.f32.mxu0 %vm1457_vm7, %v1188_v49 }
 0x182   :  { %6935 = vmatmul.mubr.msk.f32.gmra.mrb[82].mxu0 %vm1457_vm7, %v6812_v48 }
 0x183   :  { %v6815_v20 = vpop.f32.mrb[20].mxu0 }
 0x184   :  { %v1198_v50 = vpop.f32.mrb[21].mxu0 }
 0x185   :  { %6937 = vmatprep.mubr.msk.f32.mxu0 %vm1457_vm7, %v1198_v50 }
 0x186   :  { %6938 = vmatmul.mubr.msk.f32.gmra.mrb[84].mxu0 %vm1457_vm7, %v6815_v20 }
 0x187   :  { %v6818_v51 = vpop.f32.mrb[22].mxu0 }
 0x188   :  { %v1208_v25 = vpop.f32.mrb[23].mxu0 }
 0x189   :  { %6940 = vmatprep.mubr.msk.f32.mxu0 %vm1457_vm7, %v1208_v25 }
 0x18a   :  { %6941 = vmatmul.mubr.msk.f32.gmra.mrb[86].mxu0 %vm1457_vm7, %v6818_v51 }
 0x18b   :  { %v6821_v52 = vpop.f32.mrb[24].mxu0 }
 0x18c   :  { %v1218_v53 = vpop.f32.mrb[25].mxu0 }
 0x18d   :  { %6943 = vmatprep.mubr.msk.f32.mxu0 %vm1457_vm7, %v1218_v53 }
 0x18e   :  { %6944 = vmatmul.mubr.msk.f32.gmra.mrb[88].mxu0 %vm1457_vm7, %v6821_v52 }
 0x18f   :  { %v6824_v54 = vpop.f32.mrb[26].mxu0 }
 0x190   :  { %v1228_v2 = vpop.f32.mrb[27].mxu0 }
 0x191   :  { %6946 = vmatprep.mubr.msk.f32.mxu0 %vm1457_vm7, %v1228_v2  ;;  %v47_v2 = vld [vmem:[%s11001_s5] sm:$0xff] }
 0x192   :  { %6947 = vmatmul.mubr.msk.f32.gmra.mrb[90].mxu0 %vm1457_vm7, %v6824_v54 }
 0x193   :  { %v6827_v4 = vpop.f32.mrb[28].mxu0 }
 0x194   :  { %v1238_v28 = vpop.f32.mrb[29].mxu0 }
 0x195   :  { %6949 = vmatprep.mubr.msk.f32.mxu0 %vm1457_vm7, %v1238_v28  ;;  %v48_v28 = vld [vmem:[%s11001_s5 + $0x8] sm:$0xff] }
 0x196   :  { %6950 = vmatmul.mubr.msk.f32.gmra.mrb[92].mxu0 %vm1457_vm7, %v6827_v4 }
 0x197   :  { %v6830_v55 = vpop.f32.mrb[30].mxu0 }
 0x198   :  { %v1248_v1 = vpop.f32.mrb[31].mxu0 }
 0x199   :  { %6952 = vmatprep.mubr.msk.f32.mxu0 %vm1457_vm7, %v1248_v1  ;;  %v49_v1 = vld [vmem:[%s11001_s5 + $0x10] sm:$0xff] }
 0x19a   :  { %6953 = vmatmul.mubr.msk.f32.gmra.mrb[94].mxu0 %vm1457_vm7, %v6830_v55 }
 0x19b   :  { %v6833_v3 = vpop.f32.mrb[32].mxu0 }
 0x19c   :  { %v1258_v56 = vpop.f32.mrb[33].mxu0 }
 0x19d   :  { %6955 = vmatprep.mubr.msk.f32.mxu0 %vm1457_vm7, %v1258_v56  ;;  %v50_v56 = vld [vmem:[%s11001_s5 + $0x18] sm:$0xff] }
 0x19e   :  { %6956 = vmatmul.mubr.msk.f32.gmra.mrb[96].mxu0 %vm1457_vm7, %v6833_v3 }
 0x19f   :  { %v6836_v57 = vpop.f32.mrb[34].mxu0 }
 0x1a0   :  { %v1268_v6 = vpop.f32.mrb[35].mxu0 }
 0x1a1   :  { %6958 = vmatprep.mubr.msk.f32.mxu0 %vm1457_vm7, %v1268_v6  ;;  %v51_v6 = vld [vmem:[%s11001_s5 + $0x20] sm:$0xff] }
 0x1a2   :  { %6959 = vmatmul.mubr.msk.f32.gmra.mrb[98].mxu0 %vm1457_vm7, %v6836_v57 }
 0x1a3   :  { %v6839_v59 = vpop.f32.mrb[36].mxu0 }
 0x1a4   :  { %v1278_v8 = vpop.f32.mrb[37].mxu0 }
 0x1a5   :  { %6961 = vmatprep.mubr.msk.f32.mxu1 %vm1457_vm7, %v1278_v8  ;;  %v53_v8 = vld [vmem:[%s11001_s5 + $0x30] sm:$0xff] }
 0x1a6   :  { %6962 = vmatmul.mubr.msk.f32.vlgmr.msra.gmra.mrb[16].mxu1 %vm1457_vm7, %v6839_v59 }
 0x1a7   :  { %v6842_v62 = vpop.f32.mrb[38].mxu0  ;;  %7270 = vmatpush3.bf16.msra.mxu1 %v8758_v44 }
 0x1a8   :  { %v1288_v9 = vpop.f32.mrb[39].mxu0  ;;  %7272 = vmatprep.subr.bf16.mxu1 %v8800_v60 }
 0x1a9   :  { %6964 = vmatprep.mubr.msk.f32.mxu1 %vm1457_vm7, %v1288_v9  ;;  %v54_v9 = vld [vmem:[%s11001_s5 + $0x38] sm:$0xff] }
 0x1aa   :  { %6965 = vmatmul.mubr.msk.f32.gmra.mrb[18].mxu1 %vm1457_vm7, %v6842_v62 }
 0x1ab   :  { %v6845_v10 = vpop.f32.mrb[40].mxu0  ;;  %7274 = vmatpush3.bf16.msra.mxu1 %v8800_v60 }
 0x1ac   :  { %v1298_v11 = vpop.f32.mrb[41].mxu0  ;;  %7276 = vmatprep.subr.bf16.mxu1 %v8758_v44 }
 0x1ad   :  { %6967 = vmatprep.mubr.msk.f32.mxu1 %vm1457_vm7, %v1298_v11 }
 0x1ae   :  { %6968 = vmatmul.mubr.msk.f32.gmra.mrb[20].mxu1 %vm1457_vm7, %v6845_v10 }
 0x1af   :  { %v6848_v13 = vpop.f32.mrb[42].mxu0 }
 0x1b0   :  { %v1308_v14 = vpop.f32.mrb[43].mxu0 }
 0x1b1   :  { %6970 = vmatprep.mubr.msk.f32.mxu1 %vm1457_vm7, %v1308_v14 }
 0x1b2   :  { %6971 = vmatmul.mubr.msk.f32.gmra.mrb[22].mxu1 %vm1457_vm7, %v6848_v13 }
 0x1b3   :  { %v6851_v18 = vpop.f32.mrb[44].mxu0 }
 0x1b4   :  { %v1318_v21 = vpop.f32.mrb[45].mxu0 }
 0x1b5   :  { %6973 = vmatprep.mubr.msk.f32.mxu1 %vm1457_vm7, %v1318_v21 }
 0x1b6   :  { %6974 = vmatmul.mubr.msk.f32.gmra.mrb[24].mxu1 %vm1457_vm7, %v6851_v18 }
 0x1b7   :  { %v6854_v23 = vpop.f32.mrb[46].mxu0 }
 0x1b8   :  { %v1328_v0 = vpop.f32.mrb[47].mxu0 }
 0x1b9   :  { %6976 = vmatprep.mubr.msk.f32.mxu1 %vm1457_vm7, %v1328_v0 }
 0x1ba   :  { %6977 = vmatmul.mubr.msk.f32.gmra.mrb[26].mxu1 %vm1457_vm7, %v6854_v23 }
 0x1bb   :  { %v6857_v24 = vpop.f32.mrb[48].mxu0 }
 0x1bc   :  { %v1338_v27 = vpop.f32.mrb[49].mxu0 }
 0x1bd   :  { %6979 = vmatprep.mubr.msk.f32.mxu1 %vm1457_vm7, %v1338_v27 }
 0x1be   :  { %6980 = vmatmul.mubr.msk.f32.gmra.mrb[28].mxu1 %vm1457_vm7, %v6857_v24 }
 0x1bf   :  { %v6860_v30 = vpop.f32.mrb[50].mxu0 }
 0x1c0   :  { %v1348_v38 = vpop.f32.mrb[51].mxu0 }
 0x1c1   :  { %6982 = vmatprep.mubr.msk.f32.mxu1 %vm1457_vm7, %v1348_v38 }
 0x1c2   :  { %6983 = vmatmul.mubr.msk.f32.gmra.mrb[30].mxu1 %vm1457_vm7, %v6860_v30 }
 0x1c3   :  { %v6863_v39 = vpop.f32.mrb[52].mxu0 }
 0x1c4   :  { %v1358_v40 = vpop.f32.mrb[53].mxu0 }
 0x1c5   :  { %6985 = vmatprep.mubr.msk.f32.mxu1 %vm1457_vm7, %v1358_v40 }
 0x1c6   :  { %6986 = vmatmul.mubr.msk.f32.gmra.mrb[32].mxu1 %vm1457_vm7, %v6863_v39 }
 0x1c7   :  { %v6866_v41 = vpop.f32.mrb[54].mxu0 }
 0x1c8   :  { %v1368_v42 = vpop.f32.mrb[55].mxu0 }
 0x1c9   :  { %6988 = vmatprep.mubr.msk.f32.mxu1 %vm1457_vm7, %v1368_v42 }
 0x1ca   :  { %6989 = vmatmul.mubr.msk.f32.gmra.mrb[34].mxu1 %vm1457_vm7, %v6866_v41 }
 0x1cb   :  { %v6869_v43 = vpop.f32.mrb[56].mxu0 }
 0x1cc   :  { %v1378_v17 = vpop.f32.mrb[57].mxu0 }
 0x1cd   :  { %6991 = vmatprep.mubr.msk.f32.mxu1 %vm1457_vm7, %v1378_v17 }
 0x1ce   :  { %6992 = vmatmul.mubr.msk.f32.gmra.mrb[36].mxu1 %vm1457_vm7, %v6869_v43 }
 0x1cf   :  { %v6872_v45 = vpop.f32.mrb[58].mxu0 }
 0x1d0   :  { %v1388_v12 = vpop.f32.mrb[59].mxu0 }
 0x1d1   :  { %6994 = vmatprep.mubr.msk.f32.mxu1 %vm1457_vm7, %v1388_v12 }
 0x1d2   :  { %6995 = vmatmul.mubr.msk.f32.gmra.mrb[38].mxu1 %vm1457_vm7, %v6872_v45 }
 0x1d3   :  { %v6875_v46 = vpop.f32.mrb[60].mxu0 }
 0x1d4   :  { %v1398_v26 = vpop.f32.mrb[61].mxu0 }
 0x1d5   :  { %6997 = vmatprep.mubr.msk.f32.mxu1 %vm1457_vm7, %v1398_v26 }
 0x1d6   :  { %6998 = vmatmul.mubr.msk.f32.gmra.mrb[40].mxu1 %vm1457_vm7, %v6875_v46 }
 0x1d7   :  { %v6878_v47 = vpop.f32.mrb[62].mxu0 }
 0x1d8   :  { %v1408_v48 = vpop.f32.mrb[63].mxu0 }
 0x1d9   :  { %7000 = vmatprep.mubr.msk.f32.mxu1 %vm1457_vm7, %v1408_v48 }
 0x1da   :  { %7001 = vmatmul.mubr.msk.f32.gmra.mrb[42].mxu1 %vm1457_vm7, %v6878_v47 }
 0x1db   :  { %v6881_v49 = vpop.f32.mrb[64].mxu0 }
 0x1dc   :  { %v1418_v20 = vpop.f32.mrb[65].mxu0 }
 0x1dd   :  { %7003 = vmatprep.mubr.msk.f32.mxu1 %vm1457_vm7, %v1418_v20 }
 0x1de   :  { %7004 = vmatmul.mubr.msk.f32.gmra.mrb[44].mxu1 %vm1457_vm7, %v6881_v49 }
 0x1df   :  { %v6884_v50 = vpop.f32.mrb[66].mxu0 }
 0x1e0   :  { %v1428_v51 = vpop.f32.mrb[67].mxu0 }
 0x1e1   :  { %7006 = vmatprep.mubr.msk.f32.mxu1 %vm1457_vm7, %v1428_v51 }
 0x1e2   :  { %7007 = vmatmul.mubr.msk.f32.gmra.mrb[46].mxu1 %vm1457_vm7, %v6884_v50 }
 0x1e3   :  { %v6887_v25 = vpop.f32.mrb[68].mxu0 }
 0x1e4   :  { %v1438_v52 = vpop.f32.mrb[69].mxu0 }
 0x1e5   :  { %7009 = vmatprep.mubr.msk.f32.mxu1 %vm1457_vm7, %v1438_v52 }
 0x1e6   :  { %7010 = vmatmul.mubr.msk.f32.gmra.mrb[48].mxu1 %vm1457_vm7, %v6887_v25 }
 0x1e7   :  { %v6890_v53 = vpop.f32.mrb[70].mxu0 }
 0x1e8   :  { %v1448_v54 = vpop.f32.mrb[71].mxu0 }
 0x1e9   :  { %7012 = vmatprep.mubr.msk.f32.mxu1 %vm1457_vm7, %v1448_v54 }
 0x1ea   :  { %7013 = vmatmul.mubr.msk.f32.gmra.mrb[50].mxu1 %vm1457_vm7, %v6890_v53  ;;  %v8845_v4 = vpop.f32.mrb[0].mxu1 }
 0x1eb   :  { %11078 = vst [vmem:[#allocation14_spill] sm:$0xff] %v8845_v4  ;;  %7023 = vmatprep.mubr.msk.f32.mxu1 %vm1457_vm7, %v47_v2  ;;  %v8851_v55 = vpop.f32.mrb[1].mxu1 }
 0x1ec   :  { %11079 = vst [vmem:[#allocation15_spill] sm:$0xff] %v8851_v55 }
 0x1ee   :  { %7024 = vmatmul.mubr.msk.f32.vlgmr.msra.gmra.mrb[52].mxu1 %vm1457_vm7, %v48_v28  ;;  %v8857_v3 = vpop.f32.mrb[2].mxu1 }
 0x1ef   :  { %11080 = vst [vmem:[#allocation16_spill] sm:$0xff] %v8857_v3  ;;  %7026 = vmatprep.mubr.msk.f32.mxu1 %vm1457_vm7, %v49_v1  ;;  %v8863_v57 = vpop.f32.mrb[3].mxu1  ;;  %7278 = vmatpush3.bf16.msra.mxu1 %v8758_v44 }
 0x1f0   :  { %11081 = vst [vmem:[#allocation17_spill] sm:$0xff] %v8863_v57  ;;  %7280 = vmatprep.subr.bf16.mxu1 %v8800_v60 }
 0x1f2   :  { %7027 = vmatmul.mubr.msk.f32.gmra.mrb[54].mxu1 %vm1457_vm7, %v50_v56  ;;  %v8871_v5 = vpop.f32.mrb[4].mxu1 }
 0x1f3   :  { %11082 = vst [vmem:[#allocation18_spill] sm:$0xff] %v8871_v5  ;;  %7029 = vmatprep.mubr.msk.f32.mxu1 %vm1457_vm7, %v51_v6  ;;  %v8877_v59 = vpop.f32.mrb[5].mxu1  ;;  %7282 = vmatpush3.bf16.msra.mxu1 %v8800_v60 }
 0x1f4   :  { %11083 = vst [vmem:[#allocation19_spill] sm:$0xff] %v8877_v59  ;;  %7284 = vmatprep.subr.bf16.mxu1 %v8758_v44 }
 0x1f6   :  { %7030 = vmatmul.mubr.msk.f32.gmra.mrb[56].mxu1 %vm1457_vm7, %v52_v58  ;;  %v8885_v62 = vpop.f32.mrb[6].mxu1  ;;  %v8953_v58 = vld [vmem:[%s10999_s3 + $0x40] ss:$0 sm:$0xff] }
 0x1f7   :  { %11084 = vst [vmem:[#allocation20_spill] sm:$0xff] %v8885_v62  ;;  %7032 = vmatprep.mubr.msk.f32.mxu1 %vm1457_vm7, %v53_v8  ;;  %v8891_v10 = vpop.f32.mrb[7].mxu1 }
 0x1f8   :  { %11085 = vst [vmem:[#allocation21_spill] sm:$0xff] %v8891_v10 }
 0x1fa   :  { %7033 = vmatmul.mubr.msk.f32.gmra.mrb[58].mxu1 %vm1457_vm7, %v54_v9 }
 0x241   :  { %v8894_v11 = vpop.f32.mrb[8].mxu1  ;;  %v6921_v13 = vpop.f32.mrb[72].mxu0 }
 0x242   :  { %v8896_v14 = vpop.f32.mrb[9].mxu1  ;;  %v1829_v18 = vpop.f32.mrb[73].mxu0  ;;  %v1835_v8 = vadd.f32 %v6921_v13, %v8953_v58 }
 0x243   :  { %v1830_v9 = vadd.f32 %v1829_v18, %v8953_v58 }
 0x245   :  { %v8898_v21 = vpop.f32.mrb[10].mxu1  ;;  %v6924_v23 = vpop.f32.mrb[74].mxu0 }
 0x246   :  { %v8900_v0 = vpop.f32.mrb[11].mxu1  ;;  %v1839_v24 = vpop.f32.mrb[75].mxu0  ;;  %v1845_v37 = vadd.f32 %v6924_v23, %v8953_v58 }
 0x247   :  { %v1840_v36 = vadd.f32 %v1839_v24, %v8953_v58 }
 0x249   :  { %v8902_v27 = vpop.f32.mrb[12].mxu1  ;;  %v6927_v30 = vpop.f32.mrb[76].mxu0 }
 0x24a   :  { %v8904_v38 = vpop.f32.mrb[13].mxu1  ;;  %v1849_v39 = vpop.f32.mrb[77].mxu0  ;;  %v1855_v31 = vadd.f32 %v6927_v30, %v8953_v58 }
 0x24b   :  { %v1850_v13 = vadd.f32 %v1849_v39, %v8953_v58 }
 0x24d   :  { %v8906_v40 = vpop.f32.mrb[14].mxu1  ;;  %v6930_v41 = vpop.f32.mrb[78].mxu0 }
 0x24e   :  { %11086 = vst [vmem:[#allocation22_spill] sm:$0xff] %v8906_v40  ;;  %v8908_v42 = vpop.f32.mrb[15].mxu1  ;;  %v1859_v43 = vpop.f32.mrb[79].mxu0  ;;  %v1865_v23 = vadd.f32 %v6930_v41, %v8953_v58 }
 0x24f   :  { %11087 = vst [vmem:[#allocation23_spill] sm:$0xff] %v8908_v42  ;;  %v1860_v24 = vadd.f32 %v1859_v43, %v8953_v58 }
 0x251   :  { %v8910_v17 = vpop.f32.mrb[80].mxu0 }
 0x252   :  { %v8912_v45 = vpop.f32.mrb[81].mxu0 }
 0x255   :  { %v8914_v12 = vpop.f32.mrb[82].mxu0 }
 0x256   :  { %v8916_v46 = vpop.f32.mrb[83].mxu0 }
 0x259   :  { %v8918_v26 = vpop.f32.mrb[84].mxu0 }
 0x25a   :  { %v8920_v47 = vpop.f32.mrb[85].mxu0 }
 0x25d   :  { %v8922_v48 = vpop.f32.mrb[86].mxu0 }
 0x25e   :  { %v8924_v49 = vpop.f32.mrb[87].mxu0 }
 0x261   :  { %v8926_v20 = vpop.f32.mrb[88].mxu0 }
 0x262   :  { %v8928_v50 = vpop.f32.mrb[89].mxu0 }
 0x265   :  { %v8930_v51 = vpop.f32.mrb[90].mxu0 }
 0x266   :  { %v8932_v25 = vpop.f32.mrb[91].mxu0 }
 0x269   :  { %v8934_v52 = vpop.f32.mrb[92].mxu0 }
 0x26a   :  { %v8936_v53 = vpop.f32.mrb[93].mxu0 }
 0x26d   :  { %v8938_v54 = vpop.f32.mrb[94].mxu0 }
 0x26e   :  { %v8940_v2 = vpop.f32.mrb[95].mxu0 }
 0x271   :  { %v8942_v28 = vpop.f32.mrb[96].mxu0 }
 0x272   :  { %v8944_v1 = vpop.f32.mrb[97].mxu0 }
 0x275   :  { %v8946_v56 = vpop.f32.mrb[98].mxu0 }
 0x276   :  { %v8948_v6 = vpop.f32.mrb[99].mxu0 }
 0x2c1   :  { %v7025_v63 = vpop.f32.mrb[52].mxu1 }
 0x2c2   :  { %v2900_v19 = vadd.f32 %v7025_v63, %v1835_v8  ;;  %v2860_v29 = vpop.f32.mrb[53].mxu1 }
 0x2c3   :  { %v2899_v22 = vadd.f32 %v2860_v29, %v1830_v9 }
 0x2c4   :  { %7691 = vtanh.f32 %v2900_v19 }
 0x2c5   :  { %7693 = vtanh.f32 %v2899_v22  ;;  %v7028_v35 = vpop.f32.mrb[54].mxu1 }
 0x2c6   :  { %v2902_v34 = vadd.f32 %v7028_v35, %v1845_v37  ;;  %v2870_v33 = vpop.f32.mrb[55].mxu1 }
 0x2c7   :  { %v2901_v32 = vadd.f32 %v2870_v33, %v1840_v36 }
 0x2c8   :  { %7695 = vtanh.f32 %v2902_v34 }
 0x2c9   :  { %7697 = vtanh.f32 %v2901_v32  ;;  %v7031_v18 = vpop.f32.mrb[56].mxu1 }
 0x2ca   :  { %v2904_v63 = vadd.f32 %v7031_v18, %v1855_v31  ;;  %v2880_v8 = vpop.f32.mrb[57].mxu1 }
 0x2cb   :  { %v2903_v29 = vadd.f32 %v2880_v8, %v1850_v13  ;;  %v56_v8 = vld [vmem:[%s11001_s5 + $0x48] sm:$0xff] }
 0x2cc   :  { %7699 = vtanh.f32 %v2904_v63 }
 0x2cd   :  { %7701 = vtanh.f32 %v2903_v29  ;;  %v7034_v9 = vpop.f32.mrb[58].mxu1 }
 0x2ce   :  { %v7692_v35 = vpop.eup %7691  ;;  %v2906_v37 = vadd.f32 %v7034_v9, %v1865_v23  ;;  %v2890_v33 = vpop.f32.mrb[59].mxu1  ;;  %v55_v23 = vld [vmem:[%s11001_s5 + $0x40] sm:$0xff]  ;;  %v57_v9 = vld [vmem:[%s11001_s5 + $0x50] sm:$0xff] }
 0x2cf   :  { %v7694_v36 = vpop.eup %7693  ;;  %v2905_v30 = vadd.f32 %v2890_v33, %v1860_v24  ;;  %2997 = vrot.lane.b32.xlu0 %v7692_v35, %s8088_s21  ;;  %v58_v24 = vld [vmem:[%s11001_s5 + $0x58] sm:$0xff]  ;;  %v60_v35 = vld [vmem:[%s11001_s5 + $0x68] sm:$0xff]  ;;  %v59_v33 = vld [vmem:[%s11001_s5 + $0x60] sm:$0xff] }
 0x2d0   :  { %7703 = vtanh.f32 %v2906_v37  ;;  %2995 = vrot.lane.b32.xlu1 %v7694_v36, %s8088_s21  ;;  %v62_v36 = vld [vmem:[%s11001_s5 + $0x78] sm:$0xff] }
 0x2d1   :  { %7705 = vtanh.f32 %v2905_v30 }
 0x2d2   :  { %v7696_v31 = vpop.eup %7695 }
 0x2d3   :  { %v7698_v39 = vpop.eup %7697  ;;  %3001 = vrot.lane.b32.xlu0 %v7696_v31, %s8088_s21  ;;  %v61_v31 = vld [vmem:[%s11001_s5 + $0x70] sm:$0xff] }
 0x2d4   :  { %2999 = vrot.lane.b32.xlu1 %v7698_v39, %s8088_s21  ;;  %v2908_v39 = vmul.f32 0.5, %v2900_v19 }
 0x2d6   :  { %v7700_v41 = vpop.eup %7699  ;;  %7707 = vtanh.f32 %v2908_v39 }
 0x2d7   :  { %v7702_v43 = vpop.eup %7701  ;;  %3005 = vrot.lane.b32.xlu0 %v7700_v41, %s8088_s21  ;;  %v2907_v41 = vmul.f32 0.5, %v2899_v22 }
 0x2d8   :  { %3003 = vrot.lane.b32.xlu1 %v7702_v43, %s8088_s21  ;;  %v2910_v43 = vmul.f32 0.5, %v2902_v34 }
 0x2d9   :  { %7709 = vtanh.f32 %v2907_v41 }
 0x2da   :  { %v7704_v13 = vpop.eup %7703  ;;  %7711 = vtanh.f32 %v2910_v43 }
 0x2db   :  { %v7706_v18 = vpop.eup %7705  ;;  %3009 = vrot.lane.b32.xlu0 %v7704_v13, %s8088_s21  ;;  %v2909_v13 = vmul.f32 0.5, %v2901_v32 }
 0x2dc   :  { %3007 = vrot.lane.b32.xlu1 %v7706_v18, %s8088_s21  ;;  %v2912_v18 = vmul.f32 0.5, %v2904_v63 }
 0x2dd   :  { %7713 = vtanh.f32 %v2909_v13 }
 0x2de   :  { %7715 = vtanh.f32 %v2912_v18 }
 0x2df   :  { %2957 = vrot.lane.b32.xlu0 %v56_v8, %s8089_s26  ;;  %v2911_v8 = vmul.f32 0.5, %v2903_v29 }
 0x2e0   :  { %2955 = vrot.lane.b32.xlu1 %v55_v23, %s8089_s26  ;;  %v2914_v23 = vmul.f32 0.5, %v2906_v37 }
 0x2e1   :  { %7717 = vtanh.f32 %v2911_v8 }
 0x2e2   :  { %7719 = vtanh.f32 %v2914_v23 }
 0x2e3   :  { %2961 = vrot.lane.b32.xlu0 %v58_v24, %s8089_s26  ;;  %v2913_v24 = vmul.f32 0.5, %v2905_v30 }
 0x2e4   :  { %2959 = vrot.lane.b32.xlu1 %v57_v9, %s8089_s26  ;;  %v7708_v9 = vpop.eup %7707 }
 0x2e5   :  { %7721 = vtanh.f32 %v2913_v24 }
 0x2e7   :  { %2965 = vrot.lane.b32.xlu0 %v60_v35, %s8089_s26  ;;  %v7710_v35 = vpop.eup %7709 }
 0x2e8   :  { %2963 = vrot.lane.b32.xlu1 %v59_v33, %s8089_s26  ;;  %v2924_v33 = vmul.f32 0.5, %v7708_v9  ;;  %v2923_v19 = vmul.f32 0.5, %v7710_v35 }
 0x2ea   :  { %v9003_v34 = vadd.f32 0.5, %v2924_v33  ;;  %v9005_v41 = vadd.f32 0.5, %v2923_v19 }
 0x2eb   :  { %2969 = vrot.lane.b32.xlu0 %v62_v36, %s8089_s26  ;;  %v7712_v36 = vpop.eup %7711 }
 0x2ec   :  { %2967 = vrot.lane.b32.xlu1 %v61_v31, %s8089_s26  ;;  %v7714_v22 = vpop.eup %7713  ;;  %v2926_v31 = vmul.f32 0.5, %v7712_v36 }
 0x2ed   :  { %v7716_v32 = vpop.eup %7715  ;;  %v2925_v39 = vmul.f32 0.5, %v7714_v22 }
 0x2ee   :  { %v7718_v29 = vpop.eup %7717  ;;  %v2928_v13 = vmul.f32 0.5, %v7716_v32  ;;  %v9010_v18 = vadd.f32 0.5, %v2926_v31 }
 0x2ef   :  { %v7720_v8 = vpop.eup %7719  ;;  %v2927_v23 = vmul.f32 0.5, %v7718_v29  ;;  %v9013_v9 = vadd.f32 0.5, %v2925_v39 }
 0x2f0   :  { %v7722_v35 = vpop.eup %7721  ;;  %v2930_v22 = vmul.f32 0.5, %v7720_v8  ;;  %v9018_v32 = vadd.f32 0.5, %v2928_v13 }
 0x2f1   :  { %v2929_v31 = vmul.f32 0.5, %v7722_v35  ;;  %v9021_v29 = vadd.f32 0.5, %v2927_v23 }
 0x2f3   :  { %v9029_v13 = vadd.f32 0.5, %v2929_v31 }
 0x341   :  { %v2998_v63 = vpop.permute.xlu0 %2997 }
 0x342   :  { %v3020_v37 = vmul.f32 %v2998_v63, %v9003_v34  ;;  %v2996_v30 = vpop.permute.xlu1 %2995 }
 0x343   :  { %v3019_v43 = vmul.f32 %v2996_v30, %v9005_v41 }
 0x344   :  { %3037 = vrot.lane.b32.xlu0 %v3020_v37, %s8089_s26 }
 0x345   :  { %v3002_v24 = vpop.permute.xlu0 %3001  ;;  %3035 = vrot.lane.b32.xlu1 %v3019_v43, %s8089_s26  ;;  %v9026_v43 = vadd.f32 0.5, %v2930_v22 }
 0x346   :  { %v3022_v33 = vmul.f32 %v3002_v24, %v9010_v18  ;;  %v3000_v36 = vpop.permute.xlu1 %2999 }
 0x347   :  { %v3021_v19 = vmul.f32 %v3000_v36, %v9013_v9 }
 0x348   :  { %3041 = vrot.lane.b32.xlu0 %v3022_v33, %s8089_s26 }
 0x349   :  { %v3006_v63 = vpop.permute.xlu0 %3005  ;;  %3039 = vrot.lane.b32.xlu1 %v3021_v19, %s8089_s26 }
 0x34a   :  { %v3024_v39 = vmul.f32 %v3006_v63, %v9018_v32  ;;  %v3004_v37 = vpop.permute.xlu1 %3003 }
 0x34b   :  { %v3023_v30 = vmul.f32 %v3004_v37, %v9021_v29 }
 0x34c   :  { %3045 = vrot.lane.b32.xlu0 %v3024_v39, %s8089_s26 }
 0x34d   :  { %v3010_v8 = vpop.permute.xlu0 %3009  ;;  %3043 = vrot.lane.b32.xlu1 %v3023_v30, %s8089_s26 }
 0x34e   :  { %v3026_v24 = vmul.f32 %v3010_v8, %v9026_v43  ;;  %v3008_v35 = vpop.permute.xlu1 %3007 }
 0x34f   :  { %v3025_v23 = vmul.f32 %v3008_v35, %v9029_v13 }
 0x350   :  { %3049 = vrot.lane.b32.xlu0 %v3026_v24, %s8089_s26 }
 0x351   :  { %3047 = vrot.lane.b32.xlu1 %v3025_v23, %s8089_s26  ;;  %v2958_v33 = vpop.permute.xlu0 %2957 }
 0x352   :  { %v2956_v36 = vpop.permute.xlu1 %2955  ;;  %v2980_v31 = vmul.f32 %v2958_v33, %v9003_v34 }
 0x353   :  { %v2979_v30 = vmul.f32 %v2956_v36, %v9005_v41 }
 0x355   :  { %v2962_v19 = vpop.permute.xlu0 %2961 }
 0x356   :  { %v2960_v63 = vpop.permute.xlu1 %2959  ;;  %v2982_v24 = vmul.f32 %v2962_v19, %v9010_v18 }
 0x357   :  { %v2981_v23 = vmul.f32 %v2960_v63, %v9013_v9 }
 0x359   :  { %v2966_v22 = vpop.permute.xlu0 %2965 }
 0x35a   :  { %v2964_v39 = vpop.permute.xlu1 %2963  ;;  %v2984_v36 = vmul.f32 %v2966_v22, %v9018_v32 }
 0x35d   :  { %v2970_v37 = vpop.permute.xlu0 %2969 }
 0x35e   :  { %v2968_v62 = vpop.permute.xlu1 %2967 }
 0x3b6   :  { %v3038_v8 = vpop.permute.xlu0 %3037 }
 0x3b7   :  { %v9037_v10 = vadd.f32 %v3038_v8, %v2980_v31  ;;  %v3036_v35 = vpop.permute.xlu1 %3035  ;;  %v2983_v31 = vmul.f32 %v2964_v39, %v9021_v29 }
 0x3b8   :  { %v9039_v5 = vadd.f32 %v3036_v35, %v2979_v30  ;;  %v2985_v35 = vmul.f32 %v2968_v62, %v9029_v13 }
 0x3b9   :  { %7723 = vtanh.f32 %v9037_v10 }
 0x3ba   :  { %7725 = vtanh.f32 %v9039_v5  ;;  %v3042_v59 = vpop.permute.xlu0 %3041 }
 0x3bb   :  { %v9045_v3 = vadd.f32 %v3042_v59, %v2982_v24  ;;  %v3040_v33 = vpop.permute.xlu1 %3039  ;;  %v2986_v59 = vmul.f32 %v2970_v37, %v9026_v43 }
 0x3bc   :  { %v9047_v57 = vadd.f32 %v3040_v33, %v2981_v23 }
 0x3bd   :  { %7727 = vtanh.f32 %v9045_v3 }
 0x3be   :  { %7729 = vtanh.f32 %v9047_v57  ;;  %v3046_v19 = vpop.permute.xlu0 %3045 }
 0x3bf   :  { %v9053_v30 = vadd.f32 %v3046_v19, %v2984_v36  ;;  %v3044_v63 = vpop.permute.xlu1 %3043 }
 0x3c0   :  { %v9055_v8 = vadd.f32 %v3044_v63, %v2983_v31 }
 0x3c1   :  { %7731 = vtanh.f32 %v9053_v30 }
 0x3c2   :  { %7733 = vtanh.f32 %v9055_v8  ;;  %v3050_v22 = vpop.permute.xlu0 %3049 }
 0x3c3   :  { %v7724_v24 = vpop.eup %7723  ;;  %v9061_v23 = vadd.f32 %v3050_v22, %v2986_v59  ;;  %v3048_v39 = vpop.permute.xlu1 %3047 }
 0x3c4   :  { %v7726_v33 = vpop.eup %7725  ;;  %v9063_v4 = vadd.f32 %v3048_v39, %v2985_v35  ;;  %3085 = vrot.lane.b32.xlu0 %v7724_v24, %s8088_s21 }
 0x3c5   :  { %7735 = vtanh.f32 %v9061_v23  ;;  %3083 = vrot.lane.b32.xlu1 %v7726_v33, %s8088_s21 }
 0x3c6   :  { %7737 = vtanh.f32 %v9063_v4 }
 0x3c7   :  { %v7728_v37 = vpop.eup %7727 }
 0x3c8   :  { %v7730_v62 = vpop.eup %7729  ;;  %3089 = vrot.lane.b32.xlu0 %v7728_v37, %s8088_s21 }
 0x3c9   :  { %3087 = vrot.lane.b32.xlu1 %v7730_v62, %s8088_s21 }
 0x3cb   :  { %v7732_v36 = vpop.eup %7731 }
 0x3cc   :  { %v7734_v31 = vpop.eup %7733  ;;  %3093 = vrot.lane.b32.xlu0 %v7732_v36, %s8088_s21 }
 0x3cd   :  { %3091 = vrot.lane.b32.xlu1 %v7734_v31, %s8088_s21 }
 0x3cf   :  { %v7736_v19 = vpop.eup %7735 }
 0x3d0   :  { %v7738_v63 = vpop.eup %7737  ;;  %3097 = vrot.lane.b32.xlu0 %v7736_v19, %s8088_s21 }
 0x3d1   :  { %3095 = vrot.lane.b32.xlu1 %v7738_v63, %s8088_s21 }
 0x436   :  { %v3086_v59 = vpop.permute.xlu0 %3085 }
 0x437   :  { %v3108_v35 = vmul.f32 %v3086_v59, %v9003_v34  ;;  %v3084_v22 = vpop.permute.xlu1 %3083 }
 0x438   :  { %v3107_v24 = vmul.f32 %v3084_v22, %v9005_v41 }
 0x439   :  { %3125 = vrot.lane.b32.xlu0 %v3108_v35, %s8089_s26 }
 0x43a   :  { %v3090_v39 = vpop.permute.xlu0 %3089  ;;  %3123 = vrot.lane.b32.xlu1 %v3107_v24, %s8089_s26 }
 0x43b   :  { %v3110_v33 = vmul.f32 %v3090_v39, %v9010_v18  ;;  %v3088_v37 = vpop.permute.xlu1 %3087  ;;  %v1875_v39 = vadd.f32 %v8910_v17, %v8953_v58  ;;  %v1895_v17 = vadd.f32 %v8918_v26, %v8953_v58 }
 0x43c   :  { %v3109_v62 = vmul.f32 %v3088_v37, %v9013_v9 }
 0x43d   :  { %3129 = vrot.lane.b32.xlu0 %v3110_v33, %s8089_s26  ;;  %v1870_v33 = vadd.f32 %v8912_v45, %v8953_v58  ;;  %v1890_v45 = vadd.f32 %v8920_v47, %v8953_v58 }
 0x43e   :  { %v3094_v36 = vpop.permute.xlu0 %3093  ;;  %3127 = vrot.lane.b32.xlu1 %v3109_v62, %s8089_s26 }
 0x43f   :  { %v3112_v34 = vmul.f32 %v3094_v36, %v9018_v32  ;;  %v3092_v31 = vpop.permute.xlu1 %3091 }
 0x440   :  { %v3111_v41 = vmul.f32 %v3092_v31, %v9021_v29  ;;  %v1885_v31 = vadd.f32 %v8914_v12, %v8953_v58 }
 0x441   :  { %3133 = vrot.lane.b32.xlu0 %v3112_v34, %s8089_s26 }
 0x442   :  { %v3098_v19 = vpop.permute.xlu0 %3097  ;;  %3131 = vrot.lane.b32.xlu1 %v3111_v41, %s8089_s26  ;;  %v1880_v41 = vadd.f32 %v8916_v46, %v8953_v58  ;;  %v1905_v46 = vadd.f32 %v8922_v48, %v8953_v58 }
 0x443   :  { %v3114_v18 = vmul.f32 %v3098_v19, %v9026_v43  ;;  %v3096_v63 = vpop.permute.xlu1 %3095 }
 0x444   :  { %v3113_v9 = vmul.f32 %v3096_v63, %v9029_v13 }
 0x445   :  { %3137 = vrot.lane.b32.xlu0 %v3114_v18, %s8089_s26 }
 0x446   :  { %3135 = vrot.lane.b32.xlu1 %v3113_v9, %s8089_s26 }
 0x4ab   :  { %v9091_v59 = vpop.permute.xlu0 %3125 }
 0x4ac   :  { %v9093_v32 = vpop.permute.xlu1 %3123 }
 0x4ad   :  { %7043 = vmatprep.mubr.msk.f32.mxu1 %vm1457_vm7, %v9093_v32 }
 0x4ae   :  { %7044 = vmatmul.mubr.msk.f32.vlgmr.msra.gmra.mrb[60].mxu1 %vm1457_vm7, %v9091_v59 }
 0x4af   :  { %v9099_v29 = vpop.permute.xlu0 %3129  ;;  %7286 = vmatpush3.bf16.msra.mxu1 %v8758_v44 }
 0x4b0   :  { %v9102_v43 = vpop.permute.xlu1 %3127  ;;  %7288 = vmatprep.subr.bf16.mxu1 %v8800_v60 }
 0x4b1   :  { %7046 = vmatprep.mubr.msk.f32.mxu1 %vm1457_vm7, %v9102_v43 }
 0x4b2   :  { %7047 = vmatmul.mubr.msk.f32.gmra.mrb[62].mxu1 %vm1457_vm7, %v9099_v29 }
 0x4b3   :  { %v9109_v13 = vpop.permute.xlu0 %3133  ;;  %7290 = vmatpush3.bf16.msra.mxu1 %v8800_v60 }
 0x4b4   :  { %11088 = vst [vmem:[#allocation24_spill] sm:$0xff] %v9109_v13  ;;  %v9112_v35 = vpop.permute.xlu1 %3131  ;;  %7292 = vmatprep.subr.bf16.mxu1 %v8758_v44 }
 0x4b5   :  { %11089 = vst [vmem:[#allocation25_spill] sm:$0xff] %v9112_v35  ;;  %7049 = vmatprep.mubr.msk.f32.mxu1 %vm1457_vm7, %v9112_v35 }
 0x4b6   :  { %7050 = vmatmul.mubr.msk.f32.gmra.mrb[64].mxu1 %vm1457_vm7, %v9109_v13 }
 0x4b7   :  { %v9121_v24 = vpop.permute.xlu0 %3137 }
 0x4b8   :  { %v9119_v22 = vpop.permute.xlu1 %3135  ;;  %11091 = vst [vmem:[#allocation27_spill] sm:$0xff] %v9121_v24 }
 0x4b9   :  { %11090 = vst [vmem:[#allocation26_spill] sm:$0xff] %v9119_v22  ;;  %7052 = vmatprep.mubr.msk.f32.mxu1 %vm1457_vm7, %v9119_v22 }
 0x4ba   :  { %7053 = vmatmul.mubr.msk.f32.gmra.mrb[66].mxu1 %vm1457_vm7, %v9121_v24 }
 0x581   :  { %v7045_v37 = vpop.f32.mrb[60].mxu1 }
 0x582   :  { %v3290_v62 = vadd.f32 %v7045_v37, %v1875_v39  ;;  %v3250_v36 = vpop.f32.mrb[61].mxu1 }
 0x583   :  { %v3289_v34 = vadd.f32 %v3250_v36, %v1870_v33  ;;  %v1900_v36 = vadd.f32 %v8924_v49, %v8953_v58 }
 0x584   :  { %7739 = vtanh.f32 %v3290_v62 }
 0x585   :  { %7741 = vtanh.f32 %v3289_v34  ;;  %v7048_v19 = vpop.f32.mrb[62].mxu1 }
 0x586   :  { %v3292_v18 = vadd.f32 %v7048_v19, %v1885_v31  ;;  %v3260_v63 = vpop.f32.mrb[63].mxu1 }
 0x587   :  { %v3291_v9 = vadd.f32 %v3260_v63, %v1880_v41 }
 0x588   :  { %7743 = vtanh.f32 %v3292_v18 }
 0x589   :  { %7745 = vtanh.f32 %v3291_v9  ;;  %v7051_v39 = vpop.f32.mrb[64].mxu1 }
 0x58a   :  { %v3294_v33 = vadd.f32 %v7051_v39, %v1895_v17  ;;  %v3270_v12 = vpop.f32.mrb[65].mxu1 }
 0x58b   :  { %v3293_v37 = vadd.f32 %v3270_v12, %v1890_v45  ;;  %v3298_v12 = vmul.f32 0.5, %v3290_v62 }
 0x58c   :  { %7747 = vtanh.f32 %v3294_v33 }
 0x58d   :  { %7749 = vtanh.f32 %v3293_v37  ;;  %v7054_v31 = vpop.f32.mrb[66].mxu1 }
 0x58e   :  { %v7740_v41 = vpop.eup %7739  ;;  %v3296_v26 = vadd.f32 %v7054_v31, %v1905_v46  ;;  %v3280_v19 = vpop.f32.mrb[67].mxu1  ;;  %v3297_v46 = vmul.f32 0.5, %v3289_v34  ;;  %v3299_v31 = vmul.f32 0.5, %v3291_v9 }
 0x58f   :  { %v7742_v63 = vpop.eup %7741  ;;  %v3295_v55 = vadd.f32 %v3280_v19, %v1900_v36  ;;  %3355 = vrot.lane.b32.xlu0 %v7740_v41, %s8088_s21  ;;  %v3300_v36 = vmul.f32 0.5, %v3292_v18  ;;  %v3302_v41 = vmul.f32 0.5, %v3294_v33  ;;  %v3301_v19 = vmul.f32 0.5, %v3293_v37 }
 0x590   :  { %7751 = vtanh.f32 %v3296_v26  ;;  %3353 = vrot.lane.b32.xlu1 %v7742_v63, %s8088_s21  ;;  %v3304_v63 = vmul.f32 0.5, %v3296_v26 }
 0x591   :  { %7753 = vtanh.f32 %v3295_v55 }
 0x592   :  { %v7744_v47 = vpop.eup %7743  ;;  %7755 = vtanh.f32 %v3298_v12 }
 0x593   :  { %v7746_v17 = vpop.eup %7745  ;;  %3359 = vrot.lane.b32.xlu0 %v7744_v47, %s8088_s21  ;;  %7757 = vtanh.f32 %v3297_v46  ;;  %v3303_v47 = vmul.f32 0.5, %v3295_v55 }
 0x594   :  { %3357 = vrot.lane.b32.xlu1 %v7746_v17, %s8088_s21  ;;  %7759 = vtanh.f32 %v3300_v36 }
 0x595   :  { %7761 = vtanh.f32 %v3299_v31 }
 0x596   :  { %v7748_v48 = vpop.eup %7747  ;;  %7763 = vtanh.f32 %v3302_v41 }
 0x597   :  { %v7750_v49 = vpop.eup %7749  ;;  %3363 = vrot.lane.b32.xlu0 %v7748_v48, %s8088_s21  ;;  %7765 = vtanh.f32 %v3301_v19 }
 0x598   :  { %3361 = vrot.lane.b32.xlu1 %v7750_v49, %s8088_s21  ;;  %7767 = vtanh.f32 %v3304_v63 }
 0x599   :  { %7769 = vtanh.f32 %v3303_v47 }
 0x59a   :  { %v7752_v45 = vpop.eup %7751 }
 0x59b   :  { %v7754_v39 = vpop.eup %7753  ;;  %3367 = vrot.lane.b32.xlu0 %v7752_v45, %s8088_s21 }
 0x59c   :  { %3365 = vrot.lane.b32.xlu1 %v7754_v39, %s8088_s21  ;;  %v7756_v17 = vpop.eup %7755 }
 0x59d   :  { %v7758_v48 = vpop.eup %7757  ;;  %v3314_v49 = vmul.f32 0.5, %v7756_v17 }
 0x59e   :  { %v7760_v45 = vpop.eup %7759  ;;  %v3313_v62 = vmul.f32 0.5, %v7758_v48 }
 0x59f   :  { %v7762_v34 = vpop.eup %7761  ;;  %v3316_v39 = vmul.f32 0.5, %v7760_v45  ;;  %v9151_v18 = vadd.f32 0.5, %v3314_v49 }
 0x5a0   :  { %v7764_v9 = vpop.eup %7763  ;;  %v3315_v12 = vmul.f32 0.5, %v7762_v34  ;;  %v9153_v46 = vadd.f32 0.5, %v3313_v62 }
 0x5a1   :  { %v7766_v37 = vpop.eup %7765  ;;  %v3318_v31 = vmul.f32 0.5, %v7764_v9  ;;  %v9158_v41 = vadd.f32 0.5, %v3316_v39 }
 0x5a2   :  { %v7768_v19 = vpop.eup %7767  ;;  %v3317_v63 = vmul.f32 0.5, %v7766_v37  ;;  %v9161_v17 = vadd.f32 0.5, %v3315_v12 }
 0x5a3   :  { %v7770_v48 = vpop.eup %7769  ;;  %v3320_v34 = vmul.f32 0.5, %v7768_v19  ;;  %v9166_v9 = vadd.f32 0.5, %v3318_v31 }
 0x5a4   :  { %v3319_v39 = vmul.f32 0.5, %v7770_v48  ;;  %v9169_v37 = vadd.f32 0.5, %v3317_v63 }
 0x5a6   :  { %v9177_v31 = vadd.f32 0.5, %v3319_v39 }
 0x601   :  { %v3356_v33 = vpop.permute.xlu0 %3355 }
 0x602   :  { %v3378_v26 = vmul.f32 %v3356_v33, %v9151_v18  ;;  %v3354_v55 = vpop.permute.xlu1 %3353 }
 0x603   :  { %v3377_v36 = vmul.f32 %v3354_v55, %v9153_v46 }
 0x604   :  { %3395 = vrot.lane.b32.xlu0 %v3378_v26, %s8089_s26 }
 0x605   :  { %v3360_v47 = vpop.permute.xlu0 %3359  ;;  %3393 = vrot.lane.b32.xlu1 %v3377_v36, %s8089_s26  ;;  %v9174_v36 = vadd.f32 0.5, %v3320_v34 }
 0x606   :  { %v3380_v49 = vmul.f32 %v3360_v47, %v9158_v41  ;;  %v3358_v45 = vpop.permute.xlu1 %3357 }
 0x607   :  { %v3379_v62 = vmul.f32 %v3358_v45, %v9161_v17 }
 0x608   :  { %3399 = vrot.lane.b32.xlu0 %v3380_v49, %s8089_s26  ;;  %v3338_v49 = vmul.f32 %v9151_v18, %v9037_v10  ;;  %v3339_v10 = vmul.f32 %v9161_v17, %v9047_v57 }
 0x609   :  { %v3364_v33 = vpop.permute.xlu0 %3363  ;;  %3397 = vrot.lane.b32.xlu1 %v3379_v62, %s8089_s26  ;;  %v3337_v62 = vmul.f32 %v9153_v46, %v9039_v5 }
 0x60a   :  { %v3382_v12 = vmul.f32 %v3364_v33, %v9166_v9  ;;  %v3362_v26 = vpop.permute.xlu1 %3361 }
 0x60b   :  { %v3381_v55 = vmul.f32 %v3362_v26, %v9169_v37 }
 0x60c   :  { %3403 = vrot.lane.b32.xlu0 %v3382_v12, %s8089_s26  ;;  %v3340_v12 = vmul.f32 %v9158_v41, %v9045_v3  ;;  %v3341_v3 = vmul.f32 %v9169_v37, %v9055_v8 }
 0x60d   :  { %v3368_v19 = vpop.permute.xlu0 %3367  ;;  %3401 = vrot.lane.b32.xlu1 %v3381_v55, %s8089_s26 }
 0x60e   :  { %v3384_v47 = vmul.f32 %v3368_v19, %v9174_v36  ;;  %v3366_v48 = vpop.permute.xlu1 %3365 }
 0x60f   :  { %v3383_v63 = vmul.f32 %v3366_v48, %v9177_v31 }
 0x610   :  { %3407 = vrot.lane.b32.xlu0 %v3384_v47, %s8089_s26  ;;  %v3342_v47 = vmul.f32 %v9166_v9, %v9053_v30  ;;  %v3343_v30 = vmul.f32 %v9177_v31, %v9063_v4 }
 0x611   :  { %3405 = vrot.lane.b32.xlu1 %v3383_v63, %s8089_s26 }
 0x676   :  { %v3396_v45 = vpop.permute.xlu0 %3395 }
 0x677   :  { %v9187_v34 = vadd.f32 %v3396_v45, %v3338_v49  ;;  %v3394_v39 = vpop.permute.xlu1 %3393  ;;  %v3344_v45 = vmul.f32 %v9174_v36, %v9061_v23 }
 0x678   :  { %v9189_v33 = vadd.f32 %v3394_v39, %v3337_v62 }
 0x679   :  { %7771 = vtanh.f32 %v9187_v34 }
 0x67a   :  { %7773 = vtanh.f32 %v9189_v33  ;;  %v3400_v26 = vpop.permute.xlu0 %3399 }
 0x67b   :  { %v9197_v55 = vadd.f32 %v3400_v26, %v3340_v12  ;;  %v3398_v19 = vpop.permute.xlu1 %3397 }
 0x67c   :  { %v9199_v5 = vadd.f32 %v3398_v19, %v3339_v10 }
 0x67d   :  { %7775 = vtanh.f32 %v9197_v55 }
 0x67e   :  { %7777 = vtanh.f32 %v9199_v5  ;;  %v3404_v48 = vpop.permute.xlu0 %3403 }
 0x67f   :  { %v9207_v63 = vadd.f32 %v3404_v48, %v3342_v47  ;;  %v3402_v49 = vpop.permute.xlu1 %3401 }
 0x680   :  { %v9209_v57 = vadd.f32 %v3402_v49, %v3341_v3 }
 0x681   :  { %7779 = vtanh.f32 %v9207_v63 }
 0x682   :  { %7781 = vtanh.f32 %v9209_v57  ;;  %v3408_v62 = vpop.permute.xlu0 %3407 }
 0x683   :  { %v7772_v39 = vpop.eup %7771  ;;  %v9217_v12 = vadd.f32 %v3408_v62, %v3344_v45  ;;  %v3406_v8 = vpop.permute.xlu1 %3405 }
 0x684   :  { %v7774_v26 = vpop.eup %7773  ;;  %v9219_v10 = vadd.f32 %v3406_v8, %v3343_v30  ;;  %3443 = vrot.lane.b32.xlu0 %v7772_v39, %s8088_s21 }
 0x685   :  { %7783 = vtanh.f32 %v9217_v12  ;;  %3441 = vrot.lane.b32.xlu1 %v7774_v26, %s8088_s21 }
 0x686   :  { %7785 = vtanh.f32 %v9219_v10 }
 0x687   :  { %v7776_v23 = vpop.eup %7775 }
 0x688   :  { %v7778_v19 = vpop.eup %7777  ;;  %3447 = vrot.lane.b32.xlu0 %v7776_v23, %s8088_s21 }
 0x689   :  { %3445 = vrot.lane.b32.xlu1 %v7778_v19, %s8088_s21 }
 0x68b   :  { %v7780_v4 = vpop.eup %7779 }
 0x68c   :  { %v7782_v47 = vpop.eup %7781  ;;  %3451 = vrot.lane.b32.xlu0 %v7780_v4, %s8088_s21 }
 0x68d   :  { %3449 = vrot.lane.b32.xlu1 %v7782_v47, %s8088_s21 }
 0x68f   :  { %v7784_v48 = vpop.eup %7783 }
 0x690   :  { %v7786_v3 = vpop.eup %7785  ;;  %3455 = vrot.lane.b32.xlu0 %v7784_v48, %s8088_s21 }
 0x691   :  { %3453 = vrot.lane.b32.xlu1 %v7786_v3, %s8088_s21 }
 0x6f6   :  { %v3444_v49 = vpop.permute.xlu0 %3443 }
 0x6f7   :  { %v3466_v45 = vmul.f32 %v3444_v49, %v9151_v18  ;;  %v3442_v62 = vpop.permute.xlu1 %3441 }
 0x6f8   :  { %v3465_v30 = vmul.f32 %v3442_v62, %v9153_v46 }
 0x6f9   :  { %3483 = vrot.lane.b32.xlu0 %v3466_v45, %s8089_s26 }
 0x6fa   :  { %v3448_v39 = vpop.permute.xlu0 %3447  ;;  %3481 = vrot.lane.b32.xlu1 %v3465_v30, %s8089_s26  ;;  %v1915_v30 = vadd.f32 %v8926_v20, %v8953_v58  ;;  %v1935_v20 = vadd.f32 %v8934_v52, %v8953_v58 }
 0x6fb   :  { %v3468_v8 = vmul.f32 %v3448_v39, %v9158_v41  ;;  %v3446_v26 = vpop.permute.xlu1 %3445  ;;  %v1910_v39 = vadd.f32 %v8928_v50, %v8953_v58  ;;  %v1930_v50 = vadd.f32 %v8936_v53, %v8953_v58 }
 0x6fc   :  { %v3467_v23 = vmul.f32 %v3446_v26, %v9161_v17 }
 0x6fd   :  { %3487 = vrot.lane.b32.xlu0 %v3468_v8, %s8089_s26 }
 0x6fe   :  { %v3452_v19 = vpop.permute.xlu0 %3451  ;;  %3485 = vrot.lane.b32.xlu1 %v3467_v23, %s8089_s26 }
 0x6ff   :  { %v3470_v18 = vmul.f32 %v3452_v19, %v9166_v9  ;;  %v3450_v4 = vpop.permute.xlu1 %3449 }
 0x700   :  { %v3469_v46 = vmul.f32 %v3450_v4, %v9169_v37  ;;  %v1920_v4 = vadd.f32 %v8932_v25, %v8953_v58  ;;  %v1945_v25 = vadd.f32 %v8938_v54, %v8953_v58 }
 0x701   :  { %3491 = vrot.lane.b32.xlu0 %v3470_v18, %s8089_s26  ;;  %v1925_v18 = vadd.f32 %v8930_v51, %v8953_v58 }
 0x702   :  { %v3456_v47 = vpop.permute.xlu0 %3455  ;;  %3489 = vrot.lane.b32.xlu1 %v3469_v46, %s8089_s26 }
 0x703   :  { %v3472_v41 = vmul.f32 %v3456_v47, %v9174_v36  ;;  %v3454_v48 = vpop.permute.xlu1 %3453 }
 0x704   :  { %v3471_v17 = vmul.f32 %v3454_v48, %v9177_v31 }
 0x705   :  { %3495 = vrot.lane.b32.xlu0 %v3472_v41, %s8089_s26 }
 0x706   :  { %3493 = vrot.lane.b32.xlu1 %v3471_v17, %s8089_s26 }
 0x76b   :  { %v9247_v3 = vpop.permute.xlu0 %3483 }
 0x76c   :  { %v9249_v9 = vpop.permute.xlu1 %3481 }
 0x76d   :  { %7063 = vmatprep.mubr.msk.f32.mxu1 %vm1457_vm7, %v9249_v9 }
 0x76e   :  { %7064 = vmatmul.mubr.msk.f32.vlgmr.msra.gmra.mrb[68].mxu1 %vm1457_vm7, %v9247_v3 }
 0x76f   :  { %v9255_v37 = vpop.permute.xlu0 %3487  ;;  %7294 = vmatpush3.bf16.msra.mxu1 %v8758_v44 }
 0x770   :  { %v9258_v36 = vpop.permute.xlu1 %3485  ;;  %7296 = vmatprep.subr.bf16.mxu1 %v8800_v60 }
 0x771   :  { %7066 = vmatprep.mubr.msk.f32.mxu1 %vm1457_vm7, %v9258_v36 }
 0x772   :  { %7067 = vmatmul.mubr.msk.f32.gmra.mrb[70].mxu1 %vm1457_vm7, %v9255_v37 }
 0x773   :  { %v9265_v31 = vpop.permute.xlu0 %3491  ;;  %7298 = vmatpush3.bf16.msra.mxu1 %v8800_v60 }
 0x774   :  { %11092 = vst [vmem:[#allocation28_spill] sm:$0xff] %v9265_v31  ;;  %v9268_v49 = vpop.permute.xlu1 %3489  ;;  %7300 = vmatprep.subr.bf16.mxu1 %v8758_v44 }
 0x775   :  { %7069 = vmatprep.mubr.msk.f32.mxu1 %vm1457_vm7, %v9268_v49 }
 0x776   :  { %7070 = vmatmul.mubr.msk.f32.gmra.mrb[72].mxu1 %vm1457_vm7, %v9265_v31 }
 0x777   :  { %v9277_v62 = vpop.permute.xlu0 %3495 }
 0x778   :  { %v9275_v45 = vpop.permute.xlu1 %3493  ;;  %11094 = vst [vmem:[#allocation30_spill] sm:$0xff] %v9277_v62 }
 0x779   :  { %11093 = vst [vmem:[#allocation29_spill] sm:$0xff] %v9275_v45  ;;  %7072 = vmatprep.mubr.msk.f32.mxu1 %vm1457_vm7, %v9275_v45 }
 0x77a   :  { %7073 = vmatmul.mubr.msk.f32.gmra.mrb[74].mxu1 %vm1457_vm7, %v9277_v62 }
 0x841   :  { %v7065_v8 = vpop.f32.mrb[68].mxu1 }
 0x842   :  { %v3656_v26 = vadd.f32 %v7065_v8, %v1915_v30  ;;  %v3616_v23 = vpop.f32.mrb[69].mxu1  ;;  %v1940_v8 = vadd.f32 %v8940_v2, %v8953_v58 }
 0x843   :  { %v3655_v19 = vadd.f32 %v3616_v23, %v1910_v39 }
 0x844   :  { %7787 = vtanh.f32 %v3656_v26 }
 0x845   :  { %7789 = vtanh.f32 %v3655_v19  ;;  %v7068_v46 = vpop.f32.mrb[70].mxu1 }
 0x846   :  { %v3658_v47 = vadd.f32 %v7068_v46, %v1925_v18  ;;  %v3626_v41 = vpop.f32.mrb[71].mxu1 }
 0x847   :  { %v3657_v48 = vadd.f32 %v3626_v41, %v1920_v4 }
 0x848   :  { %7791 = vtanh.f32 %v3658_v47 }
 0x849   :  { %7793 = vtanh.f32 %v3657_v48  ;;  %v7071_v17 = vpop.f32.mrb[72].mxu1 }
 0x84a   :  { %v3660_v30 = vadd.f32 %v7071_v17, %v1935_v20  ;;  %v3636_v51 = vpop.f32.mrb[73].mxu1  ;;  %v3664_v17 = vmul.f32 0.5, %v3656_v26 }
 0x84b   :  { %v3659_v39 = vadd.f32 %v3636_v51, %v1930_v50  ;;  %v3663_v51 = vmul.f32 0.5, %v3655_v19 }
 0x84c   :  { %7795 = vtanh.f32 %v3660_v30 }
 0x84d   :  { %7797 = vtanh.f32 %v3659_v39  ;;  %v7074_v23 = vpop.f32.mrb[74].mxu1 }
 0x84e   :  { %v7788_v18 = vpop.eup %7787  ;;  %v3662_v52 = vadd.f32 %v7074_v23, %v1945_v25  ;;  %v3646_v4 = vpop.f32.mrb[75].mxu1  ;;  %v3666_v25 = vmul.f32 0.5, %v3658_v47  ;;  %v3668_v23 = vmul.f32 0.5, %v3660_v30 }
 0x84f   :  { %v7790_v46 = vpop.eup %7789  ;;  %v3661_v41 = vadd.f32 %v3646_v4, %v1940_v8  ;;  %3721 = vrot.lane.b32.xlu0 %v7788_v18, %s8088_s21  ;;  %v3665_v8 = vmul.f32 0.5, %v3657_v48  ;;  %v3667_v18 = vmul.f32 0.5, %v3659_v39 }
 0x850   :  { %7799 = vtanh.f32 %v3662_v52  ;;  %3719 = vrot.lane.b32.xlu1 %v7790_v46, %s8088_s21  ;;  %v3670_v4 = vmul.f32 0.5, %v3662_v52 }
 0x851   :  { %7801 = vtanh.f32 %v3661_v41  ;;  %v3669_v46 = vmul.f32 0.5, %v3661_v41 }
 0x852   :  { %v7792_v53 = vpop.eup %7791  ;;  %7803 = vtanh.f32 %v3664_v17 }
 0x853   :  { %v7794_v20 = vpop.eup %7793  ;;  %3725 = vrot.lane.b32.xlu0 %v7792_v53, %s8088_s21  ;;  %7805 = vtanh.f32 %v3663_v51 }
 0x854   :  { %3723 = vrot.lane.b32.xlu1 %v7794_v20, %s8088_s21  ;;  %7807 = vtanh.f32 %v3666_v25 }
 0x855   :  { %7809 = vtanh.f32 %v3665_v8 }
 0x856   :  { %v7796_v54 = vpop.eup %7795  ;;  %7811 = vtanh.f32 %v3668_v23 }
 0x857   :  { %v7798_v2 = vpop.eup %7797  ;;  %3729 = vrot.lane.b32.xlu0 %v7796_v54, %s8088_s21  ;;  %7813 = vtanh.f32 %v3667_v18 }
 0x858   :  { %3727 = vrot.lane.b32.xlu1 %v7798_v2, %s8088_s21  ;;  %7815 = vtanh.f32 %v3670_v4 }
 0x859   :  { %7817 = vtanh.f32 %v3669_v46 }
 0x85a   :  { %v7800_v58 = vpop.eup %7799 }
 0x85b   :  { %v7802_v50 = vpop.eup %7801  ;;  %3733 = vrot.lane.b32.xlu0 %v7800_v58, %s8088_s21 }
 0x85c   :  { %3731 = vrot.lane.b32.xlu1 %v7802_v50, %s8088_s21  ;;  %v7804_v53 = vpop.eup %7803 }
 0x85d   :  { %v7806_v20 = vpop.eup %7805  ;;  %v3680_v54 = vmul.f32 0.5, %v7804_v53 }
 0x85e   :  { %v7808_v2 = vpop.eup %7807  ;;  %v3679_v26 = vmul.f32 0.5, %v7806_v20 }
 0x85f   :  { %v7810_v19 = vpop.eup %7809  ;;  %v3682_v58 = vmul.f32 0.5, %v7808_v2  ;;  %v9307_v47 = vadd.f32 0.5, %v3680_v54 }
 0x860   :  { %v7812_v48 = vpop.eup %7811  ;;  %v3681_v50 = vmul.f32 0.5, %v7810_v19  ;;  %v9309_v17 = vadd.f32 0.5, %v3679_v26 }
 0x861   :  { %v7814_v39 = vpop.eup %7813  ;;  %v3684_v25 = vmul.f32 0.5, %v7812_v48  ;;  %v9314_v8 = vadd.f32 0.5, %v3682_v58 }
 0x862   :  { %v7816_v23 = vpop.eup %7815  ;;  %v3683_v18 = vmul.f32 0.5, %v7814_v39  ;;  %v9317_v46 = vadd.f32 0.5, %v3681_v50 }
 0x863   :  { %v7818_v53 = vpop.eup %7817  ;;  %v3686_v26 = vmul.f32 0.5, %v7816_v23  ;;  %v9322_v19 = vadd.f32 0.5, %v3684_v25 }
 0x864   :  { %v3685_v58 = vmul.f32 0.5, %v7818_v53  ;;  %v3704_v53 = vmul.f32 %v9307_v47, %v9187_v34  ;;  %v3705_v34 = vmul.f32 %v9317_v46, %v9199_v5 }
 0x866   :  { %v9333_v25 = vadd.f32 0.5, %v3685_v58 }
 0x8c1   :  { %v3722_v30 = vpop.permute.xlu0 %3721 }
 0x8c2   :  { %v3744_v52 = vmul.f32 %v3722_v30, %v9307_v47  ;;  %v3720_v41 = vpop.permute.xlu1 %3719  ;;  %v9325_v30 = vadd.f32 0.5, %v3683_v18 }
 0x8c3   :  { %v3743_v51 = vmul.f32 %v3720_v41, %v9309_v17  ;;  %v9330_v41 = vadd.f32 0.5, %v3686_v26 }
 0x8c4   :  { %3761 = vrot.lane.b32.xlu0 %v3744_v52, %s8089_s26 }
 0x8c5   :  { %v3726_v4 = vpop.permute.xlu0 %3725  ;;  %3759 = vrot.lane.b32.xlu1 %v3743_v51, %s8089_s26 }
 0x8c6   :  { %v3746_v20 = vmul.f32 %v3726_v4, %v9314_v8  ;;  %v3724_v54 = vpop.permute.xlu1 %3723 }
 0x8c7   :  { %v3745_v2 = vmul.f32 %v3724_v54, %v9317_v46  ;;  %v3703_v54 = vmul.f32 %v9309_v17, %v9189_v33 }
 0x8c8   :  { %3765 = vrot.lane.b32.xlu0 %v3746_v20, %s8089_s26 }
 0x8c9   :  { %v3730_v48 = vpop.permute.xlu0 %3729  ;;  %3763 = vrot.lane.b32.xlu1 %v3745_v2, %s8089_s26 }
 0x8ca   :  { %v3748_v50 = vmul.f32 %v3730_v48, %v9322_v19  ;;  %v3728_v39 = vpop.permute.xlu1 %3727  ;;  %v3706_v48 = vmul.f32 %v9314_v8, %v9197_v55  ;;  %v3707_v55 = vmul.f32 %v9325_v30, %v9209_v57 }
 0x8cb   :  { %v3747_v52 = vmul.f32 %v3728_v39, %v9325_v30 }
 0x8cc   :  { %3769 = vrot.lane.b32.xlu0 %v3748_v50, %s8089_s26 }
 0x8cd   :  { %v3734_v51 = vpop.permute.xlu0 %3733  ;;  %3767 = vrot.lane.b32.xlu1 %v3747_v52, %s8089_s26 }
 0x8ce   :  { %v3750_v23 = vmul.f32 %v3734_v51, %v9330_v41  ;;  %v3732_v4 = vpop.permute.xlu1 %3731  ;;  %v3708_v51 = vmul.f32 %v9322_v19, %v9207_v63  ;;  %v3709_v63 = vmul.f32 %v9333_v25, %v9219_v10 }
 0x8cf   :  { %v3749_v18 = vmul.f32 %v3732_v4, %v9333_v25 }
 0x8d0   :  { %3773 = vrot.lane.b32.xlu0 %v3750_v23, %s8089_s26 }
 0x8d1   :  { %3771 = vrot.lane.b32.xlu1 %v3749_v18, %s8089_s26 }
 0x936   :  { %v3762_v20 = vpop.permute.xlu0 %3761 }
 0x937   :  { %v9343_v2 = vadd.f32 %v3762_v20, %v3704_v53  ;;  %v3760_v26 = vpop.permute.xlu1 %3759  ;;  %v3710_v53 = vmul.f32 %v9330_v41, %v9217_v12 }
 0x938   :  { %v9345_v58 = vadd.f32 %v3760_v26, %v3703_v54 }
 0x939   :  { %7819 = vtanh.f32 %v9343_v2 }
 0x93a   :  { %7821 = vtanh.f32 %v9345_v58  ;;  %v3766_v50 = vpop.permute.xlu0 %3765 }
 0x93b   :  { %v9353_v39 = vadd.f32 %v3766_v50, %v3706_v48  ;;  %v3764_v52 = vpop.permute.xlu1 %3763 }
 0x93c   :  { %v9355_v33 = vadd.f32 %v3764_v52, %v3705_v34 }
 0x93d   :  { %7823 = vtanh.f32 %v9353_v39 }
 0x93e   :  { %7825 = vtanh.f32 %v9355_v33  ;;  %v3770_v23 = vpop.permute.xlu0 %3769 }
 0x93f   :  { %v9363_v4 = vadd.f32 %v3770_v23, %v3708_v51  ;;  %v3768_v18 = vpop.permute.xlu1 %3767 }
 0x940   :  { %v9365_v5 = vadd.f32 %v3768_v18, %v3707_v55 }
 0x941   :  { %7827 = vtanh.f32 %v9363_v4 }
 0x942   :  { %7829 = vtanh.f32 %v9365_v5  ;;  %v3774_v20 = vpop.permute.xlu0 %3773 }
 0x943   :  { %v7820_v54 = vpop.eup %7819  ;;  %v9373_v26 = vadd.f32 %v3774_v20, %v3710_v53  ;;  %v3772_v57 = vpop.permute.xlu1 %3771 }
 0x944   :  { %v7822_v48 = vpop.eup %7821  ;;  %v9375_v50 = vadd.f32 %v3772_v57, %v3709_v63  ;;  %3809 = vrot.lane.b32.xlu0 %v7820_v54, %s8088_s21 }
 0x945   :  { %7831 = vtanh.f32 %v9373_v26  ;;  %3807 = vrot.lane.b32.xlu1 %v7822_v48, %s8088_s21 }
 0x946   :  { %7833 = vtanh.f32 %v9375_v50 }
 0x947   :  { %v7824_v12 = vpop.eup %7823 }
 0x948   :  { %v7826_v34 = vpop.eup %7825  ;;  %3813 = vrot.lane.b32.xlu0 %v7824_v12, %s8088_s21 }
 0x949   :  { %3811 = vrot.lane.b32.xlu1 %v7826_v34, %s8088_s21 }
 0x94b   :  { %v7828_v10 = vpop.eup %7827 }
 0x94c   :  { %v7830_v52 = vpop.eup %7829  ;;  %3817 = vrot.lane.b32.xlu0 %v7828_v10, %s8088_s21 }
 0x94d   :  { %3815 = vrot.lane.b32.xlu1 %v7830_v52, %s8088_s21 }
 0x94f   :  { %v7832_v51 = vpop.eup %7831 }
 0x950   :  { %v7834_v23 = vpop.eup %7833  ;;  %3821 = vrot.lane.b32.xlu0 %v7832_v51, %s8088_s21 }
 0x951   :  { %3819 = vrot.lane.b32.xlu1 %v7834_v23, %s8088_s21 }
 0x9b6   :  { %v3810_v55 = vpop.permute.xlu0 %3809 }
 0x9b7   :  { %v3832_v18 = vmul.f32 %v3810_v55, %v9307_v47  ;;  %v3808_v53 = vpop.permute.xlu1 %3807 }
 0x9b8   :  { %v3831_v20 = vmul.f32 %v3808_v53, %v9309_v17  ;;  %v9442_v53 = vld [vmem:[%s10999_s3 + $0x40] ss:$0 sm:$0xff] }
 0x9b9   :  { %3849 = vrot.lane.b32.xlu0 %v3832_v18, %s8089_s26 }
 0x9ba   :  { %v3814_v63 = vpop.permute.xlu0 %3813  ;;  %3847 = vrot.lane.b32.xlu1 %v3831_v20, %s8089_s26  ;;  %v1955_v20 = vadd.f32 %v9442_v53, %v8942_v28 }
 0x9bb   :  { %v3834_v54 = vmul.f32 %v3814_v63, %v9314_v8  ;;  %v3812_v57 = vpop.permute.xlu1 %3811  ;;  %v1950_v63 = vadd.f32 %v9442_v53, %v8944_v1 }
 0x9bc   :  { %v3833_v48 = vmul.f32 %v3812_v57, %v9317_v46 }
 0x9bd   :  { %3853 = vrot.lane.b32.xlu0 %v3834_v54, %s8089_s26 }
 0x9be   :  { %v3818_v12 = vpop.permute.xlu0 %3817  ;;  %3851 = vrot.lane.b32.xlu1 %v3833_v48, %s8089_s26 }
 0x9bf   :  { %v3836_v47 = vmul.f32 %v3818_v12, %v9322_v19  ;;  %v3816_v34 = vpop.permute.xlu1 %3815 }
 0x9c0   :  { %v3835_v17 = vmul.f32 %v3816_v34, %v9325_v30  ;;  %v1960_v34 = vadd.f32 %v9442_v53, %v8948_v6 }
 0x9c1   :  { %3857 = vrot.lane.b32.xlu0 %v3836_v47, %s8089_s26  ;;  %v1965_v47 = vadd.f32 %v9442_v53, %v8946_v56 }
 0x9c2   :  { %v3822_v10 = vpop.permute.xlu0 %3821  ;;  %3855 = vrot.lane.b32.xlu1 %v3835_v17, %s8089_s26 }
 0x9c3   :  { %v3838_v8 = vmul.f32 %v3822_v10, %v9330_v41  ;;  %v3820_v52 = vpop.permute.xlu1 %3819 }
 0x9c4   :  { %v3837_v46 = vmul.f32 %v3820_v52, %v9333_v25 }
 0x9c5   :  { %3861 = vrot.lane.b32.xlu0 %v3838_v8, %s8089_s26 }
 0x9c6   :  { %3859 = vrot.lane.b32.xlu1 %v3837_v46, %s8089_s26 }
 0xa2b   :  { %v9403_v51 = vpop.permute.xlu0 %3849 }
 0xa2c   :  { %v9405_v19 = vpop.permute.xlu1 %3847 }
 0xa2d   :  { %7083 = vmatprep.mubr.msk.f32.mxu1 %vm1457_vm7, %v9405_v19 }
 0xa2e   :  { %7084 = vmatmul.mubr.msk.f32.vlgmr.msra.gmra.mrb[76].mxu1 %vm1457_vm7, %v9403_v51 }
 0xa2f   :  { %v9411_v30 = vpop.permute.xlu0 %3853  ;;  %7302 = vmatpush3.bf16.msra.mxu1 %v8758_v44 }
 0xa30   :  { %v9414_v41 = vpop.permute.xlu1 %3851  ;;  %7304 = vmatprep.subr.bf16.mxu1 %v8800_v60 }
 0xa31   :  { %7086 = vmatprep.mubr.msk.f32.mxu1 %vm1457_vm7, %v9414_v41 }
 0xa32   :  { %7087 = vmatmul.mubr.msk.f32.gmra.mrb[78].mxu1 %vm1457_vm7, %v9411_v30 }
 0xa33   :  { %v9421_v25 = vpop.permute.xlu0 %3857  ;;  %7306 = vmatpush3.bf16.msra.mxu1 %v8800_v60 }
 0xa34   :  { %11095 = vst [vmem:[#allocation31_spill] sm:$0xff] %v9421_v25  ;;  %v9424_v23 = vpop.permute.xlu1 %3855  ;;  %7308 = vmatprep.subr.bf16.mxu1 %v8758_v44 }
 0xa35   :  { %11096 = vst [vmem:[#allocation32_spill] sm:$0xff] %v9424_v23  ;;  %7089 = vmatprep.mubr.msk.f32.mxu1 %vm1457_vm7, %v9424_v23 }
 0xa36   :  { %7090 = vmatmul.mubr.msk.f32.gmra.mrb[16].mxu1 %vm1457_vm7, %v9421_v25 }
 0xa37   :  { %v9433_v18 = vpop.permute.xlu0 %3861 }
 0xa38   :  { %v9431_v55 = vpop.permute.xlu1 %3859  ;;  %11098 = vst [vmem:[#allocation34_spill] sm:$0xff] %v9433_v18 }
 0xa39   :  { %11097 = vst [vmem:[#allocation33_spill] sm:$0xff] %v9431_v55  ;;  %7092 = vmatprep.mubr.msk.f32.mxu1 %vm1457_vm7, %v9431_v55 }
 0xa3a   :  { %7093 = vmatmul.mubr.msk.f32.gmra.mrb[18].mxu1 %vm1457_vm7, %v9433_v18 }
 0xb01   :  { %v7085_v54 = vpop.f32.mrb[76].mxu1 }
 0xb02   :  { %v4022_v57 = vadd.f32 %v7085_v54, %v1955_v20  ;;  %v3982_v48 = vpop.f32.mrb[77].mxu1 }
 0xb03   :  { %v4021_v12 = vadd.f32 %v3982_v48, %v1950_v63 }
 0xb04   :  { %7835 = vtanh.f32 %v4022_v57 }
 0xb05   :  { %7837 = vtanh.f32 %v4021_v12  ;;  %v7088_v17 = vpop.f32.mrb[78].mxu1 }
 0xb06   :  { %v4024_v10 = vadd.f32 %v7088_v17, %v1965_v47  ;;  %v3992_v8 = vpop.f32.mrb[79].mxu1 }
 0xb07   :  { %v4023_v52 = vadd.f32 %v3992_v8, %v1960_v34 }
 0xb08   :  { %7839 = vtanh.f32 %v4024_v10 }
 0xb09   :  { %7841 = vtanh.f32 %v4023_v52  ;;  %v7091_v28 = vpop.f32.mrb[16].mxu1 }
 0xb0a   :  { %v7407_v1 = vadd.f32 %v9442_v53, %v7091_v28  ;;  %v4002_v46 = vpop.f32.mrb[17].mxu1 }
 0xb0b   :  { %v7408_v20 = vadd.f32 %v9442_v53, %v4002_v46 }
 0xb0c   :  { %7843 = vtanh.f32 %v7407_v1 }
 0xb0d   :  { %7845 = vtanh.f32 %v7408_v20  ;;  %v7094_v56 = vpop.f32.mrb[18].mxu1  ;;  %v4033_v18 = vmul.f32 0.5, %v7408_v20 }
 0xb0e   :  { %v7836_v63 = vpop.eup %7835  ;;  %v7409_v54 = vadd.f32 %v9442_v53, %v7094_v56  ;;  %v4012_v6 = vpop.f32.mrb[19].mxu1 }
 0xb0f   :  { %v7838_v48 = vpop.eup %7837  ;;  %v7410_v47 = vadd.f32 %v9442_v53, %v4012_v6  ;;  %4087 = vrot.lane.b32.xlu0 %v7836_v63, %s8088_s21  ;;  %v4030_v63 = vmul.f32 0.5, %v4022_v57  ;;  %v4029_v6 = vmul.f32 0.5, %v4021_v12 }
 0xb10   :  { %7847 = vtanh.f32 %v7409_v54  ;;  %4085 = vrot.lane.b32.xlu1 %v7838_v48, %s8088_s21  ;;  %v4032_v48 = vmul.f32 0.5, %v4024_v10 }
 0xb11   :  { %7849 = vtanh.f32 %v7410_v47 }
 0xb12   :  { %v7840_v34 = vpop.eup %7839  ;;  %7851 = vtanh.f32 %v4030_v63 }
 0xb13   :  { %v7842_v17 = vpop.eup %7841  ;;  %4091 = vrot.lane.b32.xlu0 %v7840_v34, %s8088_s21  ;;  %7853 = vtanh.f32 %v4029_v6  ;;  %v4031_v34 = vmul.f32 0.5, %v4023_v52 }
 0xb14   :  { %4089 = vrot.lane.b32.xlu1 %v7842_v17, %s8088_s21  ;;  %7855 = vtanh.f32 %v4032_v48  ;;  %v4034_v17 = vmul.f32 0.5, %v7407_v1 }
 0xb15   :  { %7857 = vtanh.f32 %v4031_v34 }
 0xb16   :  { %v7844_v8 = vpop.eup %7843  ;;  %7859 = vtanh.f32 %v4034_v17 }
 0xb17   :  { %v7846_v28 = vpop.eup %7845  ;;  %4095 = vrot.lane.b32.xlu0 %v7844_v8, %s8088_s21  ;;  %v4036_v8 = vmul.f32 0.5, %v7409_v54  ;;  %7861 = vtanh.f32 %v4033_v18 }
 0xb18   :  { %4093 = vrot.lane.b32.xlu1 %v7846_v28, %s8088_s21  ;;  %v4035_v28 = vmul.f32 0.5, %v7410_v47 }
 0xb19   :  { %7863 = vtanh.f32 %v4036_v8 }
 0xb1a   :  { %v7848_v46 = vpop.eup %7847  ;;  %7865 = vtanh.f32 %v4035_v28 }
 0xb1b   :  { %v7850_v56 = vpop.eup %7849  ;;  %4099 = vrot.lane.b32.xlu0 %v7848_v46, %s8088_s21 }
 0xb1c   :  { %4097 = vrot.lane.b32.xlu1 %v7850_v56, %s8088_s21  ;;  %v7852_v55 = vpop.eup %7851 }
 0xb1d   :  { %v7854_v62 = vpop.eup %7853  ;;  %v4046_v46 = vmul.f32 0.5, %v7852_v55 }
 0xb1e   :  { %v7856_v56 = vpop.eup %7855  ;;  %v4045_v57 = vmul.f32 0.5, %v7854_v62 }
 0xb1f   :  { %v7858_v12 = vpop.eup %7857  ;;  %v4048_v63 = vmul.f32 0.5, %v7856_v56  ;;  %v9464_v10 = vadd.f32 0.5, %v4046_v46 }
 0xb20   :  { %v7860_v52 = vpop.eup %7859  ;;  %v4047_v6 = vmul.f32 0.5, %v7858_v12  ;;  %v9466_v48 = vadd.f32 0.5, %v4045_v57 }
 0xb21   :  { %v7862_v20 = vpop.eup %7861  ;;  %v4050_v34 = vmul.f32 0.5, %v7860_v52  ;;  %v9471_v55 = vadd.f32 0.5, %v4048_v63 }
 0xb22   :  { %v4049_v17 = vmul.f32 0.5, %v7862_v20  ;;  %v9474_v28 = vadd.f32 0.5, %v4047_v6 }
 0xb23   :  { %v7864_v62 = vpop.eup %7863  ;;  %v9479_v52 = vadd.f32 0.5, %v4050_v34 }
 0xb24   :  { %v7866_v46 = vpop.eup %7865  ;;  %v9482_v20 = vadd.f32 0.5, %v4049_v17 }
 0xb25   :  { %v4051_v63 = vmul.f32 0.5, %v7866_v46 }
 0xb27   :  { %v9490_v34 = vadd.f32 0.5, %v4051_v63 }
 0xb81   :  { %v4088_v1 = vpop.permute.xlu0 %4087 }
 0xb82   :  { %v4110_v18 = vmul.f32 %v4088_v1, %v9464_v10  ;;  %v4086_v54 = vpop.permute.xlu1 %4085  ;;  %v4052_v1 = vmul.f32 0.5, %v7864_v62 }
 0xb83   :  { %v4109_v47 = vmul.f32 %v4086_v54, %v9466_v48 }
 0xb84   :  { %4127 = vrot.lane.b32.xlu0 %v4110_v18, %s8089_s26 }
 0xb85   :  { %v4092_v8 = vpop.permute.xlu0 %4091  ;;  %4125 = vrot.lane.b32.xlu1 %v4109_v47, %s8089_s26 }
 0xb86   :  { %v4112_v56 = vmul.f32 %v4092_v8, %v9471_v55  ;;  %v4090_v57 = vpop.permute.xlu1 %4089  ;;  %v9487_v8 = vadd.f32 0.5, %v4052_v1  ;;  %v4069_v1 = vmul.f32 %v9466_v48, %v9345_v58 }
 0xb87   :  { %v4111_v12 = vmul.f32 %v4090_v57, %v9474_v28  ;;  %v4070_v57 = vmul.f32 %v9464_v10, %v9343_v2  ;;  %v4071_v2 = vmul.f32 %v9474_v28, %v9355_v33 }
 0xb88   :  { %4131 = vrot.lane.b32.xlu0 %v4112_v56, %s8089_s26 }
 0xb89   :  { %v4096_v18 = vpop.permute.xlu0 %4095  ;;  %4129 = vrot.lane.b32.xlu1 %v4111_v12, %s8089_s26 }
 0xb8a   :  { %v4114_v6 = vmul.f32 %v4096_v18, %v9479_v52  ;;  %v4094_v54 = vpop.permute.xlu1 %4093 }
 0xb8b   :  { %v4113_v47 = vmul.f32 %v4094_v54, %v9482_v20  ;;  %v4072_v54 = vmul.f32 %v9471_v55, %v9353_v39  ;;  %v4073_v39 = vmul.f32 %v9482_v20, %v9365_v5 }
 0xb8c   :  { %4135 = vrot.lane.b32.xlu0 %v4114_v6, %s8089_s26 }
 0xb8d   :  { %v4100_v62 = vpop.permute.xlu0 %4099  ;;  %4133 = vrot.lane.b32.xlu1 %v4113_v47, %s8089_s26 }
 0xb8e   :  { %v4116_v46 = vmul.f32 %v4100_v62, %v9487_v8  ;;  %v4098_v56 = vpop.permute.xlu1 %4097 }
 0xb8f   :  { %v4115_v17 = vmul.f32 %v4098_v56, %v9490_v34  ;;  %v4074_v56 = vmul.f32 %v9479_v52, %v9363_v4  ;;  %v4075_v4 = vmul.f32 %v9490_v34, %v9375_v50 }
 0xb90   :  { %4139 = vrot.lane.b32.xlu0 %v4116_v46, %s8089_s26 }
 0xb91   :  { %4137 = vrot.lane.b32.xlu1 %v4115_v17, %s8089_s26 }
 0xbf6   :  { %v4128_v12 = vpop.permute.xlu0 %4127 }
 0xbf7   :  { %v9500_v18 = vadd.f32 %v4128_v12, %v4070_v57  ;;  %v4126_v63 = vpop.permute.xlu1 %4125 }
 0xbf8   :  { %v9502_v6 = vadd.f32 %v4126_v63, %v4069_v1  ;;  %v4076_v1 = vmul.f32 %v9487_v8, %v9373_v26 }
 0xbf9   :  { %7867 = vtanh.f32 %v9500_v18 }
 0xbfa   :  { %7869 = vtanh.f32 %v9502_v6  ;;  %v4132_v47 = vpop.permute.xlu0 %4131 }
 0xbfb   :  { %v9510_v62 = vadd.f32 %v4132_v47, %v4072_v54  ;;  %v4130_v46 = vpop.permute.xlu1 %4129 }
 0xbfc   :  { %v9512_v58 = vadd.f32 %v4130_v46, %v4071_v2 }
 0xbfd   :  { %7871 = vtanh.f32 %v9510_v62 }
 0xbfe   :  { %7873 = vtanh.f32 %v9512_v58  ;;  %v4136_v17 = vpop.permute.xlu0 %4135 }
 0xbff   :  { %v9520_v57 = vadd.f32 %v4136_v17, %v4074_v56  ;;  %v4134_v12 = vpop.permute.xlu1 %4133 }
 0xc00   :  { %v9522_v33 = vadd.f32 %v4134_v12, %v4073_v39 }
 0xc01   :  { %7875 = vtanh.f32 %v9520_v57 }
 0xc02   :  { %7877 = vtanh.f32 %v9522_v33  ;;  %v4140_v63 = vpop.permute.xlu0 %4139 }
 0xc03   :  { %v7868_v54 = vpop.eup %7867  ;;  %v9530_v47 = vadd.f32 %v4140_v63, %v4076_v1  ;;  %v4138_v5 = vpop.permute.xlu1 %4137 }
 0xc04   :  { %v7870_v2 = vpop.eup %7869  ;;  %v9532_v46 = vadd.f32 %v4138_v5, %v4075_v4  ;;  %4175 = vrot.lane.b32.xlu0 %v7868_v54, %s8088_s21 }
 0xc05   :  { %7879 = vtanh.f32 %v9530_v47  ;;  %4173 = vrot.lane.b32.xlu1 %v7870_v2, %s8088_s21 }
 0xc06   :  { %7881 = vtanh.f32 %v9532_v46 }
 0xc07   :  { %v7872_v26 = vpop.eup %7871 }
 0xc08   :  { %v7874_v56 = vpop.eup %7873  ;;  %4179 = vrot.lane.b32.xlu0 %v7872_v26, %s8088_s21 }
 0xc09   :  { %4177 = vrot.lane.b32.xlu1 %v7874_v56, %s8088_s21 }
 0xc0b   :  { %v7876_v50 = vpop.eup %7875 }
 0xc0c   :  { %v7878_v17 = vpop.eup %7877  ;;  %4183 = vrot.lane.b32.xlu0 %v7876_v50, %s8088_s21 }
 0xc0d   :  { %4181 = vrot.lane.b32.xlu1 %v7878_v17, %s8088_s21 }
 0xc0f   :  { %v7880_v39 = vpop.eup %7879 }
 0xc10   :  { %v7882_v12 = vpop.eup %7881  ;;  %4187 = vrot.lane.b32.xlu0 %v7880_v39, %s8088_s21 }
 0xc11   :  { %4185 = vrot.lane.b32.xlu1 %v7882_v12, %s8088_s21 }
 0xc76   :  { %v4176_v1 = vpop.permute.xlu0 %4175 }
 0xc77   :  { %v4198_v63 = vmul.f32 %v4176_v1, %v9464_v10  ;;  %v4174_v4 = vpop.permute.xlu1 %4173 }
 0xc78   :  { %v4197_v54 = vmul.f32 %v4174_v4, %v9466_v48 }
 0xc79   :  { %4215 = vrot.lane.b32.xlu0 %v4198_v63, %s8089_s26 }
 0xc7a   :  { %v4180_v5 = vpop.permute.xlu0 %4179  ;;  %4213 = vrot.lane.b32.xlu1 %v4197_v54, %s8089_s26 }
 0xc7b   :  { %v4200_v2 = vmul.f32 %v4180_v5, %v9471_v55  ;;  %v4178_v26 = vpop.permute.xlu1 %4177 }
 0xc7c   :  { %v4199_v56 = vmul.f32 %v4178_v26, %v9474_v28 }
 0xc7d   :  { %4219 = vrot.lane.b32.xlu0 %v4200_v2, %s8089_s26 }
 0xc7e   :  { %v4184_v50 = vpop.permute.xlu0 %4183  ;;  %4217 = vrot.lane.b32.xlu1 %v4199_v56, %s8089_s26 }
 0xc7f   :  { %v4202_v10 = vmul.f32 %v4184_v50, %v9479_v52  ;;  %v4182_v17 = vpop.permute.xlu1 %4181 }
 0xc80   :  { %v4201_v48 = vmul.f32 %v4182_v17, %v9482_v20 }
 0xc81   :  { %4223 = vrot.lane.b32.xlu0 %v4202_v10, %s8089_s26 }
 0xc82   :  { %v4188_v39 = vpop.permute.xlu0 %4187  ;;  %4221 = vrot.lane.b32.xlu1 %v4201_v48, %s8089_s26 }
 0xc83   :  { %v4204_v55 = vmul.f32 %v4188_v39, %v9487_v8  ;;  %v4186_v12 = vpop.permute.xlu1 %4185 }
 0xc84   :  { %v4203_v28 = vmul.f32 %v4186_v12, %v9490_v34 }
 0xc85   :  { %4227 = vrot.lane.b32.xlu0 %v4204_v55, %s8089_s26 }
 0xc86   :  { %4225 = vrot.lane.b32.xlu1 %v4203_v28, %s8089_s26 }
 0xceb   :  { %v9560_v1 = vpop.permute.xlu0 %4215 }
 0xcec   :  { %11099 = vst [vmem:[#allocation35_spill] sm:$0xff] %v9560_v1  ;;  %v9562_v52 = vpop.permute.xlu1 %4213 }
 0xced   :  { %7103 = vmatprep.mubr.msk.f32.mxu1 %vm1457_vm7, %v9562_v52 }
 0xcee   :  { %7104 = vmatmul.mubr.msk.f32.vlgmr.msra.gmra.mrb[20].mxu1 %vm1457_vm7, %v9560_v1 }
 0xcef   :  { %v9568_v20 = vpop.permute.xlu0 %4219  ;;  %7310 = vmatpush3.bf16.msra.mxu1 %v8758_v44 }
 0xcf0   :  { %11100 = vst [vmem:[#allocation36_spill] sm:$0xff] %v9568_v20  ;;  %v9571_v8 = vpop.permute.xlu1 %4217  ;;  %7312 = vmatprep.subr.bf16.mxu1 %v8800_v60 }
 0xcf1   :  { %11101 = vst [vmem:[#allocation37_spill] sm:$0xff] %v9571_v8  ;;  %7106 = vmatprep.mubr.msk.f32.mxu1 %vm1457_vm7, %v9571_v8 }
 0xcf2   :  { %7107 = vmatmul.mubr.msk.f32.gmra.mrb[22].mxu1 %vm1457_vm7, %v9568_v20 }
 0xcf3   :  { %v9578_v34 = vpop.permute.xlu0 %4223  ;;  %7314 = vmatpush3.bf16.msra.mxu1 %v8800_v60 }
 0xcf4   :  { %11102 = vst [vmem:[#allocation38_spill] sm:$0xff] %v9578_v34  ;;  %v9581_v63 = vpop.permute.xlu1 %4221  ;;  %7316 = vmatprep.subr.bf16.mxu1 %v8758_v44 }
 0xcf5   :  { %11103 = vst [vmem:[#allocation39_spill] sm:$0xff] %v9581_v63  ;;  %7109 = vmatprep.mubr.msk.f32.mxu1 %vm1457_vm7, %v9581_v63 }
 0xcf6   :  { %7110 = vmatmul.mubr.msk.f32.gmra.mrb[24].mxu1 %vm1457_vm7, %v9578_v34 }
 0xcf7   :  { %v9590_v54 = vpop.permute.xlu0 %4227 }
 0xcf8   :  { %v9588_v4 = vpop.permute.xlu1 %4225  ;;  %11105 = vst [vmem:[#allocation41_spill] sm:$0xff] %v9590_v54 }
 0xcf9   :  { %11104 = vst [vmem:[#allocation40_spill] sm:$0xff] %v9588_v4  ;;  %7112 = vmatprep.mubr.msk.f32.mxu1 %vm1457_vm7, %v9588_v4 }
 0xcfa   :  { %7113 = vmatmul.mubr.msk.f32.gmra.mrb[26].mxu1 %vm1457_vm7, %v9590_v54 }
 0xdc1   :  { %v7105_v5 = vpop.f32.mrb[20].mxu1 }
 0xdc2   :  { %v7411_v2 = vadd.f32 %v9442_v53, %v7105_v5  ;;  %v4348_v26 = vpop.f32.mrb[21].mxu1 }
 0xdc3   :  { %v7412_v56 = vadd.f32 %v9442_v53, %v4348_v26 }
 0xdc4   :  { %7883 = vtanh.f32 %v7411_v2 }
 0xdc5   :  { %7885 = vtanh.f32 %v7412_v56  ;;  %v7108_v50 = vpop.f32.mrb[22].mxu1 }
 0xdc6   :  { %v7413_v10 = vadd.f32 %v9442_v53, %v7108_v50  ;;  %v4358_v17 = vpop.f32.mrb[23].mxu1 }
 0xdc7   :  { %v7414_v48 = vadd.f32 %v9442_v53, %v4358_v17 }
 0xdc8   :  { %7887 = vtanh.f32 %v7413_v10  ;;  %v4398_v22 = vmul.f32 0.5, %v7413_v10 }
 0xdc9   :  { %7889 = vtanh.f32 %v7414_v48  ;;  %v7111_v39 = vpop.f32.mrb[24].mxu1 }
 0xdca   :  { %v7415_v55 = vadd.f32 %v9442_v53, %v7111_v39  ;;  %v4368_v12 = vpop.f32.mrb[25].mxu1 }
 0xdcb   :  { %v7416_v28 = vadd.f32 %v9442_v53, %v4368_v12 }
 0xdcc   :  { %7891 = vtanh.f32 %v7415_v55 }
 0xdcd   :  { %7893 = vtanh.f32 %v7416_v28  ;;  %v7114_v5 = vpop.f32.mrb[26].mxu1  ;;  %v4399_v45 = vmul.f32 0.5, %v7416_v28 }
 0xdce   :  { %v7884_v26 = vpop.eup %7883  ;;  %v7417_v54 = vadd.f32 %v9442_v53, %v7114_v5  ;;  %v4378_v4 = vpop.f32.mrb[27].mxu1 }
 0xdcf   :  { %v7886_v34 = vpop.eup %7885  ;;  %v7418_v50 = vadd.f32 %v9442_v53, %v4378_v4  ;;  %4453 = vrot.lane.b32.xlu0 %v7884_v26, %s8088_s21  ;;  %v4395_v26 = vmul.f32 0.5, %v7412_v56 }
 0xdd0   :  { %7895 = vtanh.f32 %v7417_v54  ;;  %4451 = vrot.lane.b32.xlu1 %v7886_v34, %s8088_s21  ;;  %v4396_v34 = vmul.f32 0.5, %v7411_v2 }
 0xdd1   :  { %7897 = vtanh.f32 %v7418_v50 }
 0xdd2   :  { %v7888_v17 = vpop.eup %7887  ;;  %7899 = vtanh.f32 %v4396_v34 }
 0xdd3   :  { %v7890_v39 = vpop.eup %7889  ;;  %4457 = vrot.lane.b32.xlu0 %v7888_v17, %s8088_s21  ;;  %7901 = vtanh.f32 %v4395_v26  ;;  %v4397_v17 = vmul.f32 0.5, %v7414_v48 }
 0xdd4   :  { %4455 = vrot.lane.b32.xlu1 %v7890_v39, %s8088_s21  ;;  %7903 = vtanh.f32 %v4398_v22  ;;  %v4400_v39 = vmul.f32 0.5, %v7415_v55 }
 0xdd5   :  { %7905 = vtanh.f32 %v4397_v17 }
 0xdd6   :  { %v7892_v12 = vpop.eup %7891  ;;  %7907 = vtanh.f32 %v4400_v39 }
 0xdd7   :  { %v7894_v24 = vpop.eup %7893  ;;  %4461 = vrot.lane.b32.xlu0 %v7892_v12, %s8088_s21  ;;  %v4402_v12 = vmul.f32 0.5, %v7417_v54  ;;  %7909 = vtanh.f32 %v4399_v45 }
 0xdd8   :  { %4459 = vrot.lane.b32.xlu1 %v7894_v24, %s8088_s21  ;;  %v4401_v24 = vmul.f32 0.5, %v7418_v50 }
 0xdd9   :  { %7911 = vtanh.f32 %v4402_v12 }
 0xdda   :  { %v7896_v5 = vpop.eup %7895  ;;  %7913 = vtanh.f32 %v4401_v24 }
 0xddb   :  { %v7898_v4 = vpop.eup %7897  ;;  %4465 = vrot.lane.b32.xlu0 %v7896_v5, %s8088_s21 }
 0xddc   :  { %4463 = vrot.lane.b32.xlu1 %v7898_v4, %s8088_s21  ;;  %v7900_v63 = vpop.eup %7899 }
 0xddd   :  { %v7902_v25 = vpop.eup %7901  ;;  %v4412_v5 = vmul.f32 0.5, %v7900_v63 }
 0xdde   :  { %v7904_v4 = vpop.eup %7903  ;;  %v4411_v2 = vmul.f32 0.5, %v7902_v25 }
 0xddf   :  { %v7906_v56 = vpop.eup %7905  ;;  %v4414_v34 = vmul.f32 0.5, %v7904_v4  ;;  %v9612_v10 = vadd.f32 0.5, %v4412_v5 }
 0xde0   :  { %v7908_v48 = vpop.eup %7907  ;;  %v4413_v22 = vmul.f32 0.5, %v7906_v56  ;;  %v9614_v26 = vadd.f32 0.5, %v4411_v2 }
 0xde1   :  { %v7910_v28 = vpop.eup %7909  ;;  %v4416_v17 = vmul.f32 0.5, %v7908_v48  ;;  %v9619_v63 = vadd.f32 0.5, %v4414_v34 }
 0xde2   :  { %v4415_v39 = vmul.f32 0.5, %v7910_v28  ;;  %v9622_v24 = vadd.f32 0.5, %v4413_v22 }
 0xde3   :  { %v7912_v25 = vpop.eup %7911  ;;  %v9627_v48 = vadd.f32 0.5, %v4416_v17 }
 0xde4   :  { %v7914_v5 = vpop.eup %7913  ;;  %v9630_v28 = vadd.f32 0.5, %v4415_v39 }
 0xde5   :  { %v4417_v34 = vmul.f32 0.5, %v7914_v5 }
 0xde7   :  { %v9638_v17 = vadd.f32 0.5, %v4417_v34 }
 0xe41   :  { %v4454_v55 = vpop.permute.xlu0 %4453 }
 0xe42   :  { %v4476_v45 = vmul.f32 %v4454_v55, %v9612_v10  ;;  %v4452_v54 = vpop.permute.xlu1 %4451  ;;  %v4418_v55 = vmul.f32 0.5, %v7912_v25 }
 0xe43   :  { %v4475_v50 = vmul.f32 %v4452_v54, %v9614_v26 }
 0xe44   :  { %4493 = vrot.lane.b32.xlu0 %v4476_v45, %s8089_s26 }
 0xe45   :  { %v4458_v12 = vpop.permute.xlu0 %4457  ;;  %4491 = vrot.lane.b32.xlu1 %v4475_v50, %s8089_s26 }
 0xe46   :  { %v4478_v4 = vmul.f32 %v4458_v12, %v9619_v63  ;;  %v4456_v2 = vpop.permute.xlu1 %4455  ;;  %v9635_v12 = vadd.f32 0.5, %v4418_v55  ;;  %v4435_v55 = vmul.f32 %v9614_v26, %v9502_v6 }
 0xe47   :  { %v4477_v56 = vmul.f32 %v4456_v2, %v9622_v24  ;;  %v4436_v2 = vmul.f32 %v9612_v10, %v9500_v18  ;;  %v4437_v18 = vmul.f32 %v9622_v24, %v9512_v58 }
 0xe48   :  { %4497 = vrot.lane.b32.xlu0 %v4478_v4, %s8089_s26 }
 0xe49   :  { %v4462_v45 = vpop.permute.xlu0 %4461  ;;  %4495 = vrot.lane.b32.xlu1 %v4477_v56, %s8089_s26 }
 0xe4a   :  { %v4480_v22 = vmul.f32 %v4462_v45, %v9627_v48  ;;  %v4460_v54 = vpop.permute.xlu1 %4459 }
 0xe4b   :  { %v4479_v50 = vmul.f32 %v4460_v54, %v9630_v28  ;;  %v4438_v54 = vmul.f32 %v9619_v63, %v9510_v62  ;;  %v4439_v62 = vmul.f32 %v9630_v28, %v9522_v33 }
 0xe4c   :  { %4501 = vrot.lane.b32.xlu0 %v4480_v22, %s8089_s26 }
 0xe4d   :  { %v4466_v25 = vpop.permute.xlu0 %4465  ;;  %4499 = vrot.lane.b32.xlu1 %v4479_v50, %s8089_s26 }
 0xe4e   :  { %v4482_v5 = vmul.f32 %v4466_v25, %v9635_v12  ;;  %v4464_v4 = vpop.permute.xlu1 %4463 }
 0xe4f   :  { %v4481_v39 = vmul.f32 %v4464_v4, %v9638_v17  ;;  %v4440_v4 = vmul.f32 %v9627_v48, %v9520_v57  ;;  %v4441_v57 = vmul.f32 %v9638_v17, %v9532_v46 }
 0xe50   :  { %4505 = vrot.lane.b32.xlu0 %v4482_v5, %s8089_s26 }
 0xe51   :  { %4503 = vrot.lane.b32.xlu1 %v4481_v39, %s8089_s26 }
 0xeb6   :  { %v4494_v56 = vpop.permute.xlu0 %4493 }
 0xeb7   :  { %v9648_v45 = vadd.f32 %v4494_v56, %v4436_v2  ;;  %v4492_v34 = vpop.permute.xlu1 %4491 }
 0xeb8   :  { %v9650_v22 = vadd.f32 %v4492_v34, %v4435_v55  ;;  %v4442_v55 = vmul.f32 %v9635_v12, %v9530_v47 }
 0xeb9   :  { %7915 = vtanh.f32 %v9648_v45 }
 0xeba   :  { %7917 = vtanh.f32 %v9650_v22  ;;  %v4498_v50 = vpop.permute.xlu0 %4497 }
 0xebb   :  { %v9658_v25 = vadd.f32 %v4498_v50, %v4438_v54  ;;  %v4496_v5 = vpop.permute.xlu1 %4495 }
 0xebc   :  { %v9660_v6 = vadd.f32 %v4496_v5, %v4437_v18 }
 0xebd   :  { %7919 = vtanh.f32 %v9658_v25 }
 0xebe   :  { %7921 = vtanh.f32 %v9660_v6  ;;  %v4502_v39 = vpop.permute.xlu0 %4501 }
 0xebf   :  { %v9668_v2 = vadd.f32 %v4502_v39, %v4440_v4  ;;  %v4500_v56 = vpop.permute.xlu1 %4499 }
 0xec0   :  { %v9670_v58 = vadd.f32 %v4500_v56, %v4439_v62 }
 0xec1   :  { %7923 = vtanh.f32 %v9668_v2 }
 0xec2   :  { %7925 = vtanh.f32 %v9670_v58  ;;  %v4506_v34 = vpop.permute.xlu0 %4505 }
 0xec3   :  { %v7916_v54 = vpop.eup %7915  ;;  %v9678_v50 = vadd.f32 %v4506_v34, %v4442_v55  ;;  %v4504_v33 = vpop.permute.xlu1 %4503 }
 0xec4   :  { %v7918_v18 = vpop.eup %7917  ;;  %v9680_v5 = vadd.f32 %v4504_v33, %v4441_v57  ;;  %4541 = vrot.lane.b32.xlu0 %v7916_v54, %s8088_s21 }
 0xec5   :  { %7927 = vtanh.f32 %v9678_v50  ;;  %4539 = vrot.lane.b32.xlu1 %v7918_v18, %s8088_s21 }
 0xec6   :  { %7929 = vtanh.f32 %v9680_v5 }
 0xec7   :  { %v7920_v47 = vpop.eup %7919 }
 0xec8   :  { %v7922_v4 = vpop.eup %7921  ;;  %4545 = vrot.lane.b32.xlu0 %v7920_v47, %s8088_s21 }
 0xec9   :  { %4543 = vrot.lane.b32.xlu1 %v7922_v4, %s8088_s21 }
 0xecb   :  { %v7924_v46 = vpop.eup %7923 }
 0xecc   :  { %v7926_v39 = vpop.eup %7925  ;;  %4549 = vrot.lane.b32.xlu0 %v7924_v46, %s8088_s21 }
 0xecd   :  { %4547 = vrot.lane.b32.xlu1 %v7926_v39, %s8088_s21 }
 0xecf   :  { %v7928_v62 = vpop.eup %7927 }
 0xed0   :  { %v7930_v56 = vpop.eup %7929  ;;  %4553 = vrot.lane.b32.xlu0 %v7928_v62, %s8088_s21 }
 0xed1   :  { %4551 = vrot.lane.b32.xlu1 %v7930_v56, %s8088_s21 }
 0xf36   :  { %v4542_v55 = vpop.permute.xlu0 %4541 }
 0xf37   :  { %v4564_v34 = vmul.f32 %v4542_v55, %v9612_v10  ;;  %v4540_v57 = vpop.permute.xlu1 %4539 }
 0xf38   :  { %v4563_v54 = vmul.f32 %v4540_v57, %v9614_v26 }
 0xf39   :  { %4581 = vrot.lane.b32.xlu0 %v4564_v34, %s8089_s26 }
 0xf3a   :  { %v4546_v33 = vpop.permute.xlu0 %4545  ;;  %4579 = vrot.lane.b32.xlu1 %v4563_v54, %s8089_s26 }
 0xf3b   :  { %v4566_v18 = vmul.f32 %v4546_v33, %v9619_v63  ;;  %v4544_v47 = vpop.permute.xlu1 %4543 }
 0xf3c   :  { %v4565_v4 = vmul.f32 %v4544_v47, %v9622_v24 }
 0xf3d   :  { %4585 = vrot.lane.b32.xlu0 %v4566_v18, %s8089_s26 }
 0xf3e   :  { %v4550_v46 = vpop.permute.xlu0 %4549  ;;  %4583 = vrot.lane.b32.xlu1 %v4565_v4, %s8089_s26 }
 0xf3f   :  { %v4568_v10 = vmul.f32 %v4550_v46, %v9627_v48  ;;  %v4548_v39 = vpop.permute.xlu1 %4547 }
 0xf40   :  { %v4567_v26 = vmul.f32 %v4548_v39, %v9630_v28 }
 0xf41   :  { %4589 = vrot.lane.b32.xlu0 %v4568_v10, %s8089_s26 }
 0xf42   :  { %v4554_v62 = vpop.permute.xlu0 %4553  ;;  %4587 = vrot.lane.b32.xlu1 %v4567_v26, %s8089_s26 }
 0xf43   :  { %v4570_v63 = vmul.f32 %v4554_v62, %v9635_v12  ;;  %v4552_v56 = vpop.permute.xlu1 %4551 }
 0xf44   :  { %v4569_v24 = vmul.f32 %v4552_v56, %v9638_v17 }
 0xf45   :  { %4593 = vrot.lane.b32.xlu0 %v4570_v63, %s8089_s26 }
 0xf46   :  { %4591 = vrot.lane.b32.xlu1 %v4569_v24, %s8089_s26 }
 0xfab   :  { %v9708_v55 = vpop.permute.xlu0 %4581 }
 0xfac   :  { %11106 = vst [vmem:[#allocation42_spill] sm:$0xff] %v9708_v55  ;;  %v9710_v48 = vpop.permute.xlu1 %4579 }
 0xfad   :  { %11107 = vst [vmem:[#allocation43_spill] sm:$0xff] %v9710_v48  ;;  %7123 = vmatprep.mubr.msk.f32.mxu1 %vm1457_vm7, %v9710_v48 }
 0xfae   :  { %7124 = vmatmul.mubr.msk.f32.vlgmr.msra.gmra.mrb[28].mxu1 %vm1457_vm7, %v9708_v55 }
 0xfaf   :  { %v9716_v28 = vpop.permute.xlu0 %4585  ;;  %7318 = vmatpush3.bf16.msra.mxu1 %v8758_v44 }
 0xfb0   :  { %11108 = vst [vmem:[#allocation44_spill] sm:$0xff] %v9716_v28  ;;  %v9719_v12 = vpop.permute.xlu1 %4583  ;;  %7320 = vmatprep.subr.bf16.mxu1 %v8800_v60 }
 0xfb1   :  { %11109 = vst [vmem:[#allocation45_spill] sm:$0xff] %v9719_v12  ;;  %7126 = vmatprep.mubr.msk.f32.mxu1 %vm1457_vm7, %v9719_v12 }
 0xfb2   :  { %7127 = vmatmul.mubr.msk.f32.gmra.mrb[30].mxu1 %vm1457_vm7, %v9716_v28 }
 0xfb3   :  { %v9726_v17 = vpop.permute.xlu0 %4589  ;;  %7322 = vmatpush3.bf16.msra.mxu1 %v8800_v60 }
 0xfb4   :  { %11110 = vst [vmem:[#allocation46_spill] sm:$0xff] %v9726_v17  ;;  %v9729_v34 = vpop.permute.xlu1 %4587  ;;  %7324 = vmatprep.subr.bf16.mxu1 %v8758_v44 }
 0xfb5   :  { %11111 = vst [vmem:[#allocation47_spill] sm:$0xff] %v9729_v34  ;;  %7129 = vmatprep.mubr.msk.f32.mxu1 %vm1457_vm7, %v9729_v34 }
 0xfb6   :  { %7130 = vmatmul.mubr.msk.f32.gmra.mrb[32].mxu1 %vm1457_vm7, %v9726_v17 }
 0xfb7   :  { %v9738_v54 = vpop.permute.xlu0 %4593 }
 0xfb8   :  { %v9736_v57 = vpop.permute.xlu1 %4591  ;;  %11113 = vst [vmem:[#allocation49_spill] sm:$0xff] %v9738_v54 }
 0xfb9   :  { %11112 = vst [vmem:[#allocation48_spill] sm:$0xff] %v9736_v57  ;;  %7132 = vmatprep.mubr.msk.f32.mxu1 %vm1457_vm7, %v9736_v57 }
 0xfba   :  { %7133 = vmatmul.mubr.msk.f32.gmra.mrb[34].mxu1 %vm1457_vm7, %v9738_v54 }
0x1081   :  { %v7125_v33 = vpop.f32.mrb[28].mxu1 }
0x1082   :  { %v7419_v18 = vadd.f32 %v9442_v53, %v7125_v33  ;;  %v4714_v47 = vpop.f32.mrb[29].mxu1 }
0x1083   :  { %v7420_v4 = vadd.f32 %v9442_v53, %v4714_v47 }
0x1084   :  { %7931 = vtanh.f32 %v7419_v18 }
0x1085   :  { %7933 = vtanh.f32 %v7420_v4  ;;  %v7128_v46 = vpop.f32.mrb[30].mxu1 }
0x1086   :  { %v7421_v10 = vadd.f32 %v9442_v53, %v7128_v46  ;;  %v4724_v39 = vpop.f32.mrb[31].mxu1 }
0x1087   :  { %v7422_v26 = vadd.f32 %v9442_v53, %v4724_v39 }
0x1088   :  { %7935 = vtanh.f32 %v7421_v10 }
0x1089   :  { %7937 = vtanh.f32 %v7422_v26  ;;  %v7131_v62 = vpop.f32.mrb[32].mxu1 }
0x108a   :  { %v7423_v63 = vadd.f32 %v9442_v53, %v7131_v62  ;;  %v4734_v56 = vpop.f32.mrb[33].mxu1 }
0x108b   :  { %v7424_v24 = vadd.f32 %v9442_v53, %v4734_v56 }
0x108c   :  { %7939 = vtanh.f32 %v7423_v63 }
0x108d   :  { %7941 = vtanh.f32 %v7424_v24  ;;  %v7134_v33 = vpop.f32.mrb[34].mxu1  ;;  %v4765_v12 = vmul.f32 0.5, %v7424_v24 }
0x108e   :  { %v7932_v47 = vpop.eup %7931  ;;  %v7425_v54 = vadd.f32 %v9442_v53, %v7134_v33  ;;  %v4744_v57 = vpop.f32.mrb[35].mxu1 }
0x108f   :  { %v7934_v17 = vpop.eup %7933  ;;  %v7426_v46 = vadd.f32 %v9442_v53, %v4744_v57  ;;  %4819 = vrot.lane.b32.xlu0 %v7932_v47, %s8088_s21  ;;  %v4761_v57 = vmul.f32 0.5, %v7420_v4  ;;  %v4764_v47 = vmul.f32 0.5, %v7421_v10 }
0x1090   :  { %7943 = vtanh.f32 %v7425_v54  ;;  %4817 = vrot.lane.b32.xlu1 %v7934_v17, %s8088_s21  ;;  %v4762_v17 = vmul.f32 0.5, %v7419_v18 }
0x1091   :  { %7945 = vtanh.f32 %v7426_v46 }
0x1092   :  { %v7936_v39 = vpop.eup %7935  ;;  %7947 = vtanh.f32 %v4762_v17 }
0x1093   :  { %v7938_v62 = vpop.eup %7937  ;;  %4823 = vrot.lane.b32.xlu0 %v7936_v39, %s8088_s21  ;;  %7949 = vtanh.f32 %v4761_v57  ;;  %v4763_v39 = vmul.f32 0.5, %v7422_v26 }
0x1094   :  { %4821 = vrot.lane.b32.xlu1 %v7938_v62, %s8088_s21  ;;  %7951 = vtanh.f32 %v4764_v47  ;;  %v4766_v62 = vmul.f32 0.5, %v7423_v63 }
0x1095   :  { %7953 = vtanh.f32 %v4763_v39 }
0x1096   :  { %v7940_v56 = vpop.eup %7939  ;;  %7955 = vtanh.f32 %v4766_v62 }
0x1097   :  { %v7942_v34 = vpop.eup %7941  ;;  %4827 = vrot.lane.b32.xlu0 %v7940_v56, %s8088_s21  ;;  %v4768_v56 = vmul.f32 0.5, %v7425_v54  ;;  %7957 = vtanh.f32 %v4765_v12 }
0x1098   :  { %4825 = vrot.lane.b32.xlu1 %v7942_v34, %s8088_s21  ;;  %v4767_v34 = vmul.f32 0.5, %v7426_v46 }
0x1099   :  { %7959 = vtanh.f32 %v4768_v56 }
0x109a   :  { %v7944_v33 = vpop.eup %7943  ;;  %7961 = vtanh.f32 %v4767_v34 }
0x109b   :  { %v7946_v53 = vpop.eup %7945  ;;  %4831 = vrot.lane.b32.xlu0 %v7944_v33, %s8088_s21 }
0x109c   :  { %4829 = vrot.lane.b32.xlu1 %v7946_v53, %s8088_s21  ;;  %v7948_v28 = vpop.eup %7947 }
0x109d   :  { %v7950_v42 = vpop.eup %7949  ;;  %v4778_v33 = vmul.f32 0.5, %v7948_v28 }
0x109e   :  { %v7952_v53 = vpop.eup %7951  ;;  %v4777_v18 = vmul.f32 0.5, %v7950_v42 }
0x109f   :  { %v7954_v4 = vpop.eup %7953  ;;  %v4780_v17 = vmul.f32 0.5, %v7952_v53  ;;  %v9760_v10 = vadd.f32 0.5, %v4778_v33 }
0x10a0   :  { %v7956_v26 = vpop.eup %7955  ;;  %v4779_v57 = vmul.f32 0.5, %v7954_v4  ;;  %v9762_v47 = vadd.f32 0.5, %v4777_v18 }
0x10a1   :  { %v7958_v24 = vpop.eup %7957  ;;  %v4782_v39 = vmul.f32 0.5, %v7956_v26  ;;  %v9767_v28 = vadd.f32 0.5, %v4780_v17 }
0x10a2   :  { %v4781_v62 = vmul.f32 0.5, %v7958_v24  ;;  %v9770_v34 = vadd.f32 0.5, %v4779_v57 }
0x10a3   :  { %v7960_v42 = vpop.eup %7959  ;;  %v9775_v26 = vadd.f32 0.5, %v4782_v39 }
0x10a4   :  { %v7962_v33 = vpop.eup %7961  ;;  %v9778_v24 = vadd.f32 0.5, %v4781_v62 }
0x10a5   :  { %v4783_v17 = vmul.f32 0.5, %v7962_v33 }
0x10a7   :  { %v9786_v39 = vadd.f32 0.5, %v4783_v17 }
0x1101   :  { %v4820_v63 = vpop.permute.xlu0 %4819 }
0x1102   :  { %v4842_v12 = vmul.f32 %v4820_v63, %v9760_v10  ;;  %v4818_v54 = vpop.permute.xlu1 %4817  ;;  %v4784_v63 = vmul.f32 0.5, %v7960_v42 }
0x1103   :  { %v4841_v46 = vmul.f32 %v4818_v54, %v9762_v47 }
0x1104   :  { %4859 = vrot.lane.b32.xlu0 %v4842_v12, %s8089_s26 }
0x1105   :  { %v4824_v56 = vpop.permute.xlu0 %4823  ;;  %4857 = vrot.lane.b32.xlu1 %v4841_v46, %s8089_s26 }
0x1106   :  { %v4844_v53 = vmul.f32 %v4824_v56, %v9767_v28  ;;  %v4822_v18 = vpop.permute.xlu1 %4821  ;;  %v9783_v56 = vadd.f32 0.5, %v4784_v63  ;;  %v4801_v63 = vmul.f32 %v9762_v47, %v9650_v22 }
0x1107   :  { %v4843_v4 = vmul.f32 %v4822_v18, %v9770_v34  ;;  %v4802_v18 = vmul.f32 %v9760_v10, %v9648_v45  ;;  %v4803_v45 = vmul.f32 %v9770_v34, %v9660_v6 }
0x1108   :  { %4863 = vrot.lane.b32.xlu0 %v4844_v53, %s8089_s26 }
0x1109   :  { %v4828_v12 = vpop.permute.xlu0 %4827  ;;  %4861 = vrot.lane.b32.xlu1 %v4843_v4, %s8089_s26 }
0x110a   :  { %v4846_v57 = vmul.f32 %v4828_v12, %v9775_v26  ;;  %v4826_v54 = vpop.permute.xlu1 %4825 }
0x110b   :  { %v4845_v46 = vmul.f32 %v4826_v54, %v9778_v24  ;;  %v4804_v54 = vmul.f32 %v9767_v28, %v9658_v25  ;;  %v4805_v25 = vmul.f32 %v9778_v24, %v9670_v58 }
0x110c   :  { %4867 = vrot.lane.b32.xlu0 %v4846_v57, %s8089_s26 }
0x110d   :  { %v4832_v42 = vpop.permute.xlu0 %4831  ;;  %4865 = vrot.lane.b32.xlu1 %v4845_v46, %s8089_s26 }
0x110e   :  { %v4848_v33 = vmul.f32 %v4832_v42, %v9783_v56  ;;  %v4830_v53 = vpop.permute.xlu1 %4829 }
0x110f   :  { %v4847_v62 = vmul.f32 %v4830_v53, %v9786_v39  ;;  %v4806_v53 = vmul.f32 %v9775_v26, %v9668_v2  ;;  %v4807_v2 = vmul.f32 %v9786_v39, %v9680_v5 }
0x1110   :  { %4871 = vrot.lane.b32.xlu0 %v4848_v33, %s8089_s26 }
0x1111   :  { %4869 = vrot.lane.b32.xlu1 %v4847_v62, %s8089_s26 }
0x1176   :  { %v4860_v4 = vpop.permute.xlu0 %4859 }
0x1177   :  { %v9796_v12 = vadd.f32 %v4860_v4, %v4802_v18  ;;  %v4858_v17 = vpop.permute.xlu1 %4857 }
0x1178   :  { %v9798_v57 = vadd.f32 %v4858_v17, %v4801_v63  ;;  %v4808_v63 = vmul.f32 %v9783_v56, %v9678_v50 }
0x1179   :  { %7963 = vtanh.f32 %v9796_v12 }
0x117a   :  { %7965 = vtanh.f32 %v9798_v57  ;;  %v4864_v46 = vpop.permute.xlu0 %4863 }
0x117b   :  { %v9806_v42 = vadd.f32 %v4864_v46, %v4804_v54  ;;  %v4862_v33 = vpop.permute.xlu1 %4861 }
0x117c   :  { %v9808_v22 = vadd.f32 %v4862_v33, %v4803_v45 }
0x117d   :  { %7967 = vtanh.f32 %v9806_v42 }
0x117e   :  { %7969 = vtanh.f32 %v9808_v22  ;;  %v4868_v62 = vpop.permute.xlu0 %4867 }
0x117f   :  { %v9816_v18 = vadd.f32 %v4868_v62, %v4806_v53  ;;  %v4866_v4 = vpop.permute.xlu1 %4865 }
0x1180   :  { %v9818_v6 = vadd.f32 %v4866_v4, %v4805_v25 }
0x1181   :  { %7971 = vtanh.f32 %v9816_v18 }
0x1182   :  { %7973 = vtanh.f32 %v9818_v6  ;;  %v4872_v17 = vpop.permute.xlu0 %4871 }
0x1183   :  { %v7964_v54 = vpop.eup %7963  ;;  %v9826_v46 = vadd.f32 %v4872_v17, %v4808_v63  ;;  %v4870_v58 = vpop.permute.xlu1 %4869 }
0x1184   :  { %v7966_v45 = vpop.eup %7965  ;;  %v9828_v33 = vadd.f32 %v4870_v58, %v4807_v2  ;;  %4907 = vrot.lane.b32.xlu0 %v7964_v54, %s8088_s21 }
0x1185   :  { %7975 = vtanh.f32 %v9826_v46  ;;  %4905 = vrot.lane.b32.xlu1 %v7966_v45, %s8088_s21 }
0x1186   :  { %7977 = vtanh.f32 %v9828_v33 }
0x1187   :  { %v7968_v50 = vpop.eup %7967 }
0x1188   :  { %v7970_v53 = vpop.eup %7969  ;;  %4911 = vrot.lane.b32.xlu0 %v7968_v50, %s8088_s21 }
0x1189   :  { %4909 = vrot.lane.b32.xlu1 %v7970_v53, %s8088_s21 }
0x118b   :  { %v7972_v5 = vpop.eup %7971 }
0x118c   :  { %v7974_v62 = vpop.eup %7973  ;;  %4915 = vrot.lane.b32.xlu0 %v7972_v5, %s8088_s21 }
0x118d   :  { %4913 = vrot.lane.b32.xlu1 %v7974_v62, %s8088_s21 }
0x118f   :  { %v7976_v25 = vpop.eup %7975 }
0x1190   :  { %v7978_v4 = vpop.eup %7977  ;;  %4919 = vrot.lane.b32.xlu0 %v7976_v25, %s8088_s21 }
0x1191   :  { %4917 = vrot.lane.b32.xlu1 %v7978_v4, %s8088_s21 }
0x11f6   :  { %v4908_v63 = vpop.permute.xlu0 %4907 }
0x11f7   :  { %v4930_v17 = vmul.f32 %v4908_v63, %v9760_v10  ;;  %v4906_v2 = vpop.permute.xlu1 %4905 }
0x11f8   :  { %v4929_v54 = vmul.f32 %v4906_v2, %v9762_v47 }
0x11f9   :  { %4947 = vrot.lane.b32.xlu0 %v4930_v17, %s8089_s26 }
0x11fa   :  { %v4912_v58 = vpop.permute.xlu0 %4911  ;;  %4945 = vrot.lane.b32.xlu1 %v4929_v54, %s8089_s26 }
0x11fb   :  { %v4932_v45 = vmul.f32 %v4912_v58, %v9767_v28  ;;  %v4910_v50 = vpop.permute.xlu1 %4909 }
0x11fc   :  { %v4931_v53 = vmul.f32 %v4910_v50, %v9770_v34 }
0x11fd   :  { %4951 = vrot.lane.b32.xlu0 %v4932_v45, %s8089_s26 }
0x11fe   :  { %v4916_v5 = vpop.permute.xlu0 %4915  ;;  %4949 = vrot.lane.b32.xlu1 %v4931_v53, %s8089_s26 }
0x11ff   :  { %v4934_v10 = vmul.f32 %v4916_v5, %v9775_v26  ;;  %v4914_v62 = vpop.permute.xlu1 %4913 }
0x1200   :  { %v4933_v47 = vmul.f32 %v4914_v62, %v9778_v24 }
0x1201   :  { %4955 = vrot.lane.b32.xlu0 %v4934_v10, %s8089_s26 }
0x1202   :  { %v4920_v25 = vpop.permute.xlu0 %4919  ;;  %4953 = vrot.lane.b32.xlu1 %v4933_v47, %s8089_s26 }
0x1203   :  { %v4936_v28 = vmul.f32 %v4920_v25, %v9783_v56  ;;  %v4918_v4 = vpop.permute.xlu1 %4917 }
0x1204   :  { %v4935_v34 = vmul.f32 %v4918_v4, %v9786_v39 }
0x1205   :  { %4959 = vrot.lane.b32.xlu0 %v4936_v28, %s8089_s26 }
0x1206   :  { %4957 = vrot.lane.b32.xlu1 %v4935_v34, %s8089_s26 }
0x126b   :  { %v9856_v63 = vpop.permute.xlu0 %4947 }
0x126c   :  { %11114 = vst [vmem:[#allocation50_spill] sm:$0xff] %v9856_v63  ;;  %v9858_v26 = vpop.permute.xlu1 %4945 }
0x126d   :  { %11115 = vst [vmem:[#allocation51_spill] sm:$0xff] %v9858_v26  ;;  %7143 = vmatprep.mubr.msk.f32.mxu1 %vm1457_vm7, %v9858_v26 }
0x126e   :  { %7144 = vmatmul.mubr.msk.f32.vlgmr.msra.gmra.mrb[36].mxu1 %vm1457_vm7, %v9856_v63 }
0x126f   :  { %v9864_v24 = vpop.permute.xlu0 %4951  ;;  %7326 = vmatpush3.bf16.msra.mxu1 %v8758_v44 }
0x1270   :  { %11116 = vst [vmem:[#allocation52_spill] sm:$0xff] %v9864_v24  ;;  %v9867_v56 = vpop.permute.xlu1 %4949  ;;  %7328 = vmatprep.subr.bf16.mxu1 %v8800_v60 }
0x1271   :  { %11117 = vst [vmem:[#allocation53_spill] sm:$0xff] %v9867_v56  ;;  %7146 = vmatprep.mubr.msk.f32.mxu1 %vm1457_vm7, %v9867_v56 }
0x1272   :  { %7147 = vmatmul.mubr.msk.f32.gmra.mrb[38].mxu1 %vm1457_vm7, %v9864_v24 }
0x1273   :  { %v9874_v39 = vpop.permute.xlu0 %4955  ;;  %7330 = vmatpush3.bf16.msra.mxu1 %v8800_v60  ;;  %v9894_v60 = vld [vmem:[%s10999_s3 + $0x40] ss:$0 sm:$0xff] }
0x1274   :  { %11118 = vst [vmem:[#allocation54_spill] sm:$0xff] %v9874_v39  ;;  %v9877_v17 = vpop.permute.xlu1 %4953 }
0x1275   :  { %11119 = vst [vmem:[#allocation55_spill] sm:$0xff] %v9877_v17  ;;  %7149 = vmatprep.mubr.msk.f32.mxu1 %vm1457_vm7, %v9877_v17 }
0x1276   :  { %7150 = vmatmul.mubr.msk.f32.gmra.mrb[40].mxu1 %vm1457_vm7, %v9874_v39 }
0x1277   :  { %v9885_v2 = vpop.permute.xlu0 %4959 }
0x1278   :  { %v9883_v44 = vpop.permute.xlu1 %4957  ;;  %11121 = vst [vmem:[#allocation57_spill] sm:$0xff] %v9885_v2 }
0x1279   :  { %11120 = vst [vmem:[#allocation56_spill] sm:$0xff] %v9883_v44  ;;  %7152 = vmatprep.mubr.msk.f32.mxu1 %vm1457_vm7, %v9883_v44 }
0x127a   :  { %7153 = vmatmul.mubr.msk.f32.gmra.mrb[42].mxu1 %vm1457_vm7, %v9885_v2 }
0x1341   :  { %v7145_v54 = vpop.f32.mrb[36].mxu1 }
0x1342   :  { %v7427_v58 = vadd.f32 %v9894_v60, %v7145_v54  ;;  %v5080_v45 = vpop.f32.mrb[37].mxu1 }
0x1343   :  { %v7428_v50 = vadd.f32 %v9894_v60, %v5080_v45 }
0x1344   :  { %7979 = vtanh.f32 %v7427_v58 }
0x1345   :  { %7981 = vtanh.f32 %v7428_v50  ;;  %v7148_v53 = vpop.f32.mrb[38].mxu1 }
0x1346   :  { %v7429_v5 = vadd.f32 %v9894_v60, %v7148_v53  ;;  %v5090_v10 = vpop.f32.mrb[39].mxu1 }
0x1347   :  { %v7430_v62 = vadd.f32 %v9894_v60, %v5090_v10 }
0x1348   :  { %7983 = vtanh.f32 %v7429_v5  ;;  %v5130_v17 = vmul.f32 0.5, %v7429_v5 }
0x1349   :  { %7985 = vtanh.f32 %v7430_v62  ;;  %v7151_v47 = vpop.f32.mrb[40].mxu1 }
0x134a   :  { %v7431_v25 = vadd.f32 %v9894_v60, %v7151_v47  ;;  %v5100_v28 = vpop.f32.mrb[41].mxu1 }
0x134b   :  { %v7432_v4 = vadd.f32 %v9894_v60, %v5100_v28 }
0x134c   :  { %7987 = vtanh.f32 %v7431_v25 }
0x134d   :  { %7989 = vtanh.f32 %v7432_v4  ;;  %v7154_v34 = vpop.f32.mrb[42].mxu1  ;;  %v5131_v24 = vmul.f32 0.5, %v7432_v4 }
0x134e   :  { %v7980_v54 = vpop.eup %7979  ;;  %v7433_v45 = vadd.f32 %v9894_v60, %v7154_v34  ;;  %v5110_v2 = vpop.f32.mrb[43].mxu1 }
0x134f   :  { %v7982_v44 = vpop.eup %7981  ;;  %v7434_v53 = vadd.f32 %v9894_v60, %v5110_v2  ;;  %5185 = vrot.lane.b32.xlu0 %v7980_v54, %s8088_s21  ;;  %v5127_v54 = vmul.f32 0.5, %v7428_v50 }
0x1350   :  { %7991 = vtanh.f32 %v7433_v45  ;;  %5183 = vrot.lane.b32.xlu1 %v7982_v44, %s8088_s21  ;;  %v5128_v44 = vmul.f32 0.5, %v7427_v58 }
0x1351   :  { %7993 = vtanh.f32 %v7434_v53 }
0x1352   :  { %v7984_v10 = vpop.eup %7983  ;;  %7995 = vtanh.f32 %v5128_v44 }
0x1353   :  { %v7986_v47 = vpop.eup %7985  ;;  %5189 = vrot.lane.b32.xlu0 %v7984_v10, %s8088_s21  ;;  %7997 = vtanh.f32 %v5127_v54  ;;  %v5129_v10 = vmul.f32 0.5, %v7430_v62 }
0x1354   :  { %5187 = vrot.lane.b32.xlu1 %v7986_v47, %s8088_s21  ;;  %7999 = vtanh.f32 %v5130_v17  ;;  %v5132_v47 = vmul.f32 0.5, %v7431_v25 }
0x1355   :  { %8001 = vtanh.f32 %v5129_v10 }
0x1356   :  { %v7988_v28 = vpop.eup %7987  ;;  %8003 = vtanh.f32 %v5132_v47 }
0x1357   :  { %v7990_v39 = vpop.eup %7989  ;;  %5193 = vrot.lane.b32.xlu0 %v7988_v28, %s8088_s21  ;;  %v5134_v28 = vmul.f32 0.5, %v7433_v45  ;;  %8005 = vtanh.f32 %v5131_v24 }
0x1358   :  { %5191 = vrot.lane.b32.xlu1 %v7990_v39, %s8088_s21  ;;  %v5133_v39 = vmul.f32 0.5, %v7434_v53 }
0x1359   :  { %8007 = vtanh.f32 %v5134_v28 }
0x135a   :  { %v7992_v34 = vpop.eup %7991  ;;  %8009 = vtanh.f32 %v5133_v39 }
0x135b   :  { %v7994_v2 = vpop.eup %7993  ;;  %5197 = vrot.lane.b32.xlu0 %v7992_v34, %s8088_s21 }
0x135c   :  { %5195 = vrot.lane.b32.xlu1 %v7994_v2, %s8088_s21  ;;  %v7996_v56 = vpop.eup %7995 }
0x135d   :  { %v7998_v26 = vpop.eup %7997  ;;  %v5144_v34 = vmul.f32 0.5, %v7996_v56 }
0x135e   :  { %v8000_v2 = vpop.eup %7999  ;;  %v5143_v58 = vmul.f32 0.5, %v7998_v26 }
0x135f   :  { %v8002_v50 = vpop.eup %8001  ;;  %v5146_v44 = vmul.f32 0.5, %v8000_v2  ;;  %v9912_v5 = vadd.f32 0.5, %v5144_v34 }
0x1360   :  { %v8004_v62 = vpop.eup %8003  ;;  %v5145_v17 = vmul.f32 0.5, %v8002_v50  ;;  %v9914_v54 = vadd.f32 0.5, %v5143_v58 }
0x1361   :  { %v8006_v4 = vpop.eup %8005  ;;  %v5148_v10 = vmul.f32 0.5, %v8004_v62  ;;  %v9919_v56 = vadd.f32 0.5, %v5146_v44 }
0x1362   :  { %v5147_v47 = vmul.f32 0.5, %v8006_v4  ;;  %v9922_v39 = vadd.f32 0.5, %v5145_v17 }
0x1363   :  { %v8008_v26 = vpop.eup %8007  ;;  %v9927_v62 = vadd.f32 0.5, %v5148_v10 }
0x1364   :  { %v8010_v34 = vpop.eup %8009  ;;  %v9930_v4 = vadd.f32 0.5, %v5147_v47 }
0x1365   :  { %v5149_v44 = vmul.f32 0.5, %v8010_v34 }
0x1367   :  { %v9938_v10 = vadd.f32 0.5, %v5149_v44 }
0x13c1   :  { %v5186_v25 = vpop.permute.xlu0 %5185 }
0x13c2   :  { %v5208_v24 = vmul.f32 %v5186_v25, %v9912_v5  ;;  %v5184_v45 = vpop.permute.xlu1 %5183  ;;  %v5150_v25 = vmul.f32 0.5, %v8008_v26 }
0x13c3   :  { %v5207_v53 = vmul.f32 %v5184_v45, %v9914_v54 }
0x13c4   :  { %5225 = vrot.lane.b32.xlu0 %v5208_v24, %s8089_s26 }
0x13c5   :  { %v5190_v28 = vpop.permute.xlu0 %5189  ;;  %5223 = vrot.lane.b32.xlu1 %v5207_v53, %s8089_s26 }
0x13c6   :  { %v5210_v2 = vmul.f32 %v5190_v28, %v9919_v56  ;;  %v5188_v58 = vpop.permute.xlu1 %5187  ;;  %v9935_v28 = vadd.f32 0.5, %v5150_v25  ;;  %v5167_v25 = vmul.f32 %v9914_v54, %v9798_v57 }
0x13c7   :  { %v5209_v50 = vmul.f32 %v5188_v58, %v9922_v39  ;;  %v5168_v58 = vmul.f32 %v9912_v5, %v9796_v12  ;;  %v5169_v12 = vmul.f32 %v9922_v39, %v9808_v22 }
0x13c8   :  { %5229 = vrot.lane.b32.xlu0 %v5210_v2, %s8089_s26 }
0x13c9   :  { %v5194_v24 = vpop.permute.xlu0 %5193  ;;  %5227 = vrot.lane.b32.xlu1 %v5209_v50, %s8089_s26 }
0x13ca   :  { %v5212_v17 = vmul.f32 %v5194_v24, %v9927_v62  ;;  %v5192_v45 = vpop.permute.xlu1 %5191 }
0x13cb   :  { %v5211_v53 = vmul.f32 %v5192_v45, %v9930_v4  ;;  %v5170_v45 = vmul.f32 %v9919_v56, %v9806_v42  ;;  %v5171_v42 = vmul.f32 %v9930_v4, %v9818_v6 }
0x13cc   :  { %5233 = vrot.lane.b32.xlu0 %v5212_v17, %s8089_s26 }
0x13cd   :  { %v5198_v26 = vpop.permute.xlu0 %5197  ;;  %5231 = vrot.lane.b32.xlu1 %v5211_v53, %s8089_s26 }
0x13ce   :  { %v5214_v34 = vmul.f32 %v5198_v26, %v9935_v28  ;;  %v5196_v2 = vpop.permute.xlu1 %5195 }
0x13cf   :  { %v5213_v47 = vmul.f32 %v5196_v2, %v9938_v10  ;;  %v5172_v2 = vmul.f32 %v9927_v62, %v9816_v18  ;;  %v5173_v18 = vmul.f32 %v9938_v10, %v9828_v33 }
0x13d0   :  { %5237 = vrot.lane.b32.xlu0 %v5214_v34, %s8089_s26 }
0x13d1   :  { %5235 = vrot.lane.b32.xlu1 %v5213_v47, %s8089_s26 }
0x1436   :  { %v5226_v50 = vpop.permute.xlu0 %5225 }
0x1437   :  { %v9948_v24 = vadd.f32 %v5226_v50, %v5168_v58  ;;  %v5224_v44 = vpop.permute.xlu1 %5223 }
0x1438   :  { %v9950_v17 = vadd.f32 %v5224_v44, %v5167_v25  ;;  %v5174_v25 = vmul.f32 %v9935_v28, %v9826_v46 }
0x1439   :  { %8011 = vtanh.f32 %v9948_v24 }
0x143a   :  { %8013 = vtanh.f32 %v9950_v17  ;;  %v5230_v53 = vpop.permute.xlu0 %5229 }
0x143b   :  { %v9958_v26 = vadd.f32 %v5230_v53, %v5170_v45  ;;  %v5228_v34 = vpop.permute.xlu1 %5227 }
0x143c   :  { %v9960_v57 = vadd.f32 %v5228_v34, %v5169_v12 }
0x143d   :  { %8015 = vtanh.f32 %v9958_v26 }
0x143e   :  { %8017 = vtanh.f32 %v9960_v57  ;;  %v5234_v47 = vpop.permute.xlu0 %5233 }
0x143f   :  { %v9968_v58 = vadd.f32 %v5234_v47, %v5172_v2  ;;  %v5232_v50 = vpop.permute.xlu1 %5231 }
0x1440   :  { %v9970_v22 = vadd.f32 %v5232_v50, %v5171_v42 }
0x1441   :  { %8019 = vtanh.f32 %v9968_v58 }
0x1442   :  { %8021 = vtanh.f32 %v9970_v22  ;;  %v5238_v44 = vpop.permute.xlu0 %5237 }
0x1443   :  { %v8012_v45 = vpop.eup %8011  ;;  %v9978_v53 = vadd.f32 %v5238_v44, %v5174_v25  ;;  %v5236_v6 = vpop.permute.xlu1 %5235 }
0x1444   :  { %v8014_v12 = vpop.eup %8013  ;;  %v9980_v34 = vadd.f32 %v5236_v6, %v5173_v18  ;;  %5273 = vrot.lane.b32.xlu0 %v8012_v45, %s8088_s21 }
0x1445   :  { %8023 = vtanh.f32 %v9978_v53  ;;  %5271 = vrot.lane.b32.xlu1 %v8014_v12, %s8088_s21 }
0x1446   :  { %8025 = vtanh.f32 %v9980_v34 }
0x1447   :  { %v8016_v46 = vpop.eup %8015 }
0x1448   :  { %v8018_v2 = vpop.eup %8017  ;;  %5277 = vrot.lane.b32.xlu0 %v8016_v46, %s8088_s21 }
0x1449   :  { %5275 = vrot.lane.b32.xlu1 %v8018_v2, %s8088_s21 }
0x144b   :  { %v8020_v33 = vpop.eup %8019 }
0x144c   :  { %v8022_v47 = vpop.eup %8021  ;;  %5281 = vrot.lane.b32.xlu0 %v8020_v33, %s8088_s21 }
0x144d   :  { %5279 = vrot.lane.b32.xlu1 %v8022_v47, %s8088_s21 }
0x144f   :  { %v8024_v42 = vpop.eup %8023 }
0x1450   :  { %v8026_v50 = vpop.eup %8025  ;;  %5285 = vrot.lane.b32.xlu0 %v8024_v42, %s8088_s21 }
0x1451   :  { %5283 = vrot.lane.b32.xlu1 %v8026_v50, %s8088_s21 }
0x14b6   :  { %v5274_v25 = vpop.permute.xlu0 %5273 }
0x14b7   :  { %v5296_v44 = vmul.f32 %v5274_v25, %v9912_v5  ;;  %v5272_v18 = vpop.permute.xlu1 %5271 }
0x14b8   :  { %v5295_v45 = vmul.f32 %v5272_v18, %v9914_v54 }
0x14b9   :  { %5313 = vrot.lane.b32.xlu0 %v5296_v44, %s8089_s26 }
0x14ba   :  { %v5278_v6 = vpop.permute.xlu0 %5277  ;;  %5311 = vrot.lane.b32.xlu1 %v5295_v45, %s8089_s26 }
0x14bb   :  { %v5298_v12 = vmul.f32 %v5278_v6, %v9919_v56  ;;  %v5276_v46 = vpop.permute.xlu1 %5275 }
0x14bc   :  { %v5297_v2 = vmul.f32 %v5276_v46, %v9922_v39 }
0x14bd   :  { %5317 = vrot.lane.b32.xlu0 %v5298_v12, %s8089_s26 }
0x14be   :  { %v5282_v33 = vpop.permute.xlu0 %5281  ;;  %5315 = vrot.lane.b32.xlu1 %v5297_v2, %s8089_s26 }
0x14bf   :  { %v5300_v5 = vmul.f32 %v5282_v33, %v9927_v62  ;;  %v5280_v47 = vpop.permute.xlu1 %5279 }
0x14c0   :  { %v5299_v54 = vmul.f32 %v5280_v47, %v9930_v4 }
0x14c1   :  { %5321 = vrot.lane.b32.xlu0 %v5300_v5, %s8089_s26 }
0x14c2   :  { %v5286_v42 = vpop.permute.xlu0 %5285  ;;  %5319 = vrot.lane.b32.xlu1 %v5299_v54, %s8089_s26 }
0x14c3   :  { %v5302_v56 = vmul.f32 %v5286_v42, %v9935_v28  ;;  %v5284_v50 = vpop.permute.xlu1 %5283 }
0x14c4   :  { %v5301_v39 = vmul.f32 %v5284_v50, %v9938_v10 }
0x14c5   :  { %5325 = vrot.lane.b32.xlu0 %v5302_v56, %s8089_s26 }
0x14c6   :  { %5323 = vrot.lane.b32.xlu1 %v5301_v39, %s8089_s26 }
0x152b   :  { %v10008_v25 = vpop.permute.xlu0 %5313 }
0x152c   :  { %11122 = vst [vmem:[#allocation58_spill] sm:$0xff] %v10008_v25  ;;  %v10010_v62 = vpop.permute.xlu1 %5311 }
0x152d   :  { %11123 = vst [vmem:[#allocation59_spill] sm:$0xff] %v10010_v62  ;;  %7163 = vmatprep.mubr.msk.f32.mxu1 %vm1457_vm7, %v10010_v62 }
0x152e   :  { %7164 = vmatmul.mubr.msk.f32.vlgmr.msra.gmra.mrb[44].mxu1 %vm1457_vm7, %v10008_v25 }
0x152f   :  { %v10016_v4 = vpop.permute.xlu0 %5317 }
0x1530   :  { %11124 = vst [vmem:[#allocation60_spill] sm:$0xff] %v10016_v4  ;;  %v10018_v28 = vpop.permute.xlu1 %5315 }
0x1531   :  { %11125 = vst [vmem:[#allocation61_spill] sm:$0xff] %v10018_v28  ;;  %7166 = vmatprep.mubr.msk.f32.mxu1 %vm1457_vm7, %v10018_v28 }
0x1532   :  { %7167 = vmatmul.mubr.msk.f32.gmra.mrb[46].mxu1 %vm1457_vm7, %v10016_v4 }
0x1533   :  { %v10024_v10 = vpop.permute.xlu0 %5321 }
0x1534   :  { %11126 = vst [vmem:[#allocation62_spill] sm:$0xff] %v10024_v10  ;;  %v10026_v44 = vpop.permute.xlu1 %5319 }
0x1535   :  { %11127 = vst [vmem:[#allocation63_spill] sm:$0xff] %v10026_v44  ;;  %7169 = vmatprep.mubr.msk.f32.mxu1 %vm1457_vm7, %v10026_v44 }
0x1536   :  { %7170 = vmatmul.mubr.msk.f32.gmra.mrb[48].mxu1 %vm1457_vm7, %v10024_v10 }
0x1537   :  { %v10034_v45 = vpop.permute.xlu0 %5325 }
0x1538   :  { %v10032_v18 = vpop.permute.xlu1 %5323  ;;  %11129 = vst [vmem:[#allocation65_spill] sm:$0xff] %v10034_v45 }
0x1539   :  { %11128 = vst [vmem:[#allocation64_spill] sm:$0xff] %v10032_v18  ;;  %7172 = vmatprep.mubr.msk.f32.mxu1 %vm1457_vm7, %v10032_v18 }
0x153a   :  { %7173 = vmatmul.mubr.msk.f32.gmra.mrb[50].mxu1 %vm1457_vm7, %v10034_v45 }
0x1601   :  { %v7165_v6 = vpop.f32.mrb[44].mxu1 }
0x1602   :  { %v10041_v12 = vadd.f32 %v9894_v60, %v7165_v6  ;;  %v5446_v46 = vpop.f32.mrb[45].mxu1 }
0x1603   :  { %v10044_v2 = vadd.f32 %v9894_v60, %v5446_v46 }
0x1604   :  { %8027 = vtanh.f32 %v10041_v12  ;;  %v5494_v61 = vmul.f32 0.5, %v10041_v12 }
0x1605   :  { %8029 = vtanh.f32 %v10044_v2  ;;  %v7168_v33 = vpop.f32.mrb[46].mxu1  ;;  %v5493_v15 = vmul.f32 0.5, %v10044_v2 }
0x1606   :  { %v10049_v5 = vadd.f32 %v9894_v60, %v7168_v33  ;;  %v5456_v47 = vpop.f32.mrb[47].mxu1 }
0x1607   :  { %v10052_v54 = vadd.f32 %v9894_v60, %v5456_v47 }
0x1608   :  { %8031 = vtanh.f32 %v10049_v5  ;;  %v5496_v35 = vmul.f32 0.5, %v10049_v5 }
0x1609   :  { %8033 = vtanh.f32 %v10052_v54  ;;  %v7171_v42 = vpop.f32.mrb[48].mxu1  ;;  %v5495_v1 = vmul.f32 0.5, %v10052_v54 }
0x160a   :  { %v10057_v56 = vadd.f32 %v9894_v60, %v7171_v42  ;;  %v5466_v50 = vpop.f32.mrb[49].mxu1 }
0x160b   :  { %v10060_v39 = vadd.f32 %v9894_v60, %v5466_v50  ;;  %v8090_v50 = vmov 2  }
0x160c   :  { %8035 = vtanh.f32 %v10057_v56  ;;  %7505 = vset.pattern.permute.xlu0 %v8090_v50  ;;  %7499 = vset.pattern.permute.xlu1 %v8090_v50  ;;  %v5498_v31 = vmul.f32 0.5, %v10057_v56 }
0x160d   :  { %8037 = vtanh.f32 %v10060_v39  ;;  %v7174_v6 = vpop.f32.mrb[50].mxu1 }
0x160e   :  { %v8028_v46 = vpop.eup %8027  ;;  %v10065_v33 = vadd.f32 %v9894_v60, %v7174_v6  ;;  %v5476_v47 = vpop.f32.mrb[51].mxu1 }
0x160f   :  { %v8030_v18 = vpop.eup %8029  ;;  %v10068_v45 = vadd.f32 %v9894_v60, %v5476_v47  ;;  %5551 = vrot.lane.b32.xlu0 %v8028_v46, %s8088_s21 }
0x1610   :  { %8039 = vtanh.f32 %v10065_v33  ;;  %5549 = vrot.lane.b32.xlu1 %v8030_v18, %s8088_s21  ;;  %v8077_v18 = vld [vmem:[%s10996_s1 + $0x10] sm:$0xff] }
0x1611   :  { %8041 = vtanh.f32 %v10068_v45 }
0x1612   :  { %v8032_v42 = vpop.eup %8031  ;;  %8043 = vtanh.f32 %v5494_v61 }
0x1613   :  { %v8034_v10 = vpop.eup %8033  ;;  %5555 = vrot.lane.b32.xlu0 %v8032_v42, %s8088_s21  ;;  %v10083_v42 = vcvt.s32.f32 %v8077_v18  ;;  %v8081_v18 = vld [vmem:[%s10996_s1 + $0x28] sm:$0xff]  ;;  %8045 = vtanh.f32 %v5493_v15 }
0x1614   :  { %5553 = vrot.lane.b32.xlu1 %v8034_v10, %s8088_s21  ;;  %v8078_v10 = vld [vmem:[%s10996_s1] sm:$0xff]  ;;  %v10103_v44 = vcvt.s32.f32 %v8081_v18  ;;  %8047 = vtanh.f32 %v5496_v35 }
0x1615   :  { %v10088_v50 = vcvt.s32.f32 %v8078_v10  ;;  %v8082_v10 = vld [vmem:[%s10996_s1 + $0x20] sm:$0xff]  ;;  %v2159_v18 = vsel %vm2156_vm1, %v10083_v42, -inf  ;;  %8049 = vtanh.f32 %v5495_v1  ;;  %vm2180_vm3 = vcmp.gt.f32.partialorder %v10083_v42, 0.0 }
0x1616   :  { %v8036_v6 = vpop.eup %8035  ;;  %v10108_v28 = vcvt.s32.f32 %v8082_v10  ;;  %8051 = vtanh.f32 %v5498_v31  ;;  %vm2254_vm4 = vcmp.gt.f32.partialorder %v10083_v42, 1.0 }
0x1617   :  { %v8038_v60 = vpop.eup %8037  ;;  %5559 = vrot.lane.b32.xlu0 %v8036_v6, %s8088_s21  ;;  %v8079_v6 = vld [vmem:[%s10996_s1 + $0x18] sm:$0xff]  ;;  %v2157_v25 = vsel %vm2156_vm1, %v10088_v50, -inf  ;;  %vm2178_vm10 = vcmp.gt.f32.partialorder %v10088_v50, 0.0  ;;  %vm2252_vm11 = vcmp.gt.f32.partialorder %v10088_v50, 1.0  ;;  %vm2400_vm13 = vcmp.gt.f32.partialorder %v10088_v50, 3.0 }
0x1618   :  { %5557 = vrot.lane.b32.xlu1 %v8038_v60, %s8088_s21  ;;  %v10093_v60 = vcvt.s32.f32 %v8079_v6  ;;  %v8083_v6 = vld [vmem:[%s10996_s1 + $0x38] sm:$0xff]  ;;  %v2161_v40 = vsel %vm2156_vm1, %v10108_v28, -inf  ;;  %vm2326_vm14 = vcmp.gt.f32.partialorder %v10088_v50, 2.0 }
0x1619   :  { %v10113_v4 = vcvt.s32.f32 %v8083_v6  ;;  %v2163_v6 = vsel %vm2156_vm1, %v10103_v44, -inf  ;;  %v2162_v23 = vmax.f32 %v2157_v25, %v2161_v40  ;;  %v5497_v40 = vmul.f32 0.5, %v10060_v39 }
0x161a   :  { %v8040_v46 = vpop.eup %8039  ;;  %v2160_v10 = vsel %vm2156_vm1, %v10093_v60, -inf  ;;  %vm2255_vm0 = vcmp.gt.f32.partialorder %v10093_v60, 1.0  ;;  %vm2329_vm5 = vcmp.gt.f32.partialorder %v10093_v60, 2.0 }
0x161b   :  { %v8042_v47 = vpop.eup %8041  ;;  %5563 = vrot.lane.b32.xlu0 %v8040_v46, %s8088_s21  ;;  %v8080_v46 = vld [vmem:[%s10996_s1 + $0x8] sm:$0xff]  ;;  %8053 = vtanh.f32 %v5497_v40 }
0x161c   :  { %5561 = vrot.lane.b32.xlu1 %v8042_v47, %s8088_s21  ;;  %v10098_v47 = vcvt.s32.f32 %v8080_v46  ;;  %v8084_v46 = vld [vmem:[%s10996_s1 + $0x30] sm:$0xff]  ;;  %v8044_v61 = vpop.eup %8043 }
0x161d   :  { %v10118_v62 = vcvt.s32.f32 %v8084_v46  ;;  %v2167_v46 = vsel %vm2156_vm1, %v10113_v4, -inf  ;;  %v5510_v15 = vmul.f32 0.5, %v8044_v61 }
0x161e   :  { %v2158_v63 = vsel %vm2156_vm1, %v10098_v47, -inf  ;;  %v2168_v48 = vmax.f32 %v2160_v10, %v2167_v46  ;;  %vm2179_vm8 = vcmp.gt.f32.partialorder %v10098_v47, 0.0  ;;  %vm2253_vm9 = vcmp.gt.f32.partialorder %v10098_v47, 1.0 }
0x161f   :  { %v2165_v20 = vsel %vm2156_vm1, %v10118_v62, -inf  ;;  %v2164_v55 = vmax.f32 %v2158_v63, %v2163_v6  ;;  %v5500_v63 = vmul.f32 0.5, %v10065_v33  ;;  %v10144_v1 = vadd.f32 0.5, %v5510_v15 }
0x1620   :  { %v2166_v7 = vmax.f32 %v2159_v18, %v2165_v20  ;;  %vm2327_vm15 = vcmp.gt.f32.partialorder %v10098_v47, 2.0  ;;  %vm2401_vm2 = vcmp.gt.f32.partialorder %v10098_v47, 3.0  ;;  %vm2181_vm1 = vcmp.gt.f32.partialorder %v10093_v60, 0.0 }
0x1621   :  { %v2169_v16 = vmax.f32 %v2162_v23, %v2164_v55  ;;  %v8046_v23 = vpop.eup %8045  ;;  %8055 = vtanh.f32 %v5500_v63  ;;  %11130 = vst [vmem:[#allocation66_spill] sm:$0xff] %v10144_v1 }
0x1622   :  { %v2170_v8 = vmax.f32 %v2166_v7, %v2168_v48  ;;  %v5499_v7 = vmul.f32 0.5, %v10068_v45  ;;  %v5509_v35 = vmul.f32 0.5, %v8046_v23 }
0x1624   :  { %v2171_v13 = vmax.f32 %v2169_v16, %v2170_v8  ;;  %8057 = vtanh.f32 %v5499_v7  ;;  %v8048_v16 = vpop.eup %8047  ;;  %v10146_v2 = vadd.f32 0.5, %v5509_v35 }
0x1625   :  { %v8050_v8 = vpop.eup %8049  ;;  %v5512_v25 = vmul.f32 0.5, %v8048_v16 }
0x1626   :  { %v2172_v20 = vrot.slane %v2171_v13, 4  ;;  %v8052_v12 = vpop.eup %8051  ;;  %11131 = vst [vmem:[#allocation67_spill] sm:$0xff] %v10146_v2  ;;  %v5511_v5 = vmul.f32 0.5, %v8050_v8 }
0x1627   :  { %v8054_v54 = vpop.eup %8053  ;;  %v10151_v33 = vadd.f32 0.5, %v5512_v25  ;;  %v5514_v18 = vmul.f32 0.5, %v8052_v12 }
0x1628   :  { %v2173_v55 = vmax.f32 %v2171_v13, %v2172_v20  ;;  %v10154_v46 = vadd.f32 0.5, %v5511_v5  ;;  %v5513_v40 = vmul.f32 0.5, %v8054_v54  ;;  %v11137_v54 = vmov 0.0  }
0x1629   :  { %11132 = vst [vmem:[#allocation68_spill] sm:$0xff] %v10151_v33 }
0x162a   :  { %v2174_v48 = vrot.slane %v2173_v55, 2  ;;  %11133 = vst [vmem:[#allocation69_spill] sm:$0xff] %v10154_v46  ;;  %v10162_v35 = vadd.f32 0.5, %v5513_v40 }
0x162b   :  { %v8056_v10 = vpop.eup %8055 }
0x162c   :  { %v2175_v13 = vmax.f32 %v2173_v55, %v2174_v48  ;;  %v10159_v55 = vadd.f32 0.5, %v5514_v18  ;;  %v5516_v15 = vmul.f32 0.5, %v8056_v10  ;;  %11135 = vst [vmem:[#allocation71_spill] sm:$0xff] %v10162_v35  ;;  %v6293_v18 = vsel %vm2253_vm9, 1.0, %v11137_v54 }
0x162d   :  { %v6284_v10 = vsel %vm2178_vm10, 1.0, %v11137_v54  ;;  %vm2256_vm9 = vcmp.gt.f32.partialorder %v10108_v28, 1.0  ;;  %vm2402_vm10 = vcmp.gt.f32.partialorder %v10083_v42, 3.0 }
0x162e   :  { %v8058_v20 = vpop.eup %8057  ;;  %v2176_v61 = vrot.slane %v2175_v13, 1  ;;  %11134 = vst [vmem:[#allocation70_spill] sm:$0xff] %v10159_v55  ;;  %v10173_v5 = vadd.f32 0.5, %v5516_v15  ;;  %v6308_v15 = vsel %vm2400_vm13, 1.0, %v11137_v54  ;;  %vm2183_vm13 = vcmp.gt.f32.partialorder %v10103_v44, 0.0 }
0x162f   :  { %v5515_v8 = vmul.f32 0.5, %v8058_v20 }
0x1630   :  { %v10169_v12 = vmax.f32 %v2175_v13, %v2176_v61  ;;  %11136 = vst [vmem:[#allocation72_spill] sm:$0xff] %v10173_v5  ;;  %v6292_v13 = vsel %vm2252_vm11, 1.0, %v11137_v54  ;;  %v11051_v61 = vmov -inf   ;;  %vm2328_vm11 = vcmp.gt.f32.partialorder %v10083_v42, 2.0 }
0x1632   :  { %vm2250_vm12 = vcmp.gt.f32.partialorder %v10169_v12, 0.0  ;;  %vm2398_vm6 = vcmp.gt.f32.partialorder %v10169_v12, 2.0 }
0x1681   :  { %v5552_v31 = vpop.permute.xlu0 %5551 }
0x1682   :  { %v5574_v45 = vmul.f32 %v5552_v31, %v10144_v1  ;;  %v5550_v56 = vpop.permute.xlu1 %5549 }
0x1683   :  { %v5573_v39 = vmul.f32 %v5550_v56, %v10146_v2 }
0x1684   :  { %5591 = vrot.lane.b32.xlu0 %v5574_v45, %s8089_s26  ;;  %v6285_v45 = vsel %vm2179_vm8, 1.0, %v11137_v54  ;;  %vm2324_vm8 = vcmp.gt.f32.partialorder %v10169_v12, 1.0 }
0x1685   :  { %v5556_v6 = vpop.permute.xlu0 %5555  ;;  %5589 = vrot.lane.b32.xlu1 %v5573_v39, %s8089_s26  ;;  %v10177_v39 = vadd.f32 0.5, %v5515_v8  ;;  %v6301_v8 = vsel %vm2327_vm15, 1.0, %v11137_v54  ;;  %vm2182_vm15 = vcmp.gt.f32.partialorder %v10108_v28, 0.0 }
0x1686   :  { %v5576_v63 = vmul.f32 %v5556_v6, %v10151_v33  ;;  %v5554_v7 = vpop.permute.xlu1 %5553 }
0x1687   :  { %v5575_v23 = vmul.f32 %v5554_v7, %v10154_v46  ;;  %11138 = vst [vmem:[#allocation73_spill] sm:$0xff] %v10177_v39  ;;  %v7500_v7 = vpack.i.bf16 %v6292_v13, %v6284_v10 }
0x1688   :  { %5595 = vrot.lane.b32.xlu0 %v5576_v63, %s8089_s26  ;;  %v7506_v63 = vpack.i.bf16 %v6293_v18, %v6285_v45  ;;  %v6309_v45 = vsel %vm2401_vm2, 1.0, %v11137_v54  ;;  %v6294_v18 = vsel %vm2254_vm4, 1.0, %v11137_v54  ;;  %vm2472_vm2 = vcmp.gt.f32.partialorder %v10169_v12, 3.0 }
0x1689   :  { %v5560_v16 = vpop.permute.xlu0 %5559  ;;  %5593 = vrot.lane.b32.xlu1 %v5575_v23, %s8089_s26  ;;  %v2251_v23 = vsel %vm2250_vm12, 0.0, %v11051_v61  ;;  %vm2474_vm12 = vcmp.gt.f32.partialorder %v10088_v50, 4.0  ;;  %vm2330_vm4 = vcmp.gt.f32.partialorder %v10108_v28, 2.0 }
0x168a   :  { %v5578_v48 = vmul.f32 %v5560_v16, %v10159_v55  ;;  %v5558_v25 = vpop.permute.xlu1 %5557  ;;  %v6300_v16 = vsel %vm2326_vm14, 1.0, %v11137_v54  ;;  %vm2257_vm14 = vcmp.gt.f32.partialorder %v10103_v44, 1.0 }
0x168b   :  { %v5577_v31 = vmul.f32 %v5558_v25, %v10162_v35  ;;  %v7511_v25 = vpack.i.bf16 %v6301_v8, %v6300_v16  ;;  %v6310_v16 = vsel %vm2402_vm10, 1.0, %v11137_v54  ;;  %v6302_v8 = vsel %vm2328_vm11, 1.0, %v11137_v54 }
0x168c   :  { %5599 = vrot.lane.b32.xlu0 %v5578_v48, %s8089_s26  ;;  %v7521_v48 = vpack.i.bf16 %v2251_v23, %v6308_v15  ;;  %v6296_v15 = vsel %vm2256_vm9, 1.0, %v11137_v54  ;;  %vm2477_vm9 = vcmp.gt.f32.partialorder %v10093_v60, 4.0  ;;  %vm2546_vm10 = vcmp.gt.f32.partialorder %v10169_v12, 4.0 }
0x168d   :  { %v5564_v56 = vpop.permute.xlu0 %5563  ;;  %5597 = vrot.lane.b32.xlu1 %v5577_v31, %s8089_s26  ;;  %v6295_v31 = vsel %vm2255_vm0, 1.0, %v11137_v54  ;;  %vm2475_vm0 = vcmp.gt.f32.partialorder %v10098_v47, 4.0  ;;  %vm2622_vm11 = vcmp.gt.f32.partialorder %v10088_v50, 6.0 }
0x168e   :  { %v5580_v6 = vmul.f32 %v5564_v56, %v10173_v5  ;;  %v5562_v40 = vpop.permute.xlu1 %5561  ;;  %v6286_v56 = vsel %vm2180_vm3, 1.0, %v11137_v54  ;;  %v7531_v10 = vpack.i.bf16 %v6309_v45, %v6295_v31  ;;  %v6289_v45 = vsel %vm2183_vm13, 1.0, %v11137_v54 }
0x168f   :  { %v5579_v20 = vmul.f32 %v5562_v40, %v10177_v39  ;;  %v7516_v13 = vpack.i.bf16 %v6294_v18, %v6286_v56  ;;  %v2399_v40 = vsel %vm2398_vm6, 0.0, %v11051_v61  ;;  %v6297_v56 = vsel %vm2257_vm14, 1.0, %v11137_v54 }
0x1690   :  { %5603 = vrot.lane.b32.xlu0 %v5580_v6, %s8089_s26  ;;  %v6303_v6 = vsel %vm2329_vm5, 1.0, %v11137_v54  ;;  %v6288_v18 = vsel %vm2182_vm15, 1.0, %v11137_v54  ;;  %vm2548_vm3 = vcmp.gt.f32.partialorder %v10088_v50, 5.0  ;;  %vm2476_vm5 = vcmp.gt.f32.partialorder %v10083_v42, 4.0 }
0x1691   :  { %5601 = vrot.lane.b32.xlu1 %v5579_v20, %s8089_s26  ;;  %v6287_v20 = vsel %vm2181_vm1, 1.0, %v11137_v54  ;;  %vm2403_vm6 = vcmp.gt.f32.partialorder %v10093_v60, 3.0  ;;  %vm2549_vm1 = vcmp.gt.f32.partialorder %v10098_v47, 5.0  ;;  %vm2404_vm13 = vcmp.gt.f32.partialorder %v10108_v28, 3.0 }
0x1692   :  { %vm2184_vm14 = vcmp.gt.f32.partialorder %v10118_v62, 0.0  ;;  %vm2623_vm15 = vcmp.gt.f32.partialorder %v10098_v47, 6.0 }
0x1694   :  { %7507 = vperm.xlu0 %7505, %v7506_v63   ;;  %v2325_v63 = vsel %vm2324_vm8, 0.0, %v11051_v61  ;;  %vm2331_vm8 = vcmp.gt.f32.partialorder %v10103_v44, 2.0 }
0x1695   :  { %7501 = vperm.xlu1 %7499, %v7500_v7   ;;  %v7541_v7 = vpack.i.bf16 %v6303_v6, %v2399_v40  ;;  %v7526_v23 = vpack.i.bf16 %v6287_v20, %v2325_v63  ;;  %v2473_v40 = vsel %vm2472_vm2, 0.0, %v11051_v61  ;;  %v6324_v20 = vsel %vm2548_vm3, 1.0, %v11137_v54 }
0x1696   :  { %v7556_v63 = vpack.i.bf16 %v2473_v40, %v6324_v20  ;;  %vm2620_vm2 = vcmp.gt.f32.partialorder %v10169_v12, 5.0  ;;  %vm2550_vm3 = vcmp.gt.f32.partialorder %v10083_v42, 5.0 }
0x1698   :  { %7522 = vperm.xlu0 %7505, %v7521_v48   ;;  %v6316_v48 = vsel %vm2474_vm12, 1.0, %v11137_v54  ;;  %vm2258_vm12 = vcmp.gt.f32.partialorder %v10118_v62, 1.0 }
0x1699   :  { %7512 = vperm.xlu1 %7499, %v7511_v25   ;;  %v7551_v25 = vpack.i.bf16 %v6310_v16, %v6296_v15  ;;  %v7536_v31 = vpack.i.bf16 %v6316_v48, %v6302_v8  ;;  %v5533_v15 = vmul.f32 %v10146_v2, %v9950_v17  ;;  %v10242_v17 = vmax.f32 %v8894_v11, 0.0 }
0x169a   :  { %v5539_v11 = vmul.f32 %v10177_v39, %v9980_v34  ;;  %v10267_v34 = vsel %vm2476_vm5, 1.0, %v11137_v54  ;;  %vm2551_vm5 = vcmp.gt.f32.partialorder %v10093_v60, 5.0 }
0x169c   :  { %7532 = vperm.xlu0 %7505, %v7531_v10   ;;  %v6317_v10 = vsel %vm2475_vm0, 1.0, %v11137_v54  ;;  %vm2185_vm0 = vcmp.gt.f32.partialorder %v10113_v4, 0.0 }
0x169d   :  { %7517 = vperm.xlu1 %7499, %v7516_v13   ;;  %v7561_v13 = vpack.i.bf16 %v6297_v56, %v6289_v45  ;;  %v7546_v6 = vpack.i.bf16 %v6288_v18, %v6317_v10  ;;  %v5535_v45 = vmul.f32 %v10154_v46, %v9960_v57  ;;  %v10250_v57 = vmax.f32 %v8898_v21, 0.0 }
0x16a0   :  { %7542 = vperm.xlu0 %7505, %v7541_v7   ;;  %v5534_v7 = vmul.f32 %v10144_v1, %v9948_v24  ;;  %v5538_v24 = vmul.f32 %v10159_v55, %v9968_v58  ;;  %v5540_v58 = vmul.f32 %v10173_v5, %v9978_v53 }
0x16a1   :  { %7527 = vperm.xlu1 %7499, %v7526_v23  }
0x16a4   :  { %7552 = vperm.xlu0 %7505, %v7551_v25   ;;  %v5536_v25 = vmul.f32 %v10151_v33, %v9958_v26  ;;  %v5537_v26 = vmul.f32 %v10162_v35, %v9970_v22 }
0x16a5   :  { %7537 = vperm.xlu1 %7499, %v7536_v31  }
0x16a8   :  { %7562 = vperm.xlu0 %7505, %v7561_v13  }
0x16a9   :  { %7547 = vperm.xlu1 %7499, %v7546_v6   ;;  %v10247_v6 = vmax.f32 %v8896_v14, 0.0 }
0x16ad   :  { %7557 = vperm.xlu1 %7499, %v7556_v63  }
0x16f6   :  { %v5592_v23 = vpop.permute.xlu0 %5591 }
0x16f7   :  { %v5614_v16 = vadd.f32 %v5592_v23, %v5534_v7  ;;  %v5590_v8 = vpop.permute.xlu1 %5589  ;;  %v10257_v7 = vsel %vm2330_vm4, 1.0, %v11137_v54  ;;  %vm2696_vm4 = vcmp.gt.f32.partialorder %v10088_v50, 7.0  ;;  %v10360_v50 = vsel %vm2550_vm3, 1.0, %v11137_v54 }
0x16f8   :  { %v5613_v48 = vadd.f32 %v5590_v8, %v5533_v15  ;;  %v10280_v8 = vsel %vm2549_vm1, 1.0, %v11137_v54  ;;  %vm2259_vm1 = vcmp.gt.f32.partialorder %v10113_v4, 1.0  ;;  %vm2768_vm3 = vcmp.gt.f32.partialorder %v10169_v12, 7.0 }
0x16f9   :  { %8059 = vtanh.f32 %v5614_v16  ;;  %v10275_v16 = vsel %vm2403_vm6, 1.0, %v11137_v54  ;;  %vm2697_vm6 = vcmp.gt.f32.partialorder %v10098_v47, 7.0  ;;  %v10366_v47 = vsel %vm2696_vm4, 1.0, %v11137_v54 }
0x16fa   :  { %8061 = vtanh.f32 %v5613_v48  ;;  %v5596_v31 = vpop.permute.xlu0 %5595  ;;  %v10285_v48 = vsel %vm2331_vm8, 1.0, %v11137_v54  ;;  %vm2405_vm8 = vcmp.gt.f32.partialorder %v10103_v44, 3.0  ;;  %vm2552_vm4 = vcmp.gt.f32.partialorder %v10108_v28, 5.0 }
0x16fb   :  { %v5616_v56 = vadd.f32 %v5596_v31, %v5536_v25  ;;  %v5594_v18 = vpop.permute.xlu1 %5593  ;;  %v10291_v25 = vsel %vm2477_vm9, 1.0, %v11137_v54  ;;  %v10296_v31 = vsel %vm2546_vm10, 0.0, %v11051_v61  ;;  %vm2624_vm9 = vcmp.gt.f32.partialorder %v10083_v42, 6.0 }
0x16fc   :  { %v5615_v10 = vadd.f32 %v5594_v18, %v5535_v45  ;;  %v10301_v45 = vsel %vm2622_vm11, 1.0, %v11137_v54  ;;  %v10307_v18 = vsel %vm2404_vm13, 1.0, %v11137_v54  ;;  %vm2694_vm10 = vcmp.gt.f32.partialorder %v10169_v12, 6.0 }
0x16fd   :  { %8063 = vtanh.f32 %v5616_v56  ;;  %v10304_v56 = vsel %vm2258_vm12, 1.0, %v11137_v54  ;;  %vm2332_vm11 = vcmp.gt.f32.partialorder %v10118_v62, 2.0  ;;  %vm2478_vm12 = vcmp.gt.f32.partialorder %v10108_v28, 4.0 }
0x16fe   :  { %8065 = vtanh.f32 %v5615_v10  ;;  %v5600_v13 = vpop.permute.xlu0 %5599  ;;  %vm2406_vm13 = vcmp.gt.f32.partialorder %v10118_v62, 3.0 }
0x16ff   :  { %v5618_v40 = vadd.f32 %v5600_v13, %v5538_v24  ;;  %v5598_v20 = vpop.permute.xlu1 %5597  ;;  %v10311_v24 = vmax.f32 %v8900_v0, 0.0  ;;  %v7566_v0 = vpack.i.bf16 %v10280_v8, %v10275_v16  ;;  %v10378_v16 = vsel %vm2405_vm8, 1.0, %v11137_v54 }
0x1700   :  { %v5617_v63 = vadd.f32 %v5598_v20, %v5537_v26  ;;  %v10317_v26 = vmax.f32 %v8902_v27, 0.0  ;;  %v7571_v20 = vpack.i.bf16 %v10267_v34, %v10257_v7  ;;  %v10343_v7 = vsel %vm2185_vm0, 1.0, %v11137_v54 }
0x1701   :  { %8067 = vtanh.f32 %v5618_v40  ;;  %v10320_v40 = vmax.f32 %v8904_v38, 0.0  ;;  %v10372_v34 = vsel %vm2697_vm6, 1.0, %v11137_v54  ;;  %v10381_v8 = vsel %vm2624_vm9, 1.0, %v11137_v54 }
0x1702   :  { %8069 = vtanh.f32 %v5617_v63  ;;  %v5604_v14 = vpop.permute.xlu0 %5603  ;;  %11139 = vst [vmem:[#allocation74_spill] sm:$0xff] %v10317_v26  ;;  %v10337_v63 = vsel %vm2184_vm14, 1.0, %v11137_v54  ;;  %vm2625_vm14 = vcmp.gt.f32.partialorder %v10093_v60, 6.0  ;;  %v10394_v38 = vsel %vm2406_vm13, 1.0, %v11137_v54 }
0x1703   :  { %v8060_v21 = vpop.eup %8059  ;;  %v5620_v22 = vadd.f32 %v5604_v14, %v5540_v58  ;;  %v5602_v53 = vpop.permute.xlu1 %5601  ;;  %v10346_v14 = vsel %vm2620_vm2, 0.0, %v11051_v61  ;;  %11140 = vst [vmem:[#allocation75_spill] sm:$0xff] %v10394_v38  ;;  %v10397_v27 = vsel %vm2625_vm14, 1.0, %v11137_v54  ;;  %vm2479_vm0 = vcmp.gt.f32.partialorder %v10103_v44, 4.0 }
0x1704   :  { %v8062_v23 = vpop.eup %8061  ;;  %v5619_v15 = vadd.f32 %v5602_v53, %v5539_v11  ;;  %5639 = vrot.lane.b32.xlu0 %v8060_v21, %s8088_s21  ;;  %v10340_v11 = vsel %vm2623_vm15, 1.0, %v11137_v54  ;;  %v10369_v53 = vsel %vm2551_vm5, 1.0, %v11137_v54  ;;  %11141 = vst [vmem:[#allocation76_spill] sm:$0xff] %v10397_v27  ;;  %vm2333_vm15 = vcmp.gt.f32.partialorder %v10113_v4, 2.0 }
0x1705   :  { %8071 = vtanh.f32 %v5620_v22  ;;  %5637 = vrot.lane.b32.xlu1 %v8062_v23, %s8088_s21  ;;  %v10375_v23 = vsel %vm2259_vm1, 1.0, %v11137_v54  ;;  %v7586_v58 = vpack.i.bf16 %v10337_v63, %v10340_v11  ;;  %vm2407_vm2 = vcmp.gt.f32.partialorder %v10113_v4, 3.0 }
0x1706   :  { %8073 = vtanh.f32 %v5619_v15  ;;  %v10428_v11 = vsel %vm2407_vm2, 1.0, %v11137_v54  ;;  %vm2698_vm5 = vcmp.gt.f32.partialorder %v10083_v42, 7.0  ;;  %vm2480_vm6 = vcmp.gt.f32.partialorder %v10118_v62, 4.0 }
0x1707   :  { %v8064_v10 = vpop.eup %8063  ;;  %vm2626_vm1 = vcmp.gt.f32.partialorder %v10108_v28, 6.0  ;;  %v11146_v26 = vpack.i.bf16 %v10296_v31, %v10301_v45  ;;  %vm2553_vm8 = vcmp.gt.f32.partialorder %v10103_v44, 5.0  ;;  %vm2699_vm9 = vcmp.gt.f32.partialorder %v10093_v60, 7.0 }
0x1708   :  { %v8066_v13 = vpop.eup %8065  ;;  %5643 = vrot.lane.b32.xlu0 %v8064_v10, %s8088_s21  ;;  %v10384_v10 = vsel %vm2694_vm10, 0.0, %v11051_v61  ;;  %v10420_v61 = vsel %vm2333_vm15, 1.0, %v11137_v54  ;;  %v11149_v60 = vpack.i.bf16 %v10343_v7, %v10346_v14  ;;  %vm2554_vm10 = vcmp.gt.f32.partialorder %v10118_v62, 5.0 }
0x1709   :  { %5641 = vrot.lane.b32.xlu1 %v8066_v13, %s8088_s21  ;;  %v10387_v13 = vsel %vm2332_vm11, 1.0, %v11137_v54  ;;  %vm2700_vm11 = vcmp.gt.f32.partialorder %v10108_v28, 7.0  ;;  %vm2627_vm13 = vcmp.gt.f32.partialorder %v10103_v44, 6.0  ;;  %vm2555_vm14 = vcmp.gt.f32.partialorder %v10113_v4, 5.0 }
0x170a   :  { %vm2701_vm15 = vcmp.gt.f32.partialorder %v10103_v44, 7.0  ;;  %vm2629_vm2 = vcmp.gt.f32.partialorder %v10113_v4, 6.0 }
0x170b   :  { %v8068_v21 = vpop.eup %8067 }
0x170c   :  { %v8070_v22 = vpop.eup %8069  ;;  %5647 = vrot.lane.b32.xlu0 %v8068_v21, %s8088_s21 }
0x170d   :  { %5645 = vrot.lane.b32.xlu1 %v8070_v22, %s8088_s21  ;;  %v10391_v22 = vsel %vm2478_vm12, 1.0, %v11137_v54  ;;  %vm2481_vm12 = vcmp.gt.f32.partialorder %v10113_v4, 4.0 }
0x170f   :  { %v8072_v15 = vpop.eup %8071 }
0x1710   :  { %v8074_v21 = vpop.eup %8073  ;;  %5651 = vrot.lane.b32.xlu0 %v8072_v15, %s8088_s21 }
0x1711   :  { %5649 = vrot.lane.b32.xlu1 %v8074_v21, %s8088_s21  ;;  %v10424_v21 = vsel %vm2479_vm0, 1.0, %v11137_v54  ;;  %vm2628_vm0 = vcmp.gt.f32.partialorder %v10118_v62, 6.0 }
0x1712   :  { %v6338_v44 = vsel %vm2628_vm0, 1.0, %v11137_v54 }
0x1713   :  { %v7508_v63 = vpop.permute.xlu0 %7507 }
0x1714   :  { %v7510_v39 = vunpack.i.h.bf16 %v7508_v63  ;;  %v7509_v35 = vunpack.i.l.bf16 %v7508_v63  ;;  %7572 = vperm.xlu0 %7505, %v7571_v20   ;;  %v7502_v5 = vpop.permute.xlu1 %7501  ;;  %v11142_v63 = vmov -inf  }
0x1715   :  { %v7504_v55 = vunpack.i.h.bf16 %v7502_v5  ;;  %v7503_v46 = vunpack.i.l.bf16 %v7502_v5  ;;  %7567 = vperm.xlu1 %7499, %v7566_v0   ;;  %v10434_v20 = vsel %vm2768_vm3, 0.0, %v11142_v63  ;;  %v10440_v0 = vsel %vm2552_vm4, 1.0, %v11137_v54 }
0x1716   :  { %v2317_v15 = vmul.f32 %v7510_v39, %v10242_v17  ;;  %v2243_v12 = vmul.f32 %v7509_v35, %v10242_v17  ;;  %11143 = vst [vmem:[#allocation77_spill] sm:$0xff] %v10440_v0  ;;  %v11144_v63 = vpack.i.bf16 %v10291_v25, %v10285_v48  ;;  %v10465_v25 = vsel %vm2626_vm1, 1.0, %v11137_v54 }
0x1717   :  { %v2316_v33 = vmul.f32 %v7504_v55, %v10247_v6  ;;  %v2242_v2 = vmul.f32 %v7503_v46, %v10247_v6  ;;  %v7523_v5 = vpop.permute.xlu0 %7522  ;;  %v10450_v55 = vsel %vm2698_vm5, 1.0, %v11137_v54  ;;  %vm2702_vm3 = vcmp.gt.f32.partialorder %v10118_v62, 7.0  ;;  %v45_v62 = vld [vmem:[%s11000_s4 + $0x28] sm:$0xff] }
0x1718   :  { %v3148_v42 = vmul.f32 %v9091_v59, %v2243_v12  ;;  %v10444_v39 = vunpack.i.h.bf16 %v7523_v5  ;;  %v7524_v35 = vunpack.i.l.bf16 %v7523_v5  ;;  %7582 = vperm.xlu0 %7505, %v11144_v63   ;;  %v7513_v1 = vpop.permute.xlu1 %7512  ;;  %11145 = vst [vmem:[#allocation78_spill] sm:$0xff] %v10450_v55  ;;  %v10459_v59 = vsel %vm2480_vm6, 1.0, %v11137_v54 }
0x1719   :  { %v3147_v46 = vmul.f32 %v9093_v32, %v2242_v2  ;;  %v7515_v27 = vunpack.i.h.bf16 %v7513_v1  ;;  %v7514_v38 = vunpack.i.l.bf16 %v7513_v1  ;;  %7577 = vperm.xlu1 %7499, %v11146_v26   ;;  %11147 = vst [vmem:[#allocation79_spill] sm:$0xff] %v10459_v59  ;;  %v11148_v5 = vpack.i.bf16 %v10307_v18, %v10304_v56 }
0x171a   :  { %v10462_v48 = vmul.f32 %v7524_v35, %v10247_v6  ;;  %v10469_v32 = vadd.f32 %v10444_v39, %v3148_v42  ;;  %vm2703_vm4 = vcmp.gt.f32.partialorder %v10113_v4, 7.0  ;;  %vm6036_vm5 = vcmask 7168  }
0x171b   :  { %v2391_v1 = vmul.f32 %v7515_v27, %v10242_v17  ;;  %v2390_v2 = vmul.f32 %v7514_v38, %v10247_v6  ;;  %v7533_v31 = vpop.permute.xlu0 %7532  ;;  %v10475_v45 = vadd.f32 %v10444_v39, %v3147_v46 }
0x171c   :  { %v7535_v26 = vunpack.i.h.bf16 %v7533_v31  ;;  %v7534_v12 = vunpack.i.l.bf16 %v7533_v31  ;;  %7592 = vperm.xlu0 %7505, %v11148_v5   ;;  %v7518_v35 = vpop.permute.xlu1 %7517  ;;  %v10489_v31 = vsel %vm2553_vm8, 1.0, %v11137_v54 }
0x171d   :  { %v7520_v38 = vunpack.i.h.bf16 %v7518_v35  ;;  %v7519_v63 = vunpack.i.l.bf16 %v7518_v35  ;;  %7587 = vperm.xlu1 %7499, %v7586_v58   ;;  %v10500_v58 = vsel %vm2699_vm9, 1.0, %v11137_v54  ;;  %v3506_v35 = vmul.f32 %v9247_v3, %v2317_v15 }
0x171e   :  { %v10492_v56 = vmul.f32 %v7535_v26, %v10242_v17  ;;  %v2319_v18 = vmul.f32 %v7534_v12, %v10250_v57  ;;  %v3872_v46 = vmul.f32 %v9403_v51, %v2391_v1  ;;  %v3871_v0 = vmul.f32 %v9405_v19, %v2390_v2 }
0x171f   :  { %v2318_v27 = vmul.f32 %v7520_v38, %v10311_v24  ;;  %v2244_v42 = vmul.f32 %v7519_v63, %v10311_v24  ;;  %v7543_v26 = vpop.permute.xlu0 %7542  ;;  %v11150_v19 = vpack.i.bf16 %v10366_v47, %v10360_v50 }
0x1720   :  { %v3508_v12 = vmul.f32 %v9255_v37, %v2319_v18  ;;  %v7545_v55 = vunpack.i.h.bf16 %v7543_v26  ;;  %v10508_v5 = vunpack.i.l.bf16 %v7543_v26  ;;  %7602 = vperm.xlu0 %7505, %v11149_v60   ;;  %v7528_v59 = vpop.permute.xlu1 %7527  ;;  %v3505_v37 = vmul.f32 %v9249_v9, %v2316_v33  ;;  %v11169_v28 = vld [vmem:[#allocation79_spill] sm:$0xff] }
0x1721   :  { %v3507_v3 = vmul.f32 %v9258_v36, %v2318_v27  ;;  %v3149_v51 = vmul.f32 %v9102_v43, %v2244_v42  ;;  %v7530_v15 = vunpack.i.h.bf16 %v7528_v59  ;;  %v10515_v1 = vunpack.i.l.bf16 %v7528_v59  ;;  %7597 = vperm.xlu1 %7499, %v11150_v19  }
0x1722   :  { %v2393_v2 = vmul.f32 %v7545_v55, %v10250_v57  ;;  %v3885_v38 = vadd.f32 %v10508_v5, %v3872_v46  ;;  %v3884_v7 = vadd.f32 %v10508_v5, %v3871_v0  ;;  %v11151_v9 = vpack.i.bf16 %v10372_v34, %v10369_v53 }
0x1723   :  { %v3162_v14 = vadd.f32 %v10444_v39, %v3149_v51  ;;  %v2245_v36 = vmul.f32 %v7530_v15, %v10250_v57  ;;  %v3521_v43 = vadd.f32 %v10515_v1, %v3508_v12  ;;  %v7553_v59 = vpop.permute.xlu0 %7552  ;;  %v3520_v42 = vadd.f32 %v10515_v1, %v3507_v3 }
0x1724   :  { %v3874_v50 = vmul.f32 %v9411_v30, %v2393_v2  ;;  %v7555_v47 = vunpack.i.h.bf16 %v7553_v59  ;;  %v7554_v27 = vunpack.i.l.bf16 %v7553_v59  ;;  %7612 = vperm.xlu0 %7505, %v11151_v9   ;;  %v7538_v33 = vpop.permute.xlu1 %7537  ;;  %v3519_v0 = vadd.f32 %v10515_v1, %v3506_v35 }
0x1725   :  { %v3150_v55 = vmul.f32 %v9099_v29, %v2245_v36  ;;  %v7540_v63 = vunpack.i.h.bf16 %v7538_v33  ;;  %v7539_v46 = vunpack.i.l.bf16 %v7538_v33  ;;  %v3528_v18 = vmax.f32 %v3162_v14, %v3520_v42  ;;  %v11155_v42 = vld [vmem:[#allocation74_spill] sm:$0xff]  ;;  %v11158_v33 = vld [vmem:[#allocation75_spill] sm:$0xff] }
0x1726   :  { %v11152_v26 = vpack.i.bf16 %v10378_v16, %v10375_v23  ;;  %v3887_v30 = vadd.f32 %v10508_v5, %v3874_v50  ;;  %v2466_v12 = vmul.f32 %v7555_v47, %v10311_v24  ;;  %v2320_v53 = vmul.f32 %v7554_v27, %v10320_v40 }
0x1727   :  { %v3527_v34 = vmax.f32 %v10469_v32, %v3519_v0  ;;  %v3163_v29 = vadd.f32 %v10444_v39, %v3150_v55  ;;  %v10545_v35 = vmul.f32 %v7540_v63, %v10247_v6  ;;  %v2392_v23 = vmul.f32 %v7539_v46, %v10311_v24  ;;  %v7563_v16 = vpop.permute.xlu0 %7562  ;;  %v11159_v0 = vld [vmem:[#allocation76_spill] sm:$0xff] }
0x1728   :  { %7607 = vperm.xlu1 %7499, %v11152_v26   ;;  %v3518_v60 = vadd.f32 %v10515_v1, %v3505_v37  ;;  %v3509_v3 = vmul.f32 %v9268_v49, %v2320_v53  ;;  %v7565_v51 = vunpack.i.h.bf16 %v7563_v16  ;;  %v7564_v15 = vunpack.i.l.bf16 %v7563_v16  ;;  %v7548_v2 = vpop.permute.xlu1 %7547  ;;  %v11161_v26 = vld [vmem:[#allocation35_spill] sm:$0xff]  ;;  %v11162_v53 = vld [vmem:[#allocation25_spill] sm:$0xff] }
0x1729   :  { %v11153_v19 = vpack.i.bf16 %v10384_v10, %v10381_v8  ;;  %v4237_v32 = vmul.f32 %v9562_v52, %v10462_v48  ;;  %v3529_v14 = vmax.f32 %v3163_v29, %v3521_v43  ;;  %v3873_v36 = vmul.f32 %v9414_v41, %v2392_v23  ;;  %v11156_v43 = vld [vmem:[#allocation28_spill] sm:$0xff]  ;;  %v11164_v16 = vld [vmem:[#allocation37_spill] sm:$0xff] }
0x172a   :  { %v7550_v59 = vunpack.i.h.bf16 %v7548_v2  ;;  %v11154_v37 = vpack.i.bf16 %v10391_v22, %v10387_v13  ;;  %v10561_v49 = vadd.f32 %v10515_v1, %v3509_v3  ;;  %v2321_v8 = vmul.f32 %v7565_v51, %v11155_v42  ;;  %v11157_v13 = vld [vmem:[#allocation24_spill] sm:$0xff] }
0x172b   :  { %7622 = vperm.xlu0 %7505, %v11153_v19   ;;  %v2247_v10 = vmul.f32 %v7564_v15, %v11155_v42  ;;  %v7549_v50 = vunpack.i.l.bf16 %v7548_v2  ;;  %v3886_v47 = vadd.f32 %v10508_v5, %v3873_v36  ;;  %v10567_v48 = vmax.f32 %v3529_v14, %v3887_v30  ;;  %v11167_v14 = vld [vmem:[#allocation77_spill] sm:$0xff] }
0x172c   :  { %7617 = vperm.xlu1 %7499, %v11154_v37   ;;  %v2246_v52 = vmul.f32 %v7550_v59, %v10320_v40  ;;  %v10569_v41 = vmax.f32 %v3527_v34, %v3885_v38  ;;  %v3510_v27 = vmul.f32 %v11156_v43, %v2321_v8  ;;  %v11160_v55 = vpack.i.bf16 %v11158_v33, %v11159_v0  ;;  %v10579_v63 = vpop.permute.xlu1 %7557  ;;  %v43_v0 = vld [vmem:[%s11000_s4 + $0x8] sm:$0xff] }
0x172d   :  { %v3152_v22 = vmul.f32 %v11157_v13, %v2247_v10  ;;  %v10574_v9 = vmul.f32 %v7549_v50, %v10242_v17  ;;  %v3526_v46 = vmax.f32 %v10475_v45, %v3518_v60  ;;  %v4238_v30 = vmul.f32 %v11161_v26, %v10492_v56 }
0x172e   :  { %v10584_v38 = vmax.f32 %v3528_v18, %v3886_v47  ;;  %v3151_v34 = vmul.f32 %v11162_v53, %v2246_v52  ;;  %v10588_v29 = vunpack.i.h.bf16 %v10579_v63  ;;  %v11163_v23 = vpack.i.bf16 %v10424_v21, %v10420_v61 }
0x172f   :  { %7632 = vperm.xlu0 %7505, %v11160_v55   ;;  %v4239_v3 = vmul.f32 %v11164_v16, %v2466_v12  ;;  %v10595_v51 = vadd.f32 %v10444_v39, %v3152_v22  ;;  %v10598_v45 = vadd.f32 %v10515_v1, %v3510_v27  ;;  %v10600_v56 = vmax.f32 %v3526_v46, %v3884_v7  ;;  %v44_v55 = vld [vmem:[%s11000_s4 + $0x18] sm:$0xff]  ;;  %v11172_v16 = vld [vmem:[#allocation67_spill] sm:$0xff] }
0x1730   :  { %7627 = vperm.xlu1 %7499, %v11163_v23   ;;  %v10603_v18 = vadd.f32 %v10444_v39, %v3151_v34  ;;  %v10607_v60 = vadd.f32 %v10588_v29, %v4238_v30  ;;  %v10610_v61 = vadd.f32 %v10588_v29, %v4237_v32  ;;  %v11165_v12 = vpack.i.bf16 %v10428_v11, %v10434_v20  ;;  %v11166_v32 = vld [vmem:[#allocation78_spill] sm:$0xff] }
0x1731   :  { %v3531_v21 = vmax.f32 %v10595_v51, %v10598_v45  ;;  %v7646_v7 = vpack.i.bf16 %v10500_v58, %v10489_v31  ;;  %v6330_v15 = vsel %vm2554_vm10, 1.0, %v11137_v54  ;;  %v10623_v19 = vadd.f32 %v10588_v29, %v4239_v3  ;;  %v11171_v30 = vld [vmem:[#allocation66_spill] sm:$0xff]  ;;  %v11197_v45 = vld [vmem:[#allocation51_spill] sm:$0xff] }
0x1732   :  { %v3530_v2 = vmax.f32 %v10603_v18, %v10561_v49  ;;  %v11168_v36 = vpack.i.bf16 %v11166_v32, %v11167_v14  ;;  %v6344_v11 = vsel %vm2700_vm11, 1.0, %v11137_v54  ;;  %v4259_v20 = vmax.f32 %v10569_v41, %v10607_v60  ;;  %v11174_v14 = vld [vmem:[#allocation69_spill] sm:$0xff]  ;;  %v11192_v18 = vld [vmem:[#allocation50_spill] sm:$0xff]  ;;  %v11194_v60 = vld [vmem:[#allocation39_spill] sm:$0xff] }
0x1733   :  { %7642 = vperm.xlu0 %7505, %v11165_v12   ;;  %v4258_v31 = vmax.f32 %v10600_v56, %v10610_v61  ;;  %v6323_v58 = vsel %vm2481_vm12, 1.0, %v11137_v54  ;;  %v6337_v59 = vsel %vm2627_vm13, 1.0, %v11137_v54  ;;  %v4260_v37 = vmax.f32 %v10584_v38, %v10623_v19  ;;  %v11173_v12 = vld [vmem:[#allocation68_spill] sm:$0xff] }
0x1734   :  { %7637 = vperm.xlu1 %7499, %v11168_v36   ;;  %v11170_v8 = vpack.i.bf16 %v10465_v25, %v11169_v28  ;;  %v7661_v10 = vpack.i.bf16 %v6344_v11, %v6330_v15  ;;  %v7656_v50 = vpack.i.bf16 %v6337_v59, %v6323_v58  ;;  %v6331_v47 = vsel %vm2555_vm14, 1.0, %v11137_v54  ;;  %v11175_v11 = vld [vmem:[#allocation70_spill] sm:$0xff] }
0x1735   :  { %v6345_v52 = vsel %vm2701_vm15, 1.0, %v11137_v54  ;;  %v6339_v27 = vsel %vm2629_vm2, 1.0, %v11137_v54  ;;  %v6346_v13 = vsel %vm2702_vm3, 1.0, %v11137_v54  ;;  %v6347_v22 = vsel %vm2703_vm4, 1.0, %v11137_v54  ;;  %v46_v54 = vld [vmem:[%s11000_s4 + $0x38] sm:$0xff]  ;;  %s8092_s4 = smov 96  }
0x1736   :  { %v7666_v43 = vpack.i.bf16 %v6345_v52, %v6331_v47  ;;  %v7671_v25 = vpack.i.bf16 %v6339_v27, %v6338_v44  ;;  %v7676_v33 = vpack.i.bf16 %v6347_v22, %v6346_v13  ;;  %v7331_v4 = vpack.c.bf16 %v44_v55, %v43_v0  ;;  %v11179_v27 = vld [vmem:[#allocation5_spill] sm:$0xff]  ;;  %v11182_v22 = vld [vmem:[#allocation3_spill] sm:$0xff] }
0x1737   :  { %7652 = vperm.xlu0 %7505, %v11170_v8   ;;  %v7335_v46 = vpack.c.bf16 %v46_v54, %v45_v62  ;;  %v11176_v8 = vld [vmem:[#allocation71_spill] sm:$0xff] }
0x1738   :  { %7647 = vperm.xlu1 %7499, %v7646_v7   ;;  %7332 = vmatprep.subr.bf16.mxu0 %v7331_v4 }
0x1739   :  { %7334 = vmatpush3.bf16.msra.mxu0 %v7331_v4 }
0x173a   :  { %7336 = vmatprep.subr.bf16.mxu0 %v7335_v46 }
0x173b   :  { %7662 = vperm.xlu0 %7505, %v7661_v10  }
0x173c   :  { %7657 = vperm.xlu1 %7499, %v7656_v50   ;;  %v11177_v50 = vld [vmem:[#allocation72_spill] sm:$0xff] }
0x173d   :  { %7338 = vmatpush3.bf16.msra.mxu0 %v7335_v46 }
0x1740   :  { %7667 = vperm.xlu1 %7499, %v7666_v43   ;;  %v11178_v43 = vld [vmem:[#allocation73_spill] sm:$0xff] }
0x1744   :  { %7672 = vperm.xlu1 %7499, %v7671_v25   ;;  %v11180_v25 = vld [vmem:[#allocation4_spill] sm:$0xff] }
0x1745   :  { %v11181_v13 = vpack.i.bf16 %v11179_v27, %v11180_v25 }
0x1748   :  { %7677 = vperm.xlu1 %7499, %v7676_v33   ;;  %v11183_v33 = vld [vmem:[#allocation2_spill] sm:$0xff] }
0x1749   :  { %v11184_v0 = vpack.i.bf16 %v11182_v22, %v11183_v33 }
0x1776   :  { %v5640_v26 = vpop.permute.xlu0 %5639 }
0x1777   :  { %v5662_v53 = vmul.f32 %v5640_v26, %v11171_v30  ;;  %v5638_v34 = vpop.permute.xlu1 %5637 }
0x1778   :  { %v5661_v3 = vmul.f32 %v5638_v34, %v11172_v16  ;;  %v11185_v34 = vld [vmem:[#allocation43_spill] sm:$0xff]  ;;  %v11186_v16 = vld [vmem:[#allocation32_spill] sm:$0xff] }
0x1779   :  { %5679 = vrot.lane.b32.xlu0 %v5662_v53, %s8089_s26 }
0x177a   :  { %v5644_v23 = vpop.permute.xlu0 %5643 }
0x177b   :  { %v5664_v7 = vmul.f32 %v5644_v23, %v11173_v12  ;;  %v5642_v15 = vpop.permute.xlu1 %5641  ;;  %v4603_v23 = vmul.f32 %v11185_v34, %v10545_v35 }
0x177c   :  { %v5663_v36 = vmul.f32 %v5642_v15, %v11174_v14 }
0x177d   :  { %5683 = vrot.lane.b32.xlu1 %v5664_v7, %s8089_s26  ;;  %5677 = vrot.lane.b32.xlu0 %v5661_v3, %s8089_s26 }
0x177e   :  { %v5648_v32 = vpop.permute.xlu0 %5647 }
0x177f   :  { %v5666_v58 = vmul.f32 %v5648_v32, %v11175_v11  ;;  %v5646_v59 = vpop.permute.xlu1 %5645  ;;  %v11187_v32 = vld [vmem:[#allocation42_spill] sm:$0xff]  ;;  %v11188_v11 = vld [vmem:[#allocation36_spill] sm:$0xff] }
0x1780   :  { %v5665_v10 = vmul.f32 %v5646_v59, %v11176_v8  ;;  %v4604_v14 = vmul.f32 %v11187_v32, %v10574_v9  ;;  %v11195_v32 = vld [vmem:[#allocation29_spill] sm:$0xff] }
0x1781   :  { %5687 = vrot.lane.b32.xlu1 %v5666_v58, %s8089_s26  ;;  %5681 = vrot.lane.b32.xlu0 %v5663_v36, %s8089_s26  ;;  %v7559_v36 = vunpack.i.l.bf16 %v10579_v63 }
0x1782   :  { %v5652_v28 = vpop.permute.xlu0 %5651 }
0x1783   :  { %v5668_v47 = vmul.f32 %v5652_v28, %v11177_v50  ;;  %v5650_v52 = vpop.permute.xlu1 %5649  ;;  %v11189_v28 = vld [vmem:[#allocation22_spill] sm:$0xff] }
0x1784   :  { %v5667_v44 = vmul.f32 %v5650_v52, %v11178_v43  ;;  %v10704_v8 = vmax.f32 %v11189_v28, 0.0 }
0x1785   :  { %5691 = vrot.lane.b32.xlu1 %v5668_v47, %s8089_s26  ;;  %5685 = vrot.lane.b32.xlu0 %v5665_v10, %s8089_s26  ;;  %v11190_v10 = vld [vmem:[#allocation23_spill] sm:$0xff] }
0x1786   :  { %v10707_v50 = vmax.f32 %v11190_v10, 0.0 }
0x1789   :  { %5689 = vrot.lane.b32.xlu0 %v5667_v44, %s8089_s26  ;;  %7687 = vrot.lane.b32.xlu1 %v11181_v13, %s8092_s4  ;;  %v11191_v13 = vld [vmem:[#allocation31_spill] sm:$0xff] }
0x178d   :  { %7682 = vrot.lane.b32.xlu0 %v11184_v0, %s8092_s4 }
0x1793   :  { %v7573_v55 = vpop.permute.xlu0 %7572 }
0x1794   :  { %v7574_v62 = vunpack.i.l.bf16 %v7573_v55  ;;  %v7568_v4 = vpop.permute.xlu1 %7567 }
0x1795   :  { %v7569_v54 = vunpack.i.l.bf16 %v7568_v4  ;;  %v7570_v26 = vunpack.i.h.bf16 %v7568_v4 }
0x1796   :  { %v2394_v46 = vmul.f32 %v7574_v62, %v10320_v40  ;;  %v2612_v62 = vmul.f32 %v7559_v36, %v10247_v6  ;;  %v11196_v36 = vld [vmem:[#allocation26_spill] sm:$0xff] }
0x1797   :  { %v2467_v30 = vmul.f32 %v7569_v54, %v10250_v57  ;;  %v7583_v53 = vpop.permute.xlu0 %7582  ;;  %v2613_v52 = vmul.f32 %v7570_v26, %v10242_v17  ;;  %v7575_v26 = vunpack.i.h.bf16 %v7573_v55  ;;  %v11193_v55 = vld [vmem:[#allocation44_spill] sm:$0xff] }
0x1798   :  { %v3875_v3 = vmul.f32 %v11186_v16, %v2394_v46  ;;  %v7585_v12 = vunpack.i.h.bf16 %v7583_v53  ;;  %v7584_v7 = vunpack.i.l.bf16 %v7583_v53  ;;  %v7578_v15 = vpop.permute.xlu1 %7577 }
0x1799   :  { %v4240_v58 = vmul.f32 %v11188_v11, %v2467_v30  ;;  %v10701_v59 = vunpack.i.h.bf16 %v7578_v15  ;;  %v7579_v61 = vunpack.i.l.bf16 %v7578_v15 }
0x179a   :  { %v3888_v35 = vadd.f32 %v10508_v5, %v3875_v3  ;;  %v2395_v47 = vmul.f32 %v7584_v7, %v11155_v42  ;;  %v2541_v25 = vmul.f32 %v7585_v12, %v10250_v57 }
0x179b   :  { %v4253_v9 = vadd.f32 %v10588_v29, %v4240_v58  ;;  %v7593_v43 = vpop.permute.xlu0 %7592  ;;  %v4617_v63 = vadd.f32 %v10701_v59, %v4604_v14  ;;  %v4616_v44 = vadd.f32 %v10701_v59, %v4603_v23 }
0x179c   :  { %v10718_v27 = vmax.f32 %v3530_v2, %v3888_v35  ;;  %v3876_v22 = vmul.f32 %v11191_v13, %v2395_v47  ;;  %v7595_v33 = vunpack.i.h.bf16 %v7593_v43  ;;  %v7588_v0 = vpop.permute.xlu1 %7587  ;;  %v7594_v54 = vunpack.i.l.bf16 %v7593_v43 }
0x179d   :  { %v4261_v4 = vmax.f32 %v10567_v48, %v4253_v9  ;;  %v7590_v46 = vunpack.i.h.bf16 %v7588_v0  ;;  %v10729_v49 = vmax.f32 %v4259_v20, %v4617_v63  ;;  %v4970_v2 = vmul.f32 %v11192_v18, %v2613_v52  ;;  %v11198_v9 = vld [vmem:[#allocation27_spill] sm:$0xff] }
0x179e   :  { %v3889_v30 = vadd.f32 %v10508_v5, %v3876_v22  ;;  %v2468_v53 = vmul.f32 %v7595_v33, %v10320_v40  ;;  %v2322_v34 = vmul.f32 %v7594_v54, %v10707_v50  ;;  %v10737_v48 = vmax.f32 %v4258_v31, %v4616_v44 }
0x179f   :  { %v2248_v23 = vmul.f32 %v7590_v46, %v10707_v50  ;;  %v7603_v16 = vpop.permute.xlu0 %7602  ;;  %v4606_v3 = vmul.f32 %v11193_v55, %v2541_v25  ;;  %v7589_v58 = vunpack.i.l.bf16 %v7588_v0  ;;  %v2540_v52 = vmul.f32 %v7575_v26, %v10311_v24  ;;  %v11201_v55 = vld [vmem:[#allocation38_spill] sm:$0xff] }
0x17a0   :  { %v10743_v41 = vmax.f32 %v3531_v21, %v3889_v30  ;;  %v4241_v20 = vmul.f32 %v11194_v60, %v2468_v53  ;;  %v7605_v12 = vunpack.i.h.bf16 %v7603_v16  ;;  %v10746_v7 = vpop.permute.xlu1 %7597  ;;  %v3511_v14 = vmul.f32 %v11195_v32, %v2322_v34  ;;  %v11199_v53 = vld [vmem:[#allocation45_spill] sm:$0xff]  ;;  %v11202_v60 = vld [vmem:[#allocation30_spill] sm:$0xff]  ;;  %v11203_v32 = vld [vmem:[#allocation59_spill] sm:$0xff] }
0x17a1   :  { %v3153_v11 = vmul.f32 %v11196_v36, %v2248_v23  ;;  %v10750_v56 = vunpack.i.l.bf16 %v7603_v16  ;;  %v4969_v21 = vmul.f32 %v11197_v45, %v2612_v62  ;;  %v4619_v44 = vadd.f32 %v10701_v59, %v4606_v3  ;;  %v11200_v16 = vld [vmem:[#allocation58_spill] sm:$0xff] }
0x17a2   :  { %v10753_v31 = vadd.f32 %v10588_v29, %v4241_v20  ;;  %v2249_v51 = vmul.f32 %v7605_v12, %v10704_v8  ;;  %v10758_v28 = vadd.f32 %v10515_v1, %v3511_v14  ;;  %v2687_v25 = vmul.f32 %v7589_v58, %v10242_v17 }
0x17a3   :  { %v10761_v10 = vadd.f32 %v10444_v39, %v3153_v11  ;;  %v10763_v35 = vpop.permute.xlu0 %7612  ;;  %v4983_v47 = vadd.f32 %v10750_v56, %v4970_v2  ;;  %v2686_v0 = vmul.f32 %v7579_v61, %v10247_v6  ;;  %v10782_v30 = vadd.f32 %v10750_v56, %v4969_v21 }
0x17a4   :  { %v4262_v15 = vmax.f32 %v10718_v27, %v10753_v31  ;;  %v3154_v43 = vmul.f32 %v11198_v9, %v2249_v51  ;;  %v10785_v18 = vmul.f32 %v11199_v53, %v2540_v52  ;;  %v7599_v2 = vunpack.i.l.bf16 %v10746_v7 }
0x17a5   :  { %v3532_v13 = vmax.f32 %v10761_v10, %v10758_v28  ;;  %v4991_v54 = vmax.f32 %v10729_v49, %v4983_v47  ;;  %v5336_v49 = vmul.f32 %v11200_v16, %v2687_v25  ;;  %v5335_v14 = vmul.f32 %v11203_v32, %v2686_v0  ;;  %v11208_v32 = vld [vmem:[#allocation46_spill] sm:$0xff] }
0x17a6   :  { %v10776_v62 = vadd.f32 %v10444_v39, %v3154_v43  ;;  %v10790_v39 = vmax.f32 %v4261_v4, %v4619_v44  ;;  %v7614_v36 = vunpack.i.l.bf16 %v10763_v35  ;;  %v4990_v58 = vmax.f32 %v10737_v48, %v10782_v30  ;;  %v11220_v48 = vld [vmem:[#allocation49_spill] sm:$0xff] }
0x17a7   :  { %v7608_v63 = vpop.permute.xlu1 %7607  ;;  %v2614_v21 = vmul.f32 %v7599_v2, %v10311_v24 }
0x17a8   :  { %v7610_v22 = vunpack.i.h.bf16 %v7608_v63  ;;  %v7609_v33 = vunpack.i.l.bf16 %v7608_v63  ;;  %v11204_v63 = vld [vmem:[#allocation47_spill] sm:$0xff]  ;;  %v2615_v25 = vmul.f32 %v7614_v36, %v10250_v57 }
0x17aa   :  { %v2469_v27 = vmul.f32 %v7610_v22, %v11155_v42  ;;  %v2323_v46 = vmul.f32 %v7609_v33, %v10704_v8  ;;  %v7623_v26 = vpop.permute.xlu0 %7622  ;;  %v11205_v33 = vld [vmem:[#allocation33_spill] sm:$0xff] }
0x17ab   :  { %v10788_v34 = vunpack.i.h.bf16 %v7623_v26  ;;  %v7618_v23 = vpop.permute.xlu1 %7617  ;;  %v7624_v22 = vunpack.i.l.bf16 %v7623_v26 }
0x17ac   :  { %v4242_v3 = vmul.f32 %v11201_v55, %v2469_v27  ;;  %v3512_v20 = vmul.f32 %v11202_v60, %v2323_v46  ;;  %v7620_v12 = vunpack.i.h.bf16 %v7618_v23  ;;  %v7619_v11 = vunpack.i.l.bf16 %v7618_v23  ;;  %v11207_v55 = vld [vmem:[#allocation40_spill] sm:$0xff] }
0x17ad   :  { %v5349_v45 = vadd.f32 %v10788_v34, %v5336_v49 }
0x17ae   :  { %v3525_v61 = vadd.f32 %v10515_v1, %v3512_v20  ;;  %v4255_v4 = vadd.f32 %v10588_v29, %v4242_v3  ;;  %v2542_v31 = vmul.f32 %v7620_v12, %v10320_v40  ;;  %v7633_v51 = vpop.permute.xlu0 %7632  ;;  %v2396_v28 = vmul.f32 %v7619_v11, %v10707_v50 }
0x17af   :  { %v7635_v10 = vunpack.i.h.bf16 %v7633_v51  ;;  %v7634_v47 = vunpack.i.l.bf16 %v7633_v51  ;;  %v7628_v52 = vpop.permute.xlu1 %7627 }
0x17b0   :  { %v3533_v9 = vmax.f32 %v10776_v62, %v3525_v61  ;;  %v4263_v43 = vmax.f32 %v10743_v41, %v4255_v4  ;;  %v4607_v1 = vmul.f32 %v11204_v63, %v2542_v31  ;;  %v7630_v44 = vunpack.i.h.bf16 %v7628_v52  ;;  %v11206_v41 = vld [vmem:[#allocation53_spill] sm:$0xff] }
0x17b1   :  { %v3877_v0 = vmul.f32 %v11205_v33, %v2396_v28  ;;  %v2470_v27 = vmul.f32 %v7635_v10, %v10707_v50  ;;  %v7629_v2 = vunpack.i.l.bf16 %v7628_v52  ;;  %v10815_v62 = vmax.f32 %v4991_v54, %v5349_v45  ;;  %v11209_v54 = vld [vmem:[#allocation52_spill] sm:$0xff]  ;;  %v11211_v63 = vld [vmem:[#allocation41_spill] sm:$0xff] }
0x17b2   :  { %v4620_v46 = vadd.f32 %v10701_v59, %v4607_v1  ;;  %v2543_v53 = vmul.f32 %v7630_v44, %v11155_v42  ;;  %v10813_v23 = vpop.permute.xlu0 %7642  ;;  %v4971_v16 = vmul.f32 %v11206_v41, %v2614_v21  ;;  %v2689_v12 = vmul.f32 %v7634_v47, %v10250_v57  ;;  %v11210_v21 = vld [vmem:[#allocation34_spill] sm:$0xff] }
0x17b3   :  { %v3890_v49 = vadd.f32 %v10508_v5, %v3877_v0  ;;  %v4243_v3 = vmul.f32 %v11207_v55, %v2470_v27  ;;  %v7645_v26 = vunpack.i.h.bf16 %v10813_v23  ;;  %v10821_v60 = vpop.permute.xlu1 %7637  ;;  %v2397_v11 = vmul.f32 %v7629_v2, %v10704_v8 }
0x17b4   :  { %v10823_v20 = vmax.f32 %v4262_v15, %v4620_v46  ;;  %v4608_v36 = vmul.f32 %v11208_v32, %v2543_v53  ;;  %v4972_v61 = vmul.f32 %v11209_v54, %v2615_v25  ;;  %v2688_v45 = vmul.f32 %v7624_v22, %v10311_v24 }
0x17b5   :  { %v3898_v4 = vmax.f32 %v3532_v13, %v3890_v49  ;;  %v4256_v31 = vadd.f32 %v10588_v29, %v4243_v3  ;;  %v2471_v51 = vmul.f32 %v7645_v26, %v10704_v8  ;;  %v3878_v28 = vmul.f32 %v11210_v21, %v2397_v11  ;;  %v11212_v13 = vld [vmem:[#allocation60_spill] sm:$0xff]  ;;  %v11216_v21 = vld [vmem:[#allocation63_spill] sm:$0xff] }
0x17b6   :  { %v4621_v15 = vadd.f32 %v10701_v59, %v4608_v36  ;;  %v7639_v10 = vunpack.i.l.bf16 %v10821_v60  ;;  %v7653_v47 = vpop.permute.xlu0 %7652  ;;  %v5338_v0 = vmul.f32 %v11212_v13, %v2689_v12  ;;  %v4984_v55 = vadd.f32 %v10750_v56, %v4971_v16  ;;  %v11214_v36 = vld [vmem:[#allocation55_spill] sm:$0xff] }
0x17b7   :  { %v4264_v52 = vmax.f32 %v3898_v4, %v4256_v31  ;;  %v4244_v1 = vmul.f32 %v11211_v63, %v2471_v51  ;;  %v7655_v44 = vunpack.i.h.bf16 %v7653_v47  ;;  %v7654_v33 = vunpack.i.l.bf16 %v7653_v47  ;;  %v10836_v25 = vpop.permute.xlu1 %7647 }
0x17b8   :  { %v3891_v27 = vadd.f32 %v10508_v5, %v3878_v28  ;;  %v4629_v46 = vmax.f32 %v4263_v43, %v4621_v15  ;;  %v2616_v22 = vmul.f32 %v7639_v10, %v10320_v40  ;;  %v7649_v49 = vunpack.i.l.bf16 %v10836_v25  ;;  %v11213_v43 = vld [vmem:[#allocation61_spill] sm:$0xff] }
0x17b9   :  { %v4257_v53 = vadd.f32 %v10588_v29, %v4244_v1  ;;  %v2690_v2 = vmul.f32 %v7655_v44, %v10320_v40  ;;  %v2544_v41 = vmul.f32 %v7654_v33, %v10707_v50  ;;  %v4985_v3 = vadd.f32 %v10750_v56, %v4972_v61  ;;  %v11215_v29 = vld [vmem:[#allocation48_spill] sm:$0xff] }
0x17ba   :  { %v3899_v26 = vmax.f32 %v3533_v9, %v3891_v27  ;;  %v10847_v32 = vpop.permute.xlu0 %7662  ;;  %v5348_v5 = vadd.f32 %v10788_v34, %v5335_v14  ;;  %v5337_v12 = vmul.f32 %v11213_v43, %v2688_v45  ;;  %v4973_v11 = vmul.f32 %v11214_v36, %v2616_v22  ;;  %v11217_v14 = vld [vmem:[#allocation54_spill] sm:$0xff] }
0x17bb   :  { %v4609_v54 = vmul.f32 %v11215_v29, %v2544_v41  ;;  %v2617_v4 = vmul.f32 %v7649_v49, %v11155_v42  ;;  %v7658_v31 = vpop.permute.xlu1 %7657  ;;  %v5339_v28 = vmul.f32 %v11216_v21, %v2690_v2  ;;  %v7664_v16 = vunpack.i.l.bf16 %v10847_v32  ;;  %v11218_v2 = vld [vmem:[#allocation56_spill] sm:$0xff]  ;;  %v11219_v49 = vld [vmem:[#allocation62_spill] sm:$0xff]  ;;  %v11221_v21 = vld [vmem:[#allocation57_spill] sm:$0xff] }
0x17bc   :  { %v4265_v51 = vmax.f32 %v3899_v26, %v4257_v53  ;;  %v7660_v61 = vunpack.i.h.bf16 %v7658_v31  ;;  %v5351_v9 = vadd.f32 %v10788_v34, %v5338_v0  ;;  %v7659_v45 = vunpack.i.l.bf16 %v7658_v31 }
0x17bd   :  { %v4622_v15 = vadd.f32 %v10701_v59, %v4609_v54  ;;  %v4974_v10 = vmul.f32 %v11217_v14, %v2617_v4  ;;  %v2618_v47 = vmul.f32 %v7664_v16, %v10707_v50  ;;  %v10864_v1 = vmax.f32 %v4990_v58, %v5348_v5 }
0x17be   :  { %v2691_v63 = vmul.f32 %v7660_v61, %v11155_v42  ;;  %v4993_v44 = vmax.f32 %v10790_v39, %v4985_v3  ;;  %v4986_v33 = vadd.f32 %v10750_v56, %v4973_v11  ;;  %v2545_v27 = vmul.f32 %v7659_v45, %v10704_v8 }
0x17bf   :  { %v4630_v13 = vmax.f32 %v4264_v52, %v4622_v15  ;;  %v4987_v0 = vadd.f32 %v10750_v56, %v4974_v10  ;;  %v7668_v22 = vpop.permute.xlu1 %7667  ;;  %v5352_v53 = vadd.f32 %v10788_v34, %v5339_v28  ;;  %v4975_v41 = vmul.f32 %v11218_v2, %v2618_v47  ;;  %v11223_v10 = vld [vmem:[#allocation64_spill] sm:$0xff] }
0x17c0   :  { %v5340_v26 = vmul.f32 %v11219_v49, %v2691_v63  ;;  %v7669_v43 = vunpack.i.l.bf16 %v7668_v22  ;;  %v4610_v30 = vmul.f32 %v11220_v48, %v2545_v27  ;;  %v10874_v58 = vmax.f32 %v4993_v44, %v5351_v9 }
0x17c1   :  { %v4618_v39 = vadd.f32 %v10701_v59, %v10785_v18  ;;  %v4995_v52 = vmax.f32 %v4629_v46, %v4987_v0  ;;  %v4988_v3 = vadd.f32 %v10750_v56, %v4975_v41  ;;  %v5350_v11 = vadd.f32 %v10788_v34, %v5337_v12 }
0x17c2   :  { %v5353_v5 = vadd.f32 %v10788_v34, %v5340_v26  ;;  %v2619_v36 = vmul.f32 %v7669_v43, %v10704_v8  ;;  %v4623_v29 = vadd.f32 %v10701_v59, %v4610_v30  ;;  %v4994_v31 = vmax.f32 %v10823_v20, %v4986_v33 }
0x17c3   :  { %v7673_v54 = vpop.permute.xlu1 %7672  ;;  %v4626_v4 = vmax.f32 %v4260_v37, %v4618_v39  ;;  %v4996_v12 = vmax.f32 %v4630_v13, %v4988_v3  ;;  %v11222_v37 = vld [vmem:[#allocation65_spill] sm:$0xff]  ;;  %v7600_v33 = vunpack.i.h.bf16 %v10746_v7  ;;  %v7650_v13 = vunpack.i.h.bf16 %v10836_v25 }
0x17c4   :  { %v4976_v18 = vmul.f32 %v11221_v21, %v2619_v36  ;;  %v7675_v46 = vunpack.i.h.bf16 %v7673_v54  ;;  %v7674_v28 = vunpack.i.l.bf16 %v7673_v54  ;;  %v10888_v16 = vmax.f32 %v4995_v52, %v5353_v5 }
0x17c5   :  { %v4631_v61 = vmax.f32 %v4265_v51, %v4623_v29  ;;  %v4992_v9 = vmax.f32 %v4626_v4, %v4984_v55  ;;  %v10890_v15 = vmax.f32 %v4994_v31, %v5352_v53  ;;  %v7644_v2 = vunpack.i.l.bf16 %v10813_v23 }
0x17c6   :  { %v4989_v59 = vadd.f32 %v10750_v56, %v4976_v18  ;;  %v2693_v14 = vmul.f32 %v7675_v46, %v10704_v8  ;;  %v2692_v38 = vmul.f32 %v7674_v28, %v10707_v50  ;;  %v7615_v56 = vunpack.i.h.bf16 %v10763_v35 }
0x17c7   :  { %v5358_v19 = vmax.f32 %v4992_v9, %v5350_v11  ;;  %v7678_v27 = vpop.permute.xlu1 %7677  ;;  %v7640_v49 = vunpack.i.h.bf16 %v10821_v60  ;;  %v2760_v43 = vmul.f32 %v7600_v33, %v10247_v6  ;;  %v2763_v48 = vmul.f32 %v7650_v13, %v10250_v57  ;;  %v11231_v33 = vld [vmem:[#allocation20_spill] sm:$0xff] }
0x17c8   :  { %v5342_v20 = vmul.f32 %v11222_v37, %v2693_v14  ;;  %v5341_v45 = vmul.f32 %v11223_v10, %v2692_v38  ;;  %v4997_v47 = vmax.f32 %v4631_v61, %v4989_v59  ;;  %v2761_v0 = vmul.f32 %v7615_v56, %v10242_v17  ;;  %v11230_v56 = vld [vmem:[#allocation21_spill] sm:$0xff] }
0x17c9   :  { %v7665_v17 = vunpack.i.h.bf16 %v10847_v32  ;;  %v2762_v52 = vmul.f32 %v7640_v49, %v10311_v24  ;;  %v7680_v23 = vunpack.i.h.bf16 %v7678_v27  ;;  %v7679_v54 = vunpack.i.l.bf16 %v7678_v27 }
0x17ca   :  { %v5355_v63 = vadd.f32 %v10788_v34, %v5342_v20  ;;  %v5354_v51 = vadd.f32 %v10788_v34, %v5341_v45  ;;  %v7670_v34 = vunpack.i.h.bf16 %v7668_v22 }
0x17cb   :  { %v2767_v24 = vmul.f32 %v7680_v23, %v10704_v8 }
0x17cc   :  { %v10899_v55 = vmax.f32 %v4997_v47, %v5355_v63  ;;  %v10901_v44 = vmax.f32 %v4996_v12, %v5354_v51  ;;  %v2765_v60 = vmul.f32 %v7670_v34, %v11155_v42  ;;  %v11225_v47 = vld [vmem:[#allocation14_spill] sm:$0xff]  ;;  %v11226_v63 = vld [vmem:[#allocation17_spill] sm:$0xff]  ;;  %v11227_v51 = vld [vmem:[#allocation16_spill] sm:$0xff] }
0x17eb   :  { %v5680_v53 = vpop.permute.xlu0 %5679 }
0x17ec   :  { %v5702_v41 = vmul.f32 %v5680_v53, %v2761_v0  ;;  %v11232_v0 = vld [vmem:[#allocation6_spill] sm:$0xff] }
0x17ee   :  { %v5715_v26 = vadd.f32 %v7644_v2, %v5702_v41 }
0x17ef   :  { %v5678_v35 = vpop.permute.xlu0 %5677  ;;  %v5684_v30 = vpop.permute.xlu1 %5683 }
0x17f0   :  { %v5723_v7 = vmax.f32 %v10815_v62, %v5715_v26  ;;  %v5701_v25 = vmul.f32 %v5678_v35, %v2760_v43  ;;  %v5704_v39 = vmul.f32 %v5684_v30, %v2763_v48  ;;  %v2764_v62 = vmul.f32 %v7665_v17, %v10320_v40  ;;  %v11234_v43 = vld [vmem:[#allocation8_spill] sm:$0xff]  ;;  %v11235_v30 = vld [vmem:[#allocation9_spill] sm:$0xff]  ;;  %v11236_v17 = vld [vmem:[#allocation10_spill] sm:$0xff] }
0x17f1   :  { %v2766_v40 = vmul.f32 %v7679_v54, %v10707_v50 }
0x17f2   :  { %v5714_v3 = vadd.f32 %v7644_v2, %v5701_v25  ;;  %v5717_v5 = vadd.f32 %v7644_v2, %v5704_v39 }
0x17f3   :  { %v5682_v22 = vpop.permute.xlu0 %5681  ;;  %v5688_v36 = vpop.permute.xlu1 %5687 }
0x17f4   :  { %v5722_v6 = vmax.f32 %v10864_v1, %v5714_v3  ;;  %v5725_v57 = vmax.f32 %v10874_v58, %v5717_v5  ;;  %v5703_v11 = vmul.f32 %v5682_v22, %v2762_v52  ;;  %v5706_v29 = vmul.f32 %v5688_v36, %v2765_v60  ;;  %v11237_v3 = vld [vmem:[#allocation11_spill] sm:$0xff] }
0x17f6   :  { %v5716_v4 = vadd.f32 %v7644_v2, %v5703_v11  ;;  %v5719_v32 = vadd.f32 %v7644_v2, %v5706_v29  ;;  %7183 = vmatprep.mubr.msk.f32.mxu0 %vm1457_vm7, %v5722_v6  ;;  %v11238_v6 = vld [vmem:[#allocation12_spill] sm:$0xff]  ;;  %v11239_v29 = vld [vmem:[#allocation13_spill] sm:$0xff] }
0x17f7   :  { %v5686_v31 = vpop.permute.xlu0 %5685  ;;  %v5692_v21 = vpop.permute.xlu1 %5691  ;;  %7184 = vmatmul.mubr.msk.f32.vlgmr.msra.gmra.mrb[100].mxu0 %vm1457_vm7, %v5723_v7 }
0x17f8   :  { %v5724_v42 = vmax.f32 %v5358_v19, %v5716_v4  ;;  %v5727_v1 = vmax.f32 %v10888_v16, %v5719_v32  ;;  %v5705_v18 = vmul.f32 %v5686_v31, %v2764_v62  ;;  %v5708_v58 = vmul.f32 %v5692_v21, %v2767_v24 }
0x17fa   :  { %v5718_v46 = vadd.f32 %v7644_v2, %v5705_v18  ;;  %v5721_v28 = vadd.f32 %v7644_v2, %v5708_v58  ;;  %7186 = vmatprep.mubr.msk.f32.mxu0 %vm1457_vm7, %v5724_v42 }
0x17fb   :  { %v5690_v61 = vpop.permute.xlu0 %5689  ;;  %7187 = vmatmul.mubr.msk.f32.gmra.mrb[102].mxu0 %vm1457_vm7, %v5725_v57  ;;  %v7688_v9 = vpop.permute.xlu1 %7687 }
0x17fc   :  { %v5726_v8 = vmax.f32 %v10890_v15, %v5718_v46  ;;  %v5729_v12 = vmax.f32 %v10899_v55, %v5721_v28  ;;  %v5707_v59 = vmul.f32 %v5690_v61, %v2766_v40  ;;  %v7690_v16 = vunpack.i.h.bf16 %v7688_v9  ;;  %v11224_v15 = vld [vmem:[#allocation15_spill] sm:$0xff] }
0x17fd   :  { %v7689_v38 = vunpack.i.l.bf16 %v7688_v9  ;;  %v11228_v55 = vld [vmem:[#allocation19_spill] sm:$0xff] }
0x17fe   :  { %v5720_v14 = vadd.f32 %v7644_v2, %v5707_v59  ;;  %7189 = vmatprep.mubr.msk.f32.mxu0 %vm1457_vm7, %v5726_v8  ;;  %v11233_v2 = vld [vmem:[#allocation7_spill] sm:$0xff] }
0x17ff   :  { %v7683_v19 = vpop.permute.xlu0 %7682  ;;  %7190 = vmatmul.mubr.msk.f32.gmra.mrb[104].mxu0 %vm1457_vm7, %v5727_v1  ;;  %v7343_v45 = vpack.c.bf16 %v7690_v16, %v7689_v38 }
0x1800   :  { %v5728_v37 = vmax.f32 %v10901_v44, %v5720_v14  ;;  %v7685_v50 = vunpack.i.h.bf16 %v7683_v19  ;;  %v7684_v20 = vunpack.i.l.bf16 %v7683_v19  ;;  %v11229_v44 = vld [vmem:[#allocation18_spill] sm:$0xff] }
0x1802   :  { %v7339_v10 = vpack.c.bf16 %v7685_v50, %v7684_v20  ;;  %7192 = vmatprep.mubr.msk.f32.mxu0 %vm1457_vm7, %v5728_v37 }
0x1803   :  { %7193 = vmatmul.mubr.msk.f32.gmra.mrb[106].mxu0 %vm1457_vm7, %v5729_v12 }
0x1804   :  { %7340 = vmatprep.subr.bf16.mxu0 %v7339_v10  ;;  %7203 = vmatprep.mubr.msk.f32.mxu0 %vm1457_vm7, %v11224_v15 }
0x1805   :  { %7342 = vmatpush3.bf16.msra.mxu0 %v7339_v10 }
0x1806   :  { %7344 = vmatprep.subr.bf16.mxu0 %v7343_v45 }
0x1809   :  { %7346 = vmatpush3.bf16.msra.mxu0 %v7343_v45 }
0x180c   :  { %7204 = vmatmul.mubr.msk.f32.vlgmr.msra.gmra.mrb[100].mxu0 %vm1457_vm7, %v11225_v47 }
0x180d   :  { %7206 = vmatprep.mubr.msk.f32.mxu0 %vm1457_vm7, %v11226_v63 }
0x1810   :  { %7207 = vmatmul.mubr.msk.f32.gmra.mrb[102].mxu0 %vm1457_vm7, %v11227_v51 }
0x1811   :  { %7209 = vmatprep.mubr.msk.f32.mxu0 %vm1457_vm7, %v11228_v55 }
0x1814   :  { %7210 = vmatmul.mubr.msk.f32.gmra.mrb[104].mxu0 %vm1457_vm7, %v11229_v44 }
0x1815   :  { %7212 = vmatprep.mubr.msk.f32.mxu0 %vm1457_vm7, %v11230_v56 }
0x1818   :  { %7213 = vmatmul.mubr.msk.f32.gmra.mrb[106].mxu0 %vm1457_vm7, %v11231_v33 }
0x18df   :  { %v7205_v13 = vpop.f32.mrb[100].mxu0 }
0x18e0   :  { %v6005_v27 = vmul.f32 %v7205_v13, %v11232_v0  ;;  %v5965_v53 = vpop.f32.mrb[101].mxu0 }
0x18e1   :  { %v6004_v41 = vmul.f32 %v5965_v53, %v11233_v2 }
0x18e2   :  { %v6015_v49 = vsel %vm1457_vm7, %v6005_v27, 0.0 }
0x18e3   :  { %6016 = vadd.xlane.f32.xlu1 %v6015_v49  ;;  %v7208_v34 = vpop.f32.mrb[102].mxu0  ;;  %v6012_v26 = vsel %vm1457_vm7, %v6004_v41, 0.0 }
0x18e4   :  { %v6007_v48 = vmul.f32 %v7208_v34, %v11234_v43  ;;  %6013 = vadd.xlane.f32.xlu0 %v6012_v26  ;;  %v5975_v35 = vpop.f32.mrb[103].mxu0 }
0x18e5   :  { %v6006_v7 = vmul.f32 %v5975_v35, %v11235_v30 }
0x18e6   :  { %v6021_v25 = vsel %vm1457_vm7, %v6007_v48, 0.0 }
0x18e7   :  { %v7211_v39 = vpop.f32.mrb[104].mxu0  ;;  %v6018_v22 = vsel %vm1457_vm7, %v6006_v7, 0.0 }
0x18e8   :  { %v6009_v52 = vmul.f32 %v7211_v39, %v11236_v17  ;;  %6022 = vadd.xlane.f32.xlu0 %v6021_v25  ;;  %v5985_v23 = vpop.f32.mrb[105].mxu0 }
0x18e9   :  { %v6008_v5 = vmul.f32 %v5985_v23, %v11237_v3 }
0x18ea   :  { %v6027_v54 = vsel %vm1457_vm7, %v6009_v52, 0.0 }
0x18eb   :  { %v7214_v60 = vpop.f32.mrb[106].mxu0  ;;  %v6024_v36 = vsel %vm1457_vm7, %v6008_v5, 0.0 }
0x18ec   :  { %v6011_v57 = vmul.f32 %v7214_v60, %v11238_v6  ;;  %6019 = vadd.xlane.f32.xlu0 %v6018_v22  ;;  %6025 = vadd.xlane.f32.xlu1 %v6024_v36  ;;  %v5995_v11 = vpop.f32.mrb[107].mxu0 }
0x18ed   :  { %v6010_v62 = vmul.f32 %v5995_v11, %v11239_v29 }
0x18ee   :  { %v6033_v32 = vsel %vm1457_vm7, %v6011_v57, 0.0 }
0x18ef   :  { %v6030_v4 = vsel %vm1457_vm7, %v6010_v62, 0.0 }
0x18f0   :  { %6028 = vadd.xlane.f32.xlu0 %v6027_v54  ;;  %6031 = vadd.xlane.f32.xlu1 %v6030_v4 }
0x18f4   :  { %6034 = vadd.xlane.f32.xlu0 %v6033_v32 }
0x1970   :  { %v6017_v24 = vpop.xlane.xlu1 %6016 }
0x1971   :  { %6038 = vst.msk [vmem:[%s11002_s6 + $0x8] sm:$0xff] %vm6036_vm5, %v6017_v24  ;;  %v6014_v31 = vpop.xlane.xlu0 %6013 }
0x1972   :  { %6037 = vst.msk [vmem:[%s11002_s6] sm:$0xff] %vm6036_vm5, %v6014_v31 }
0x1975   :  { %v6023_v21 = vpop.xlane.xlu0 %6022 }
0x1976   :  { %6040 = vst.msk [vmem:[%s11002_s6 + $0x18] sm:$0xff] %vm6036_vm5, %v6023_v21 }
0x1979   :  { %v6020_v42 = vpop.xlane.xlu0 %6019  ;;  %v6026_v1 = vpop.xlane.xlu1 %6025 }
0x197a   :  { %6039 = vst.msk [vmem:[%s11002_s6 + $0x10] sm:$0xff] %vm6036_vm5, %v6020_v42  ;;  %6041 = vst.msk [vmem:[%s11002_s6 + $0x20] sm:$0xff] %vm6036_vm5, %v6026_v1 }
0x197d   :  { %v6029_v18 = vpop.xlane.xlu0 %6028  ;;  %v6032_v58 = vpop.xlane.xlu1 %6031 }
0x197e   :  { %6042 = vst.msk [vmem:[%s11002_s6 + $0x28] sm:$0xff] %vm6036_vm5, %v6029_v18  ;;  %6043 = vst.msk [vmem:[%s11002_s6 + $0x30] sm:$0xff] %vm6036_vm5, %v6032_v58 }
0x1981   :  { %v6035_v46 = vpop.xlane.xlu0 %6034 }
0x1982   :  { %6044 = vst.msk [vmem:[%s11002_s6 + $0x38] sm:$0xff] %vm6036_vm5, %v6035_v46 }

</bundles_post_ra>
